<compile_context>
chip_gen: v7x
topology: tpu7x:2x2x1
jax: 0.10.0
libtpu: 0.0.40
codegen_flags: <defaults>
</compile_context>

<pallas_src>
import jax
import jax.numpy as jnp
from jax.experimental import pallas as pl
from jax.experimental.pallas import tpu as pltpu

INP = 8            # observation dim (synthetic)
OUTP = 2           # action dim (synthetic)
MAX_ACTION = 2.0   # env.action_space.high[0] (synthetic)
BATCH = 256        # demo batch — amortizes launch + weight DMA over real rows
TM_MAX = 1024      # max batch tile; tm = min(TM_MAX, B) -> grid=(1,) for B<=1024
HEAD_W = 128       # lane-dense padded width of the fused mean|std head output

H1, H2, H3, H4 = 128, 256, 256, 128


def actor_kernel(x_ref,
                 w1_ref, b1_ref,
                 w2_ref, b2_ref,
                 w3_ref, b3_ref,
                 w4_ref, b4_ref,
                 wh_ref, bh_ref,
                 out_ref):
    """Whole-MLP forward for one batch tile, entirely in VMEM.

    Weights are bf16 (MXU operands); bias add / ReLU / tanh / softplus are f32;
    matmul accumulation is f32 via preferred_element_type.
    """
    h = x_ref[...].astype(jnp.bfloat16)

    h = jnp.dot(h, w1_ref[...], preferred_element_type=jnp.float32) + b1_ref[...]
    h = jnp.maximum(h, 0.0).astype(jnp.bfloat16)

    h = jnp.dot(h, w2_ref[...], preferred_element_type=jnp.float32) + b2_ref[...]
    h = jnp.maximum(h, 0.0).astype(jnp.bfloat16)

    h = jnp.dot(h, w3_ref[...], preferred_element_type=jnp.float32) + b3_ref[...]
    h = jnp.maximum(h, 0.0).astype(jnp.bfloat16)

    h = jnp.dot(h, w4_ref[...], preferred_element_type=jnp.float32) + b4_ref[...]
    h = jnp.maximum(h, 0.0).astype(jnp.bfloat16)

    # Fused (lane-padded) mean|std head: one matmul into 128 lanes, then a
    # per-lane select: lanes [0,OUTP) -> max_action*tanh, the rest -> softplus.
    head = jnp.dot(h, wh_ref[...], preferred_element_type=jnp.float32) + bh_ref[...]
    lane = jax.lax.broadcasted_iota(jnp.int32, head.shape, dimension=1)
    mean = MAX_ACTION * jnp.tanh(head)
    std = jnp.logaddexp(head, 0.0)           # numerically stable softplus
    out_ref[...] = jnp.where(lane < OUTP, mean, std)


def prepare_params(params):
    """One-time (outside the step loop) param prep:
       * cast weights to bf16 (native MXU dtype, halves weight DMA),
       * fuse mean/std head weights & biases and zero-pad to HEAD_W lanes
         so the output store is lane-dense (unmasked vst path)."""
    bf = jnp.bfloat16
    wm, ws = params["wm"], params["ws"]
    bm, bs = params["bm"], params["bs"]
    # Fused head lane layout is an explicit contract with the kernel / wrapper:
    #   lanes [0, OUTP) = mean head, lanes [OUTP, 2*OUTP) = std head, rest = pad.
    assert wm.shape == (H4, OUTP) and ws.shape == (H4, OUTP)
    assert bm.shape == (1, OUTP) and bs.shape == (1, OUTP)
    wh = jnp.concatenate([wm, ws], axis=1)
    bh = jnp.concatenate([bm, bs], axis=1)
    wh = jnp.pad(wh, ((0, 0), (0, HEAD_W - 2 * OUTP)))
    bh = jnp.pad(bh, ((0, 0), (0, HEAD_W - 2 * OUTP)))
    return dict(
        w1=params["w1"].astype(bf), b1=params["b1"],
        w2=params["w2"].astype(bf), b2=params["b2"],
        w3=params["w3"].astype(bf), b3=params["b3"],
        w4=params["w4"].astype(bf), b4=params["b4"],
        wh=wh.astype(bf), bh=bh,
    )


def actor_forward(x, kparams, *, tm_max=TM_MAX, core_parallel=False):
    """x: [B, INP] float32. kparams: output of prepare_params.
    Returns (mean, std), each [B, OUTP] float32.

    core_parallel=True asks for pltpu.CORE_PARALLEL on the batch-tile axis
    (useful on v7x at large B with >=2 tiles); default keeps "parallel"."""
    B = x.shape[0]
    tm = min(tm_max, B)              # single grid step whenever B <= tm_max
    grid = (pl.cdiv(B, tm),)

    def tile_map(i):                 # batch-tiled arrays
        return (i, 0)

    def const_map(i):                # weights/biases: VMEM-resident, DMA'd once
        return (0, 0)

    weights = (
        kparams["w1"], kparams["b1"],
        kparams["w2"], kparams["b2"],
        kparams["w3"], kparams["b3"],
        kparams["w4"], kparams["b4"],
        kparams["wh"], kparams["bh"],
    )

    in_specs = [pl.BlockSpec((tm, INP), tile_map)]
    for a in weights:
        # Constant index_map -> one DMA; single-buffer to avoid a wasted copy.
        in_specs.append(pl.BlockSpec(a.shape, const_map, pipeline_mode=pl.Buffered(1)))

    # Advisory cost hint so XLA schedules neighbors around this tiny kernel.
    flops = 2 * B * (INP * H1 + H1 * H2 + H2 * H3 + H3 * H4 + H4 * HEAD_W)
    transcendentals = 2 * B * HEAD_W                      # tanh + exp per head lane
    bytes_accessed = int(x.size) * x.dtype.itemsize \
        + sum(int(a.size) * a.dtype.itemsize for a in weights) \
        + B * HEAD_W * 4

    sem = pltpu.CORE_PARALLEL if core_parallel else "parallel"

    out = pl.pallas_call(
        actor_kernel,
        out_shape=jax.ShapeDtypeStruct((B, HEAD_W), jnp.float32),
        grid_spec=pltpu.PrefetchScalarGridSpec(
            num_scalar_prefetch=0,
            grid=grid,
            in_specs=in_specs,
            out_specs=pl.BlockSpec((tm, HEAD_W), tile_map),
        ),
        compiler_params=pltpu.CompilerParams(dimension_semantics=(sem,)),
        cost_estimate=pl.CostEstimate(
            flops=flops,
            transcendentals=transcendentals,
            bytes_accessed=bytes_accessed),
    )(x, *weights)

    return out[:, :OUTP], out[:, OUTP:2 * OUTP]


def actor_reference(x, params):
    """Pure-JAX f32 reference (mirrors the PyTorch forward)."""
    h = jax.nn.relu(x @ params["w1"] + params["b1"])
    h = jax.nn.relu(h @ params["w2"] + params["b2"])
    h = jax.nn.relu(h @ params["w3"] + params["b3"])
    h = jax.nn.relu(h @ params["w4"] + params["b4"])
    mean = MAX_ACTION * jnp.tanh(h @ params["wm"] + params["bm"])
    std = jax.nn.softplus(h @ params["ws"] + params["bs"])
    return mean, std


def init_params(key):
    """Deterministic init mirroring the PyTorch module:
       weights ~ N(0, 0.1); biases use Linear's default U(-1/sqrt(fan_in), +1/sqrt(fan_in)).
       Weights are stored as [in_features, out_features] (transposed vs. PyTorch)."""
    dims = [(INP, H1), (H1, H2), (H2, H3), (H3, H4), (H4, OUTP), (H4, OUTP)]
    names = ["1", "2", "3", "4", "m", "s"]
    params = {}
    keys = jax.random.split(key, 2 * len(dims))
    for i, ((fan_in, fan_out), nm) in enumerate(zip(dims, names)):
        wk, bk = keys[2 * i], keys[2 * i + 1]
        params[f"w{nm}"] = 0.1 * jax.random.normal(wk, (fan_in, fan_out), jnp.float32)
        bound = 1.0 / jnp.sqrt(float(fan_in))
        params[f"b{nm}"] = jax.random.uniform(
            bk, (1, fan_out), jnp.float32, minval=-bound, maxval=bound)
    return params


if __name__ == "__main__":
    key = jax.random.PRNGKey(0)
    pkey, xkey = jax.random.split(key)
    params = init_params(pkey)            # f32 master params (for reference)
    kparams = prepare_params(params)      # bf16 weights + fused/padded head (one-time)
    x = jax.random.normal(xkey, (BATCH, INP), jnp.float32)

    fwd = jax.jit(actor_forward)
    mean, std = fwd(x, kparams)
    jax.block_until_ready((mean, std))

    # Shape / range checks (forward-pass semantics).
    assert mean.shape == (BATCH, OUTP) and std.shape == (BATCH, OUTP)
    assert bool(jnp.all(jnp.abs(mean) <= MAX_ACTION + 1e-5))
    assert bool(jnp.all(std >= 0.0))

    # Validate bf16-MXU-operand kernel against the f32 reference (loose tol;
    # expected deviation ~1e-2 from bf16 weight/operand rounding).
    mean_ref, std_ref = actor_reference(x, params)
    assert bool(jnp.allclose(mean, mean_ref, atol=5e-2, rtol=5e-2))
    assert bool(jnp.allclose(std, std_ref, atol=5e-2, rtol=5e-2))

    print("KERNEL_OK")
</pallas_src>

<mosaic_0001>
module attributes {stable_mosaic.version = 11 : i64} {
  func.func @actor_kernel(%arg0: i32, %arg1: memref<256x8xf32, #tpu.memory_space<vmem>>, %arg2: memref<8x128xbf16, #tpu.memory_space<vmem>>, %arg3: memref<1x128xf32, #tpu.memory_space<vmem>>, %arg4: memref<128x256xbf16, #tpu.memory_space<vmem>>, %arg5: memref<1x256xf32, #tpu.memory_space<vmem>>, %arg6: memref<256x256xbf16, #tpu.memory_space<vmem>>, %arg7: memref<1x256xf32, #tpu.memory_space<vmem>>, %arg8: memref<256x128xbf16, #tpu.memory_space<vmem>>, %arg9: memref<1x128xf32, #tpu.memory_space<vmem>>, %arg10: memref<128x128xbf16, #tpu.memory_space<vmem>>, %arg11: memref<1x128xf32, #tpu.memory_space<vmem>>, %arg12: memref<256x128xf32, #tpu.memory_space<vmem>>) attributes {dimension_semantics = [#tpu.dimension_semantics<parallel>], iteration_bounds = array<i64: 1>, scalar_prefetch = 0 : i64, scratch_operands = 0 : i64, tpu.core_type = #tpu.core_type<tc>, window_params = [{transform_indices = @transform_0, window_bounds = array<i64: 256, 8>}, {pipeline_mode = #tpu.pipeline_mode<synchronous>, transform_indices = @transform_1, window_bounds = array<i64: 8, 128>}, {pipeline_mode = #tpu.pipeline_mode<synchronous>, transform_indices = @transform_2, window_bounds = array<i64: 1, 128>}, {pipeline_mode = #tpu.pipeline_mode<synchronous>, transform_indices = @transform_3, window_bounds = array<i64: 128, 256>}, {pipeline_mode = #tpu.pipeline_mode<synchronous>, transform_indices = @transform_4, window_bounds = array<i64: 1, 256>}, {pipeline_mode = #tpu.pipeline_mode<synchronous>, transform_indices = @transform_5, window_bounds = array<i64: 256, 256>}, {pipeline_mode = #tpu.pipeline_mode<synchronous>, transform_indices = @transform_6, window_bounds = array<i64: 1, 256>}, {pipeline_mode = #tpu.pipeline_mode<synchronous>, transform_indices = @transform_7, window_bounds = array<i64: 256, 128>}, {pipeline_mode = #tpu.pipeline_mode<synchronous>, transform_indices = @transform_8, window_bounds = array<i64: 1, 128>}, {pipeline_mode = #tpu.pipeline_mode<synchronous>, transform_indices = @transform_9, window_bounds = array<i64: 128, 128>}, {pipeline_mode = #tpu.pipeline_mode<synchronous>, transform_indices = @transform_10, window_bounds = array<i64: 1, 128>}, {transform_indices = @transform_11, window_bounds = array<i64: 256, 128>}]} {
    %c0 = arith.constant 0 : index
    %c0_0 = arith.constant 0 : index
    %0 = vector.load %arg1[%c0, %c0_0] : memref<256x8xf32, #tpu.memory_space<vmem>>, vector<256x8xf32>
    %1 = arith.truncf %0 : vector<256x8xf32> to vector<256x8xbf16>
    %c0_1 = arith.constant 0 : index
    %c0_2 = arith.constant 0 : index
    %2 = vector.load %arg2[%c0_1, %c0_2] : memref<8x128xbf16, #tpu.memory_space<vmem>>, vector<8x128xbf16>
    %cst = arith.constant dense<0.000000e+00> : vector<256x128xf32>
    %3 = tpu.matmul %1, %2, %cst {dimension_numbers = #tpu.dot_dimension_numbers<[1], [0], [0], [1], [0, 0, 1, 1], [], []>} : vector<256x8xbf16>, vector<8x128xbf16>, vector<256x128xf32> -> vector<256x128xf32>
    %c0_3 = arith.constant 0 : index
    %c0_4 = arith.constant 0 : index
    %4 = vector.load %arg3[%c0_3, %c0_4] : memref<1x128xf32, #tpu.memory_space<vmem>>, vector<1x128xf32>
    %5 = vector.broadcast %4 : vector<1x128xf32> to vector<256x128xf32>
    %6 = arith.addf %3, %5 : vector<256x128xf32>
    %cst_5 = arith.constant 0.000000e+00 : f32
    %7 = vector.broadcast %cst_5 : f32 to vector<256x128xf32>
    %8 = arith.maximumf %6, %7 : vector<256x128xf32>
    %9 = arith.truncf %8 : vector<256x128xf32> to vector<256x128xbf16>
    %c0_6 = arith.constant 0 : index
    %c0_7 = arith.constant 0 : index
    %10 = vector.load %arg4[%c0_6, %c0_7] : memref<128x256xbf16, #tpu.memory_space<vmem>>, vector<128x256xbf16>
    %cst_8 = arith.constant dense<0.000000e+00> : vector<256x256xf32>
    %11 = tpu.matmul %9, %10, %cst_8 {dimension_numbers = #tpu.dot_dimension_numbers<[1], [0], [0], [1], [0, 0, 1, 1], [], []>} : vector<256x128xbf16>, vector<128x256xbf16>, vector<256x256xf32> -> vector<256x256xf32>
    %c0_9 = arith.constant 0 : index
    %c0_10 = arith.constant 0 : index
    %12 = vector.load %arg5[%c0_9, %c0_10] : memref<1x256xf32, #tpu.memory_space<vmem>>, vector<1x256xf32>
    %13 = vector.broadcast %12 : vector<1x256xf32> to vector<256x256xf32>
    %14 = arith.addf %11, %13 : vector<256x256xf32>
    %cst_11 = arith.constant 0.000000e+00 : f32
    %15 = vector.broadcast %cst_11 : f32 to vector<256x256xf32>
    %16 = arith.maximumf %14, %15 : vector<256x256xf32>
    %17 = arith.truncf %16 : vector<256x256xf32> to vector<256x256xbf16>
    %c0_12 = arith.constant 0 : index
    %c0_13 = arith.constant 0 : index
    %18 = vector.load %arg6[%c0_12, %c0_13] : memref<256x256xbf16, #tpu.memory_space<vmem>>, vector<256x256xbf16>
    %cst_14 = arith.constant dense<0.000000e+00> : vector<256x256xf32>
    %19 = tpu.matmul %17, %18, %cst_14 {dimension_numbers = #tpu.dot_dimension_numbers<[1], [0], [0], [1], [0, 0, 1, 1], [], []>} : vector<256x256xbf16>, vector<256x256xbf16>, vector<256x256xf32> -> vector<256x256xf32>
    %c0_15 = arith.constant 0 : index
    %c0_16 = arith.constant 0 : index
    %20 = vector.load %arg7[%c0_15, %c0_16] : memref<1x256xf32, #tpu.memory_space<vmem>>, vector<1x256xf32>
    %21 = vector.broadcast %20 : vector<1x256xf32> to vector<256x256xf32>
    %22 = arith.addf %19, %21 : vector<256x256xf32>
    %cst_17 = arith.constant 0.000000e+00 : f32
    %23 = vector.broadcast %cst_17 : f32 to vector<256x256xf32>
    %24 = arith.maximumf %22, %23 : vector<256x256xf32>
    %25 = arith.truncf %24 : vector<256x256xf32> to vector<256x256xbf16>
    %c0_18 = arith.constant 0 : index
    %c0_19 = arith.constant 0 : index
    %26 = vector.load %arg8[%c0_18, %c0_19] : memref<256x128xbf16, #tpu.memory_space<vmem>>, vector<256x128xbf16>
    %cst_20 = arith.constant dense<0.000000e+00> : vector<256x128xf32>
    %27 = tpu.matmul %25, %26, %cst_20 {dimension_numbers = #tpu.dot_dimension_numbers<[1], [0], [0], [1], [0, 0, 1, 1], [], []>} : vector<256x256xbf16>, vector<256x128xbf16>, vector<256x128xf32> -> vector<256x128xf32>
    %c0_21 = arith.constant 0 : index
    %c0_22 = arith.constant 0 : index
    %28 = vector.load %arg9[%c0_21, %c0_22] : memref<1x128xf32, #tpu.memory_space<vmem>>, vector<1x128xf32>
    %29 = vector.broadcast %28 : vector<1x128xf32> to vector<256x128xf32>
    %30 = arith.addf %27, %29 : vector<256x128xf32>
    %cst_23 = arith.constant 0.000000e+00 : f32
    %31 = vector.broadcast %cst_23 : f32 to vector<256x128xf32>
    %32 = arith.maximumf %30, %31 : vector<256x128xf32>
    %33 = arith.truncf %32 : vector<256x128xf32> to vector<256x128xbf16>
    %c0_24 = arith.constant 0 : index
    %c0_25 = arith.constant 0 : index
    %34 = vector.load %arg10[%c0_24, %c0_25] : memref<128x128xbf16, #tpu.memory_space<vmem>>, vector<128x128xbf16>
    %cst_26 = arith.constant dense<0.000000e+00> : vector<256x128xf32>
    %35 = tpu.matmul %33, %34, %cst_26 {dimension_numbers = #tpu.dot_dimension_numbers<[1], [0], [0], [1], [0, 0, 1, 1], [], []>} : vector<256x128xbf16>, vector<128x128xbf16>, vector<256x128xf32> -> vector<256x128xf32>
    %c0_27 = arith.constant 0 : index
    %c0_28 = arith.constant 0 : index
    %36 = vector.load %arg11[%c0_27, %c0_28] : memref<1x128xf32, #tpu.memory_space<vmem>>, vector<1x128xf32>
    %37 = vector.broadcast %36 : vector<1x128xf32> to vector<256x128xf32>
    %38 = arith.addf %35, %37 : vector<256x128xf32>
    %39 = tpu.iota {dimensions = array<i32: 1>} : vector<256x128xi32>
    %40 = math.tanh %38 : vector<256x128xf32>
    %cst_29 = arith.constant 2.000000e+00 : f32
    %41 = vector.broadcast %cst_29 : f32 to vector<256x128xf32>
    %42 = arith.mulf %41, %40 : vector<256x128xf32>
    %cst_30 = arith.constant 0.000000e+00 : f32
    %43 = vector.broadcast %cst_30 : f32 to vector<256x128xf32>
    %44 = arith.maximumf %38, %43 : vector<256x128xf32>
    %45 = vector.broadcast %cst_30 : f32 to vector<256x128xf32>
    %46 = arith.subf %38, %45 : vector<256x128xf32>
    %47 = arith.cmpf one, %46, %46 : vector<256x128xf32>
    %48 = vector.broadcast %cst_30 : f32 to vector<256x128xf32>
    %49 = arith.addf %38, %48 : vector<256x128xf32>
    %50 = math.absf %46 : vector<256x128xf32>
    %cst_31 = arith.constant 0.000000e+00 : f32
    %51 = vector.broadcast %cst_31 : f32 to vector<256x128xf32>
    %52 = arith.subf %51, %50 : vector<256x128xf32>
    %53 = math.exp %52 : vector<256x128xf32>
    %54 = math.log1p %53 : vector<256x128xf32>
    %55 = arith.addf %44, %54 : vector<256x128xf32>
    %56 = arith.select %47, %49, %55 : vector<256x128xi1>, vector<256x128xf32>
    %c2_i32 = arith.constant 2 : i32
    %57 = vector.broadcast %c2_i32 : i32 to vector<256x128xi32>
    %58 = arith.cmpi slt, %39, %57 : vector<256x128xi32>
    %59 = arith.select %58, %42, %56 : vector<256x128xi1>, vector<256x128xf32>
    %c0_32 = arith.constant 0 : index
    %c0_33 = arith.constant 0 : index
    %60 = vector.load %arg12[%c0_32, %c0_33] : memref<256x128xf32, #tpu.memory_space<vmem>>, vector<256x128xf32>
    tpu.vector_store %arg12[%c0_32, %c0_33], %59 {strides = array<i32>} : memref<256x128xf32, #tpu.memory_space<vmem>>, vector<256x128xf32>,
    return
  }
  func.func @transform_0(%arg0: i32) -> (i32, i32) {
    %c0_i32 = arith.constant 0 : i32
    %c0_i32_0 = arith.constant 0 : i32
    return %arg0, %c0_i32 : i32, i32
  }
  func.func @transform_1(%arg0: i32) -> (i32, i32) {
    %c0_i32 = arith.constant 0 : i32
    %c0_i32_0 = arith.constant 0 : i32
    %c0_i32_1 = arith.constant 0 : i32
    return %c0_i32, %c0_i32_0 : i32, i32
  }
  func.func @transform_2(%arg0: i32) -> (i32, i32) {
    %c0_i32 = arith.constant 0 : i32
    %c0_i32_0 = arith.constant 0 : i32
    %c0_i32_1 = arith.constant 0 : i32
    return %c0_i32, %c0_i32_0 : i32, i32
  }
  func.func @transform_3(%arg0: i32) -> (i32, i32) {
    %c0_i32 = arith.constant 0 : i32
    %c0_i32_0 = arith.constant 0 : i32
    %c0_i32_1 = arith.constant 0 : i32
    return %c0_i32, %c0_i32_0 : i32, i32
  }
  func.func @transform_4(%arg0: i32) -> (i32, i32) {
    %c0_i32 = arith.constant 0 : i32
    %c0_i32_0 = arith.constant 0 : i32
    %c0_i32_1 = arith.constant 0 : i32
    return %c0_i32, %c0_i32_0 : i32, i32
  }
  func.func @transform_5(%arg0: i32) -> (i32, i32) {
    %c0_i32 = arith.constant 0 : i32
    %c0_i32_0 = arith.constant 0 : i32
    %c0_i32_1 = arith.constant 0 : i32
    return %c0_i32, %c0_i32_0 : i32, i32
  }
  func.func @transform_6(%arg0: i32) -> (i32, i32) {
    %c0_i32 = arith.constant 0 : i32
    %c0_i32_0 = arith.constant 0 : i32
    %c0_i32_1 = arith.constant 0 : i32
    return %c0_i32, %c0_i32_0 : i32, i32
  }
  func.func @transform_7(%arg0: i32) -> (i32, i32) {
    %c0_i32 = arith.constant 0 : i32
    %c0_i32_0 = arith.constant 0 : i32
    %c0_i32_1 = arith.constant 0 : i32
    return %c0_i32, %c0_i32_0 : i32, i32
  }
  func.func @transform_8(%arg0: i32) -> (i32, i32) {
    %c0_i32 = arith.constant 0 : i32
    %c0_i32_0 = arith.constant 0 : i32
    %c0_i32_1 = arith.constant 0 : i32
    return %c0_i32, %c0_i32_0 : i32, i32
  }
  func.func @transform_9(%arg0: i32) -> (i32, i32) {
    %c0_i32 = arith.constant 0 : i32
    %c0_i32_0 = arith.constant 0 : i32
    %c0_i32_1 = arith.constant 0 : i32
    return %c0_i32, %c0_i32_0 : i32, i32
  }
  func.func @transform_10(%arg0: i32) -> (i32, i32) {
    %c0_i32 = arith.constant 0 : i32
    %c0_i32_0 = arith.constant 0 : i32
    %c0_i32_1 = arith.constant 0 : i32
    return %c0_i32, %c0_i32_0 : i32, i32
  }
  func.func @transform_11(%arg0: i32) -> (i32, i32) {
    %c0_i32 = arith.constant 0 : i32
    %c0_i32_0 = arith.constant 0 : i32
    return %arg0, %c0_i32 : i32, i32
  }
}

</mosaic_0001>

<bundles_post_ra>
// kernel: actor_forward.1
= control target key start
LH: loop header
LB: loop body
LE: loop exit
PB: predicated region body
PF: predicated region fallthrough
CT: control target
= control target key end

     0   :  { %16 = vsyncpa [#allocation3], 0  ;;  %s4621_s0 = inlined_call_operand.vmem [shape: f32[256,8], index: 0, kind: input, shape index: {}]   ;;  %s4622_s1 = inlined_call_operand.vmem [shape: bf16[8,128], index: 1, kind: input, shape index: {}]   ;;  %s4623_s2 = inlined_call_operand.vmem [shape: f32[1,128], index: 2, kind: input, shape index: {}]   ;;  %s4624_s3 = inlined_call_operand.hbm [shape: bf16[128,256], index: 3, kind: input, shape index: {}]   ;;  %s4625_s4 = inlined_call_operand.vmem [shape: f32[1,256], index: 4, kind: input, shape index: {}]   ;;  %s4626_s5 = inlined_call_operand.vmem [shape: bf16[256,256], index: 5, kind: input, shape index: {}]   ;;  %s4627_s6 = inlined_call_operand.vmem [shape: f32[1,256], index: 6, kind: input, shape index: {}]   ;;  %s4628_s7 = inlined_call_operand.hbm [shape: bf16[256,128], index: 7, kind: input, shape index: {}]   ;;  %s4629_s8 = inlined_call_operand.vmem [shape: f32[1,128], index: 8, kind: input, shape index: {}]   ;;  %s4630_s9 = inlined_call_operand.hbm [shape: bf16[128,128], index: 9, kind: input, shape index: {}]   ;;  %s4631_s10 = inlined_call_operand.vmem [shape: f32[1,128], index: 10, kind: input, shape index: {}]   ;;  %s4632_s11 = inlined_call_operand.vmem [shape: f32[256,128], index: 11, kind: output, shape index: {}]  }
   0x1   :  { %17 = vsyncpa [#allocation5], 0  ;;  %s3271_s17 = smov [#allocation4]   ;;  %s3201_s21 = scalar_lea.hbm %s4628_s7, 2048 }
   0x2   :  { %s47_s18 = sshll.u32 %s3271_s17, 4  ;;  %p3202_p0 = scmp.ne.s32.totalorder %s4628_s7, %s3201_s21  ;;  %s48_s18 = int_to_ptr.vmem [resolvable:$true] %s47_s18 }
   0x3   :  { %p3205_p1 = scmp.lt.u32.totalorder %s3201_s21, %s4628_s7 }
   0x5   :  { %p3207_p2 = pnand %p3205_p1, %p3202_p0 }
   0x7   :  { %3210 = shalt.err (!%p3207_p2)
}
   0x8   :  { %s3211_s26 = scalar_lea.vmem %s48_s18, 2048  ;;  %p3216_p4 = scmp.lt.s32.totalorder %s48_s18, %s48_s18 }
   0x9   :  { %p3212_p3 = scmp.ne.s32.totalorder %s48_s18, %s3211_s26  ;;  %p3217_p5 = scmp.lt.s32.totalorder %s3211_s26, %s3211_s26 }
   0xb   :  { %p3218_p6 = por %p3217_p5, %p3216_p4 }
   0xd   :  { %p3219_p7 = pnand %p3218_p6, %p3212_p3 }
   0xf   :  { %3222 = shalt.err (!%p3219_p7)
}
  0x10   :  { %s3272_s27 = smov 64   ;;  %s3273_s28 = smov 4  }
  0x11   :  { %53 = dma.hbm_to_vmem [thread:$0]  %s4628_s7, 2048, %s48_s18, [#allocation5], %s3272_s27, %s3272_s27, %s3273_s28  }
  0x12   :  { %s3274_s12 = smov [#allocation2]   ;;  %s3223_s16 = scalar_lea.hbm %s4624_s3, 2048 }
  0x13   :  { %s29_s13 = sshll.u32 %s3274_s12, 4  ;;  %p3224_p8 = scmp.ne.s32.totalorder %s4624_s3, %s3223_s16  ;;  %s30_s13 = int_to_ptr.vmem [resolvable:$true] %s29_s13 }
  0x14   :  { %p3227_p9 = scmp.lt.u32.totalorder %s3223_s16, %s4624_s3 }
  0x16   :  { %p3229_p10 = pnand %p3227_p9, %p3224_p8 }
  0x18   :  { %3232 = shalt.err (!%p3229_p10)
}
  0x19   :  { %s3233_s22 = scalar_lea.vmem %s30_s13, 2048  ;;  %p3238_p12 = scmp.lt.s32.totalorder %s30_s13, %s30_s13 }
  0x1a   :  { %p3234_p11 = scmp.ne.s32.totalorder %s30_s13, %s3233_s22  ;;  %p3239_p13 = scmp.lt.s32.totalorder %s3233_s22, %s3233_s22 }
  0x1c   :  { %p3240_p0 = por %p3239_p13, %p3238_p12 }
  0x1e   :  { %p3241_p1 = pnand %p3240_p0, %p3234_p11 }
  0x20   :  { %3244 = shalt.err (!%p3241_p1)
}
  0x21   :  { %s3275_s7 = smov 128   ;;  %s3276_s18 = smov 8  }
  0x22   :  { %35 = dma.hbm_to_vmem [thread:$0]  %s4624_s3, 2048, %s30_s13, [#allocation3], %s3275_s7, %s3275_s7, %s3276_s18  }
  0x23   :  { %s3277_s25 = smov [#allocation6]   ;;  %s3245_s12 = scalar_lea.hbm %s4630_s9, 1024 }
  0x24   :  { %s61_s26 = sshll.u32 %s3277_s25, 4  ;;  %p3246_p2 = scmp.ne.s32.totalorder %s4630_s9, %s3245_s12  ;;  %s62_s26 = int_to_ptr.vmem [resolvable:$true] %s61_s26 }
  0x25   :  { %p3249_p3 = scmp.lt.u32.totalorder %s3245_s12, %s4630_s9 }
  0x27   :  { %p3251_p4 = pnand %p3249_p3, %p3246_p2 }
  0x29   :  { %3254 = shalt.err (!%p3251_p4)
}
  0x2a   :  { %s3255_s19 = scalar_lea.vmem %s62_s26, 1024  ;;  %p3260_p6 = scmp.lt.s32.totalorder %s62_s26, %s62_s26 }
  0x2b   :  { %p3256_p5 = scmp.ne.s32.totalorder %s62_s26, %s3255_s19  ;;  %p3261_p7 = scmp.lt.s32.totalorder %s3255_s19, %s3255_s19 }
  0x2d   :  { %p3262_p8 = por %p3261_p7, %p3260_p6 }
  0x2f   :  { %p3263_p9 = pnand %p3262_p8, %p3256_p5 }
  0x31   :  { %3266 = shalt.err (!%p3263_p9)
}
  0x32   :  { %67 = dma.hbm_to_vmem [thread:$0]  %s4630_s9, 1024, %s62_s26, [#allocation5], %s3272_s27, %s3272_s27, %s3273_s28  }
  0x33   :  { %3267 = dma.done.wait [#allocation3], 2048  }
  0x34   :  { %3268 = vsyncadd [#allocation3], 4294965248 }
  0x35   :  { %3269 = dma.done.wait [#allocation5], 3072  }
  0x36   :  { %3270 = vsyncadd [#allocation5], 4294964224  ;;  %vm185_vm0 = vcmask 1043456   ;;  %v128_v0 = vld [vmem:[%s4622_s1] sm:$0xf]  ;;  %v81_v2 = vld [vmem:[%s4621_s0 + $0x8] sm:$0xff] }
  0x37   :  { %v80_v1 = vld [vmem:[%s4621_s0] sm:$0xff]  ;;  %vm136_vm1 = vcmask 64512   ;;  %2903 = vmatprep.subr.msk.bf16.mxu0 %vm185_vm0, %v128_v0  ;;  %v187_v3 = vsel %vm185_vm0, %v128_v0, 0  ;;  %v82_v5 = vld [vmem:[%s4621_s0 + $0x10] sm:$0xff]  ;;  %v83_v6 = vld [vmem:[%s4621_s0 + $0x18] sm:$0xff] }
  0x38   :  { %v112_v4 = vpack.c.bf16 %v81_v2, %v80_v1  ;;  %v84_v7 = vld [vmem:[%s4621_s0 + $0x20] sm:$0xff]  ;;  %2822 = vmatpush3.bf16.msra.mxu0 %v187_v3  ;;  %v113_v8 = vpack.c.bf16 %v83_v6, %v82_v5  ;;  %v85_v9 = vld [vmem:[%s4621_s0 + $0x28] sm:$0xff]  ;;  %v86_v11 = vld [vmem:[%s4621_s0 + $0x30] sm:$0xff]  ;;  %v3278_v2 = vmov 0  }
  0x39   :  { %v114_v10 = vpack.c.bf16 %v85_v9, %v84_v7  ;;  %v87_v12 = vld [vmem:[%s4621_s0 + $0x38] sm:$0xff]  ;;  %v88_v13 = vld [vmem:[%s4621_s0 + $0x40] sm:$0xff]  ;;  %v89_v14 = vld [vmem:[%s4621_s0 + $0x48] sm:$0xff]  ;;  %538 = vmatprep.mubr.bf16.mxu1 %v3278_v2 }
  0x3a   :  { %2823 = vmatprep.mubr.msk.bf16.mxu0 %vm136_vm1, %v112_v4  ;;  %v115_v15 = vpack.c.bf16 %v87_v12, %v86_v11  ;;  %v116_v16 = vpack.c.bf16 %v89_v14, %v88_v13  ;;  %v2912_v17 = vld [vmem:[#allocation2 + $0x4] ss:$8 sps:$4 sm:$0xff]   ;;  %v90_v18 = vld [vmem:[%s4621_s0 + $0x50] sm:$0xff]  ;;  %v91_v19 = vld [vmem:[%s4621_s0 + $0x58] sm:$0xff] }
  0x3b   :  { %2824 = vmatmul.mubr.msk.bf16.vlgmr.msra.gmra.mrb[0].mxu0 %vm136_vm1, %v113_v8  ;;  %v2914_v20 = vld [vmem:[#allocation2] ss:$8 sps:$4 sm:$0xff]   ;;  %506 = vmatprep.subr.bf16.mxu1 %v2912_v17  ;;  %v2915_v22 = vld [vmem:[#allocation2 + $0x14] ss:$8 sps:$4 sm:$0xff]   ;;  %v2917_v24 = vld [vmem:[#allocation2 + $0x10] ss:$8 sps:$4 sm:$0xff]   ;;  %v117_v26 = vpack.c.bf16 %v91_v19, %v90_v18 }
  0x3c   :  { %2827 = vmatprep.mubr.msk.bf16.mxu0 %vm136_vm1, %v114_v10  ;;  %v92_v21 = vld [vmem:[%s4621_s0 + $0x60] sm:$0xff]  ;;  %v93_v23 = vld [vmem:[%s4621_s0 + $0x68] sm:$0xff]  ;;  %507 = vmatpush1.bf16.msra.mxu1 %v2914_v20  ;;  %v2921_v29 = vld [vmem:[#allocation2 + $0x34] ss:$8 sps:$4 sm:$0xff]  }
  0x3d   :  { %508 = vmatprep.subr.bf16.mxu1 %v2915_v22  ;;  %v2918_v25 = vld [vmem:[#allocation2 + $0x24] ss:$8 sps:$4 sm:$0xff]   ;;  %v118_v27 = vpack.c.bf16 %v93_v23, %v92_v21  ;;  %v2920_v28 = vld [vmem:[#allocation2 + $0x20] ss:$8 sps:$4 sm:$0xff]   ;;  %v94_v30 = vld [vmem:[%s4621_s0 + $0x70] sm:$0xff] }
  0x3e   :  { %v95_v31 = vld [vmem:[%s4621_s0 + $0x78] sm:$0xff]  ;;  %v96_v33 = vld [vmem:[%s4621_s0 + $0x80] sm:$0xff]  ;;  %v97_v34 = vld [vmem:[%s4621_s0 + $0x88] sm:$0xff] }
  0x3f   :  { %v2923_v32 = vld [vmem:[#allocation2 + $0x30] ss:$8 sps:$4 sm:$0xff]   ;;  %v2924_v35 = vld [vmem:[#allocation2 + $0x44] ss:$8 sps:$4 sm:$0xff]   ;;  %v2926_v36 = vld [vmem:[#allocation2 + $0x40] ss:$8 sps:$4 sm:$0xff]   ;;  %v119_v37 = vpack.c.bf16 %v95_v31, %v94_v30  ;;  %v120_v39 = vpack.c.bf16 %v97_v34, %v96_v33 }
  0x40   :  { %509 = vmatpush1.bf16.msra.mxu1 %v2917_v24  ;;  %v2927_v38 = vld [vmem:[#allocation2 + $0x54] ss:$8 sps:$4 sm:$0xff]   ;;  %v2929_v42 = vld [vmem:[#allocation2 + $0x50] ss:$8 sps:$4 sm:$0xff]   ;;  %v100_v43 = vld [vmem:[%s4621_s0 + $0xa0] sm:$0xff] }
  0x41   :  { %510 = vmatprep.subr.bf16.mxu1 %v2918_v25  ;;  %v98_v40 = vld [vmem:[%s4621_s0 + $0x90] sm:$0xff]  ;;  %v99_v41 = vld [vmem:[%s4621_s0 + $0x98] sm:$0xff]  ;;  %v101_v44 = vld [vmem:[%s4621_s0 + $0xa8] sm:$0xff] }
  0x42   :  { %v121_v45 = vpack.c.bf16 %v99_v41, %v98_v40  ;;  %v122_v46 = vpack.c.bf16 %v101_v44, %v100_v43  ;;  %v102_v47 = vld [vmem:[%s4621_s0 + $0xb0] sm:$0xff]  ;;  %v103_v48 = vld [vmem:[%s4621_s0 + $0xb8] sm:$0xff]  ;;  %v104_v49 = vld [vmem:[%s4621_s0 + $0xc0] sm:$0xff] }
  0x43   :  { %2828 = vmatmul.mubr.msk.bf16.gmra.mrb[4].mxu0 %vm136_vm1, %v115_v15  ;;  %v105_v50 = vld [vmem:[%s4621_s0 + $0xc8] sm:$0xff]  ;;  %v123_v51 = vpack.c.bf16 %v103_v48, %v102_v47  ;;  %v106_v53 = vld [vmem:[%s4621_s0 + $0xd0] sm:$0xff]  ;;  %v107_v54 = vld [vmem:[%s4621_s0 + $0xd8] sm:$0xff] }
  0x44   :  { %2831 = vmatprep.mubr.msk.bf16.mxu0 %vm136_vm1, %v116_v16  ;;  %511 = vmatpush1.bf16.msra.mxu1 %v2920_v28  ;;  %v124_v52 = vpack.c.bf16 %v105_v50, %v104_v49  ;;  %v108_v55 = vld [vmem:[%s4621_s0 + $0xe0] sm:$0xff]  ;;  %v109_v56 = vld [vmem:[%s4621_s0 + $0xe8] sm:$0xff]  ;;  %v125_v57 = vpack.c.bf16 %v107_v54, %v106_v53  ;;  %v110_v59 = vld [vmem:[%s4621_s0 + $0xf0] sm:$0xff] }
  0x45   :  { %512 = vmatprep.subr.bf16.mxu1 %v2921_v29  ;;  %v126_v58 = vpack.c.bf16 %v109_v56, %v108_v55  ;;  %v111_v60 = vld [vmem:[%s4621_s0 + $0xf8] sm:$0xff]  ;;  %v2930_v62 = vld [vmem:[#allocation2 + $0x64] ss:$8 sps:$4 sm:$0xff]   ;;  %v2932_v63 = vld [vmem:[#allocation2 + $0x60] ss:$8 sps:$4 sm:$0xff]  }
  0x46   :  { %v127_v61 = vpack.c.bf16 %v111_v60, %v110_v59  ;;  %v2933_v0 = vld [vmem:[#allocation2 + $0x74] ss:$8 sps:$4 sm:$0xff]   ;;  %v2935_v1 = vld [vmem:[#allocation2 + $0x70] ss:$8 sps:$4 sm:$0xff]   ;;  %v3500_v3 = vld [vmem:[%s4623_s2] ss:$0 sm:$0xff] }
  0x47   :  { %v2936_v9 = vld [vmem:[%s4626_s5] ss:$8 sps:$4 sm:$0xff]   ;;  %v2938_v10 = vld [vmem:[%s4626_s5 + $0x4] ss:$8 sps:$4 sm:$0xff]   ;;  %v2941_v13 = vld [vmem:[%s4626_s5 + $0x14] ss:$8 sps:$4 sm:$0xff]  }
  0x48   :  { %513 = vmatpush1.bf16.msra.mxu1 %v2923_v32  ;;  %999 = vmatprep.subr.bf16.mxu0 %v2938_v10  ;;  %v2939_v17 = vld [vmem:[%s4626_s5 + $0x10] ss:$8 sps:$4 sm:$0xff]   ;;  %v2944_v20 = vld [vmem:[%s4626_s5 + $0x24] ss:$8 sps:$4 sm:$0xff]   ;;  %v2947_v29 = vld [vmem:[%s4626_s5 + $0x34] ss:$8 sps:$4 sm:$0xff]  }
  0x49   :  { %514 = vmatprep.subr.bf16.mxu1 %v2924_v35  ;;  %1000 = vmatpush1.bf16.msra.mxu0 %v2936_v9  ;;  %v2948_v44 = vld [vmem:[%s4626_s5 + $0x40] ss:$8 sps:$4 sm:$0xff]   ;;  %v2953_v47 = vld [vmem:[%s4626_s5 + $0x54] ss:$8 sps:$4 sm:$0xff]   ;;  %v2951_v54 = vld [vmem:[%s4626_s5 + $0x50] ss:$8 sps:$4 sm:$0xff]  }
  0x4a   :  { %1001 = vmatprep.subr.bf16.mxu0 %v2941_v13  ;;  %v2956_v56 = vld [vmem:[%s4626_s5 + $0x64] ss:$8 sps:$4 sm:$0xff]   ;;  %v2957_v10 = vld [vmem:[%s4626_s5 + $0x70] ss:$8 sps:$4 sm:$0xff]  }
  0x4b   :  { %2832 = vmatmul.mubr.msk.bf16.gmra.mrb[8].mxu0 %vm136_vm1, %v117_v26  ;;  %v2942_v26 = vld [vmem:[%s4626_s5 + $0x20] ss:$8 sps:$4 sm:$0xff]  }
  0x4c   :  { %2835 = vmatprep.mubr.msk.bf16.mxu0 %vm136_vm1, %v118_v27  ;;  %515 = vmatpush1.bf16.msra.mxu1 %v2926_v36  ;;  %v2945_v36 = vld [vmem:[%s4626_s5 + $0x30] ss:$8 sps:$4 sm:$0xff]  }
  0x4d   :  { %516 = vmatprep.subr.bf16.mxu1 %v2927_v38  ;;  %1002 = vmatpush1.bf16.msra.mxu0 %v2939_v17  ;;  %v2950_v38 = vld [vmem:[%s4626_s5 + $0x44] ss:$8 sps:$4 sm:$0xff]  }
  0x4e   :  { %1003 = vmatprep.subr.bf16.mxu0 %v2944_v20 }
  0x50   :  { %517 = vmatpush1.bf16.msra.mxu1 %v2929_v42 }
  0x51   :  { %518 = vmatprep.subr.bf16.mxu1 %v2930_v62  ;;  %1004 = vmatpush1.bf16.msra.mxu0 %v2942_v26  ;;  %v2954_v62 = vld [vmem:[%s4626_s5 + $0x60] ss:$8 sps:$4 sm:$0xff]  }
  0x52   :  { %1005 = vmatprep.subr.bf16.mxu0 %v2947_v29 }
  0x53   :  { %2836 = vmatmul.mubr.msk.bf16.gmra.mrb[12].mxu0 %vm136_vm1, %v119_v37 }
  0x54   :  { %2839 = vmatprep.mubr.msk.bf16.mxu0 %vm136_vm1, %v120_v39  ;;  %519 = vmatpush1.bf16.msra.mxu1 %v2932_v63 }
  0x55   :  { %520 = vmatprep.subr.bf16.mxu1 %v2933_v0  ;;  %1006 = vmatpush1.bf16.msra.mxu0 %v2945_v36  ;;  %v2966_v36 = vld [vmem:[%s4626_s5 + $0xa0] ss:$8 sps:$4 sm:$0xff]  }
  0x56   :  { %1007 = vmatprep.subr.bf16.mxu0 %v2950_v38 }
  0x58   :  { %521 = vmatpush1.bf16.msra.mxu1 %v2935_v1  ;;  %v2959_v1 = vld [vmem:[%s4626_s5 + $0x74] ss:$8 sps:$4 sm:$0xff]  }
  0x59   :  { %1008 = vmatpush1.bf16.msra.mxu0 %v2948_v44 }
  0x5a   :  { %1009 = vmatprep.subr.bf16.mxu0 %v2953_v47 }
  0x5b   :  { %2840 = vmatmul.mubr.msk.bf16.gmra.mrb[16].mxu0 %vm136_vm1, %v121_v45 }
  0x5c   :  { %2843 = vmatprep.mubr.msk.bf16.mxu0 %vm136_vm1, %v122_v46 }
  0x5d   :  { %1010 = vmatpush1.bf16.msra.mxu0 %v2951_v54  ;;  %v2972_v54 = vld [vmem:[%s4626_s5 + $0xc0] ss:$8 sps:$4 sm:$0xff]  }
  0x5e   :  { %1011 = vmatprep.subr.bf16.mxu0 %v2956_v56 }
  0x61   :  { %1012 = vmatpush1.bf16.msra.mxu0 %v2954_v62 }
  0x62   :  { %1013 = vmatprep.subr.bf16.mxu0 %v2959_v1 }
  0x63   :  { %2844 = vmatmul.mubr.msk.bf16.gmra.mrb[20].mxu0 %vm136_vm1, %v123_v51 }
  0x64   :  { %2847 = vmatprep.mubr.msk.bf16.mxu0 %vm136_vm1, %v124_v52 }
  0x65   :  { %1014 = vmatpush1.bf16.msra.mxu0 %v2957_v10 }
  0x6b   :  { %2848 = vmatmul.mubr.msk.bf16.gmra.mrb[24].mxu0 %vm136_vm1, %v125_v57 }
  0x6c   :  { %2851 = vmatprep.mubr.msk.bf16.mxu0 %vm136_vm1, %v126_v58 }
  0x73   :  { %2852 = vmatmul.mubr.msk.bf16.gmra.mrb[28].mxu0 %vm136_vm1, %v127_v61 }
 0x10e   :  { %v2825_v4 = vpop.f32.mrb[0].mxu0 }
 0x10f   :  { %v232_v5 = vadd.f32 %v2825_v4, %v3500_v3  ;;  %v223_v6 = vpop.f32.mrb[1].mxu0 }
 0x110   :  { %v224_v7 = vadd.f32 %v3500_v3, %v223_v6  ;;  %v2826_v8 = vpop.f32.mrb[2].mxu0 }
 0x111   :  { %v235_v11 = vadd.f32 %v2826_v8, %v3500_v3  ;;  %v226_v12 = vpop.f32.mrb[3].mxu0  ;;  %v352_v15 = vmax.f32 %v232_v5, 0.0 }
 0x112   :  { %v227_v14 = vadd.f32 %v3500_v3, %v226_v12  ;;  %v350_v18 = vmax.f32 %v224_v7, 0.0  ;;  %v2962_v12 = vld [vmem:[%s4626_s5 + $0x84] ss:$8 sps:$4 sm:$0xff]  }
 0x113   :  { %v353_v16 = vmax.f32 %v235_v11, 0.0  ;;  %1015 = vmatprep.subr.bf16.mxu0 %v2962_v12 }
 0x114   :  { %v351_v19 = vmax.f32 %v227_v14, 0.0 }
 0x115   :  { %v383_v21 = vpack.c.bf16 %v353_v16, %v352_v15 }
 0x116   :  { %v382_v22 = vpack.c.bf16 %v351_v19, %v350_v18  ;;  %v2829_v23 = vpop.f32.mrb[4].mxu0  ;;  %v2960_v18 = vld [vmem:[%s4626_s5 + $0x80] ss:$8 sps:$4 sm:$0xff]  }
 0x117   :  { %v248_v24 = vadd.f32 %v2829_v23, %v3500_v3  ;;  %v239_v25 = vpop.f32.mrb[5].mxu0  ;;  %1016 = vmatpush1.bf16.msra.mxu0 %v2960_v18 }
 0x118   :  { %539 = vmatmul.mubr.bf16.vlgmr.msra.gmra.mrb[0].mxu1 %v382_v22  ;;  %v240_v27 = vadd.f32 %v3500_v3, %v239_v25  ;;  %v2830_v28 = vpop.f32.mrb[6].mxu0 }
 0x119   :  { %v356_v30 = vmax.f32 %v248_v24, 0.0  ;;  %v251_v31 = vadd.f32 %v2830_v28, %v3500_v3  ;;  %v242_v32 = vpop.f32.mrb[7].mxu0  ;;  %548 = vmatprep.mubr.bf16.mxu1 %v3278_v2  ;;  %v2963_v28 = vld [vmem:[%s4626_s5 + $0x90] ss:$8 sps:$4 sm:$0xff]  }
 0x11a   :  { %v354_v33 = vmax.f32 %v240_v27, 0.0  ;;  %v243_v34 = vadd.f32 %v3500_v3, %v242_v32 }
 0x11b   :  { %v357_v35 = vmax.f32 %v251_v31, 0.0 }
 0x11c   :  { %v355_v37 = vmax.f32 %v243_v34, 0.0 }
 0x11d   :  { %v385_v39 = vpack.c.bf16 %v357_v35, %v356_v30  ;;  %v2968_v30 = vld [vmem:[%s4626_s5 + $0xa4] ss:$8 sps:$4 sm:$0xff]  }
 0x11e   :  { %v384_v40 = vpack.c.bf16 %v355_v37, %v354_v33  ;;  %v2833_v41 = vpop.f32.mrb[8].mxu0 }
 0x11f   :  { %v264_v42 = vadd.f32 %v2833_v41, %v3500_v3  ;;  %v255_v43 = vpop.f32.mrb[9].mxu0 }
 0x120   :  { %549 = vmatmul.mubr.bf16.gmra.mrb[4].mxu1 %v383_v21  ;;  %v256_v45 = vadd.f32 %v3500_v3, %v255_v43  ;;  %v2834_v46 = vpop.f32.mrb[10].mxu0  ;;  %v2965_v21 = vld [vmem:[%s4626_s5 + $0x94] ss:$8 sps:$4 sm:$0xff]  }
 0x121   :  { %558 = vmatprep.mubr.bf16.mxu1 %v3278_v2  ;;  %v360_v48 = vmax.f32 %v264_v42, 0.0  ;;  %v267_v49 = vadd.f32 %v2834_v46, %v3500_v3  ;;  %v258_v50 = vpop.f32.mrb[11].mxu0  ;;  %1017 = vmatprep.subr.bf16.mxu0 %v2965_v21  ;;  %v2969_v46 = vld [vmem:[%s4626_s5 + $0xb0] ss:$8 sps:$4 sm:$0xff]  }
 0x122   :  { %v358_v51 = vmax.f32 %v256_v45, 0.0  ;;  %v259_v52 = vadd.f32 %v3500_v3, %v258_v50  ;;  %1018 = vmatpush1.bf16.msra.mxu0 %v2963_v28  ;;  %v414_v28 = vld [vmem:[%s4625_s4] sm:$0x3] }
 0x123   :  { %v361_v53 = vmax.f32 %v267_v49, 0.0  ;;  %1019 = vmatprep.subr.bf16.mxu0 %v2968_v30  ;;  %v2986_v30 = vld [vmem:[#allocation4 + $0x48] sm:$0xff]  }
 0x124   :  { %v359_v55 = vmax.f32 %v259_v52, 0.0 }
 0x125   :  { %v3555_v57 = vpack.c.bf16 %v361_v53, %v360_v48  ;;  %v2974_v48 = vld [vmem:[%s4626_s5 + $0xc4] ss:$8 sps:$4 sm:$0xff]  }
 0x126   :  { %v386_v58 = vpack.c.bf16 %v359_v55, %v358_v51  ;;  %v2837_v59 = vpop.f32.mrb[12].mxu0  ;;  %1020 = vmatpush1.bf16.msra.mxu0 %v2966_v36 }
 0x127   :  { %v280_v60 = vadd.f32 %v2837_v59, %v3500_v3  ;;  %v271_v61 = vpop.f32.mrb[13].mxu0 }
 0x128   :  { %559 = vmatmul.mubr.bf16.gmra.mrb[8].mxu1 %v384_v40  ;;  %v272_v63 = vadd.f32 %v3500_v3, %v271_v61  ;;  %v2838_v0 = vpop.f32.mrb[14].mxu0 }
 0x129   :  { %568 = vmatprep.mubr.bf16.mxu1 %v3278_v2  ;;  %v364_v4 = vmax.f32 %v280_v60, 0.0  ;;  %v283_v5 = vadd.f32 %v2838_v0, %v3500_v3  ;;  %v274_v6 = vpop.f32.mrb[15].mxu0 }
 0x12a   :  { %v362_v7 = vmax.f32 %v272_v63, 0.0  ;;  %v275_v8 = vadd.f32 %v3500_v3, %v274_v6 }
 0x12b   :  { %v365_v9 = vmax.f32 %v283_v5, 0.0 }
 0x12c   :  { %v363_v11 = vmax.f32 %v275_v8, 0.0 }
 0x12d   :  { %v3574_v13 = vpack.c.bf16 %v365_v9, %v364_v4 }
 0x12e   :  { %v3576_v14 = vpack.c.bf16 %v363_v11, %v362_v7  ;;  %v2841_v15 = vpop.f32.mrb[16].mxu0 }
 0x12f   :  { %v296_v16 = vadd.f32 %v2841_v15, %v3500_v3  ;;  %v287_v17 = vpop.f32.mrb[17].mxu0 }
 0x130   :  { %569 = vmatmul.mubr.bf16.gmra.mrb[12].mxu1 %v385_v39  ;;  %v288_v19 = vadd.f32 %v3500_v3, %v287_v17  ;;  %v2842_v20 = vpop.f32.mrb[18].mxu0  ;;  %v2971_v39 = vld [vmem:[%s4626_s5 + $0xb4] ss:$8 sps:$4 sm:$0xff]  }
 0x131   :  { %578 = vmatprep.mubr.bf16.mxu1 %v3278_v2  ;;  %v368_v22 = vmax.f32 %v296_v16, 0.0  ;;  %v299_v23 = vadd.f32 %v2842_v20, %v3500_v3  ;;  %v290_v24 = vpop.f32.mrb[19].mxu0  ;;  %1021 = vmatprep.subr.bf16.mxu0 %v2971_v39 }
 0x132   :  { %v366_v25 = vmax.f32 %v288_v19, 0.0  ;;  %v291_v26 = vadd.f32 %v3500_v3, %v290_v24  ;;  %1022 = vmatpush1.bf16.msra.mxu0 %v2969_v46  ;;  %v2985_v24 = vld [vmem:[#allocation4] sm:$0xff]  }
 0x133   :  { %v369_v27 = vmax.f32 %v299_v23, 0.0  ;;  %1023 = vmatprep.subr.bf16.mxu0 %v2974_v48  ;;  %v2984_v23 = vld [vmem:[#allocation4 + $0x40] sm:$0xff]   ;;  %v2991_v48 = vld [vmem:[#allocation4 + $0x18] sm:$0xff]  }
 0x134   :  { %v367_v29 = vmax.f32 %v291_v26, 0.0  ;;  %2685 = vmatprep.subr.bf16.mxu1 %v2984_v23 }
 0x135   :  { %v3595_v31 = vpack.c.bf16 %v369_v27, %v368_v22  ;;  %v2981_v22 = vld [vmem:[%s4626_s5 + $0xf0] ss:$8 sps:$4 sm:$0xff]   ;;  %2686 = vmatpush3.bf16.msra.mxu1 %v2985_v24 }
 0x136   :  { %v3597_v32 = vpack.c.bf16 %v367_v29, %v366_v25  ;;  %v2845_v33 = vpop.f32.mrb[20].mxu0  ;;  %1024 = vmatpush1.bf16.msra.mxu0 %v2972_v54  ;;  %v416_v25 = vlaneseq  ;;  %2687 = vmatprep.subr.bf16.mxu1 %v2986_v30 }
 0x137   :  { %v312_v34 = vadd.f32 %v2845_v33, %v3500_v3  ;;  %v303_v35 = vpop.f32.mrb[21].mxu0 }
 0x138   :  { %579 = vmatmul.mubr.bf16.gmra.mrb[16].mxu1 %v386_v58  ;;  %v304_v37 = vadd.f32 %v3500_v3, %v303_v35  ;;  %v2846_v38 = vpop.f32.mrb[22].mxu0  ;;  %v2977_v58 = vld [vmem:[%s4626_s5 + $0xd4] ss:$8 sps:$4 sm:$0xff]   ;;  %v3661_v26 = vshrl.u32 %v416_v25, 7 }
 0x139   :  { %588 = vmatprep.mubr.bf16.mxu1 %v3278_v2  ;;  %v372_v40 = vmax.f32 %v312_v34, 0.0  ;;  %v315_v41 = vadd.f32 %v2846_v38, %v3500_v3  ;;  %v306_v42 = vpop.f32.mrb[23].mxu0  ;;  %1025 = vmatprep.subr.bf16.mxu0 %v2977_v58  ;;  %v2993_v58 = vld [vmem:[#allocation4 + $0x20] sm:$0xff]  }
 0x13a   :  { %v370_v43 = vmax.f32 %v304_v37, 0.0  ;;  %v307_v44 = vadd.f32 %v3500_v3, %v306_v42  ;;  %v418_v27 = vsub.s32 0, %v3661_v26  ;;  %v422_v29 = vsub.s32 1, %v3661_v26  ;;  %v2990_v42 = vld [vmem:[#allocation4 + $0x58] sm:$0xff]  }
 0x13b   :  { %v373_v45 = vmax.f32 %v315_v41, 0.0  ;;  %v2989_v41 = vld [vmem:[#allocation4 + $0x10] sm:$0xff]  }
 0x13c   :  { %v371_v47 = vmax.f32 %v307_v44, 0.0 }
 0x13d   :  { %v393_v49 = vpack.c.bf16 %v373_v45, %v372_v40  ;;  %v2988_v40 = vld [vmem:[#allocation4 + $0x50] sm:$0xff]  }
 0x13e   :  { %v392_v50 = vpack.c.bf16 %v371_v47, %v370_v43  ;;  %v2849_v51 = vpop.f32.mrb[24].mxu0 }
 0x13f   :  { %v328_v52 = vadd.f32 %v2849_v51, %v3500_v3  ;;  %v319_v53 = vpop.f32.mrb[25].mxu0 }
 0x140   :  { %589 = vmatmul.mubr.bf16.gmra.mrb[20].mxu1 %v3555_v57  ;;  %v320_v55 = vadd.f32 %v3500_v3, %v319_v53  ;;  %v2850_v56 = vpop.f32.mrb[26].mxu0  ;;  %v2975_v57 = vld [vmem:[%s4626_s5 + $0xd0] ss:$8 sps:$4 sm:$0xff]  }
 0x141   :  { %598 = vmatprep.mubr.bf16.mxu1 %v3278_v2  ;;  %v376_v59 = vmax.f32 %v328_v52, 0.0  ;;  %v331_v60 = vadd.f32 %v2850_v56, %v3500_v3  ;;  %v322_v61 = vpop.f32.mrb[27].mxu0  ;;  %1026 = vmatpush1.bf16.msra.mxu0 %v2975_v57 }
 0x142   :  { %v374_v62 = vmax.f32 %v320_v55, 0.0  ;;  %v323_v63 = vadd.f32 %v3500_v3, %v322_v61  ;;  %v2994_v61 = vld [vmem:[#allocation4 + $0x68] sm:$0xff]  }
 0x143   :  { %v377_v0 = vmax.f32 %v331_v60, 0.0 }
 0x144   :  { %v375_v1 = vmax.f32 %v323_v63, 0.0 }
 0x145   :  { %v395_v4 = vpack.c.bf16 %v377_v0, %v376_v59 }
 0x146   :  { %v394_v5 = vpack.c.bf16 %v375_v1, %v374_v62  ;;  %v2853_v6 = vpop.f32.mrb[28].mxu0 }
 0x147   :  { %v344_v7 = vadd.f32 %v2853_v6, %v3500_v3  ;;  %v335_v8 = vpop.f32.mrb[29].mxu0  ;;  %v2996_v6 = vld [vmem:[#allocation4 + $0x70] sm:$0xff]  }
 0x148   :  { %599 = vmatmul.mubr.bf16.gmra.mrb[24].mxu1 %v3576_v14  ;;  %v336_v9 = vadd.f32 %v3500_v3, %v335_v8  ;;  %v2854_v10 = vpop.f32.mrb[30].mxu0  ;;  %v2983_v14 = vld [vmem:[%s4626_s5 + $0xf4] ss:$8 sps:$4 sm:$0xff]  }
 0x149   :  { %608 = vmatprep.mubr.bf16.mxu1 %v3278_v2  ;;  %v380_v11 = vmax.f32 %v344_v7, 0.0  ;;  %v347_v12 = vadd.f32 %v2854_v10, %v3500_v3  ;;  %v338_v15 = vpop.f32.mrb[31].mxu0 }
 0x14a   :  { %v378_v16 = vmax.f32 %v336_v9, 0.0  ;;  %v339_v17 = vadd.f32 %v3500_v3, %v338_v15  ;;  %v2980_v3 = vld [vmem:[%s4626_s5 + $0xe4] ss:$8 sps:$4 sm:$0xff]   ;;  %v2997_v15 = vld [vmem:[#allocation4 + $0x30] sm:$0xff]  }
 0x14b   :  { %v381_v18 = vmax.f32 %v347_v12, 0.0  ;;  %1027 = vmatprep.subr.bf16.mxu0 %v2980_v3 }
 0x14c   :  { %v379_v19 = vmax.f32 %v339_v17, 0.0 }
 0x14d   :  { %v397_v20 = vpack.c.bf16 %v381_v18, %v380_v11  ;;  %v2998_v18 = vld [vmem:[#allocation4 + $0x78] sm:$0xff]  }
 0x14e   :  { %v396_v21 = vpack.c.bf16 %v379_v19, %v378_v16 }
 0x150   :  { %609 = vmatmul.mubr.bf16.gmra.mrb[28].mxu1 %v3574_v13  ;;  %v2978_v13 = vld [vmem:[%s4626_s5 + $0xe0] ss:$8 sps:$4 sm:$0xff]  }
 0x151   :  { %618 = vmatprep.mubr.bf16.mxu1 %v3278_v2  ;;  %1028 = vmatpush1.bf16.msra.mxu0 %v2978_v13 }
 0x152   :  { %1029 = vmatprep.subr.bf16.mxu0 %v2983_v14  ;;  %v2999_v14 = vld [vmem:[#allocation4 + $0x38] sm:$0xff]  }
 0x155   :  { %1030 = vmatpush1.bf16.msra.mxu0 %v2981_v22 }
 0x158   :  { %619 = vmatmul.mubr.bf16.gmra.mrb[32].mxu1 %v3597_v32  ;;  %v3674_v32 = vrot.slane %v414_v28, %v422_v29 }
 0x159   :  { %628 = vmatprep.mubr.bf16.mxu1 %v3278_v2 }
 0x160   :  { %629 = vmatmul.mubr.bf16.gmra.mrb[36].mxu1 %v3595_v31  ;;  %v2987_v31 = vld [vmem:[#allocation4 + $0x8] sm:$0xff]  }
 0x161   :  { %638 = vmatprep.mubr.bf16.mxu1 %v3278_v2  ;;  %2688 = vmatpush3.bf16.msra.mxu1 %v2987_v31 }
 0x162   :  { %2689 = vmatprep.subr.bf16.mxu1 %v2988_v40 }
 0x165   :  { %2690 = vmatpush3.bf16.msra.mxu1 %v2989_v41 }
 0x166   :  { %2691 = vmatprep.subr.bf16.mxu1 %v2990_v42 }
 0x168   :  { %639 = vmatmul.mubr.bf16.gmra.mrb[40].mxu1 %v392_v50  ;;  %v2992_v50 = vld [vmem:[#allocation4 + $0x60] sm:$0xff]  }
 0x169   :  { %648 = vmatprep.mubr.bf16.mxu1 %v3278_v2  ;;  %2692 = vmatpush3.bf16.msra.mxu1 %v2991_v48 }
 0x16a   :  { %2693 = vmatprep.subr.bf16.mxu1 %v2992_v50 }
 0x16d   :  { %2694 = vmatpush3.bf16.msra.mxu1 %v2993_v58 }
 0x16e   :  { %2695 = vmatprep.subr.bf16.mxu1 %v2994_v61 }
 0x170   :  { %649 = vmatmul.mubr.bf16.gmra.mrb[44].mxu1 %v393_v49 }
 0x171   :  { %658 = vmatprep.mubr.bf16.mxu1 %v3278_v2 }
 0x178   :  { %659 = vmatmul.mubr.bf16.gmra.mrb[48].mxu1 %v394_v5 }
 0x179   :  { %668 = vmatprep.mubr.bf16.mxu1 %v3278_v2 }
 0x180   :  { %669 = vmatmul.mubr.bf16.gmra.mrb[52].mxu1 %v395_v4  ;;  %v2995_v4 = vld [vmem:[#allocation4 + $0x28] sm:$0xff]  }
 0x181   :  { %678 = vmatprep.mubr.bf16.mxu1 %v3278_v2  ;;  %2696 = vmatpush3.bf16.msra.mxu1 %v2995_v4 }
 0x182   :  { %2697 = vmatprep.subr.bf16.mxu1 %v2996_v6 }
 0x185   :  { %2698 = vmatpush3.bf16.msra.mxu1 %v2997_v15 }
 0x186   :  { %2699 = vmatprep.subr.bf16.mxu1 %v2998_v18 }
 0x188   :  { %679 = vmatmul.mubr.bf16.gmra.mrb[56].mxu1 %v396_v21 }
 0x189   :  { %688 = vmatprep.mubr.bf16.mxu1 %v3278_v2  ;;  %v3670_v2 = vrot.slane %v414_v28, %v418_v27  ;;  %2700 = vmatpush3.bf16.msra.mxu1 %v2999_v14 }
 0x190   :  { %689 = vmatmul.mubr.bf16.gmra.mrb[60].mxu1 %v397_v20 }
 0x1eb   :  { %v540_v33 = vpop.f32.mrb[0].mxu1 }
 0x1ec   :  { %v541_v34 = vadd.f32 %v540_v33, %v3670_v2  ;;  %v542_v35 = vpop.f32.mrb[1].mxu1 }
 0x1ed   :  { %v543_v36 = vadd.f32 %v542_v35, %v3674_v32  ;;  %v544_v37 = vpop.f32.mrb[2].mxu1 }
 0x1ee   :  { %v545_v38 = vadd.f32 %v544_v37, %v3670_v2  ;;  %v546_v39 = vpop.f32.mrb[3].mxu1  ;;  %v699_v44 = vmax.f32 %v541_v34, 0.0 }
 0x1ef   :  { %v547_v43 = vadd.f32 %v546_v39, %v3674_v32  ;;  %v700_v46 = vmax.f32 %v543_v36, 0.0 }
 0x1f0   :  { %v701_v45 = vmax.f32 %v545_v38, 0.0 }
 0x1f1   :  { %v702_v47 = vmax.f32 %v547_v43, 0.0 }
 0x1f2   :  { %v763_v49 = vpack.c.bf16 %v701_v45, %v699_v44 }
 0x1f3   :  { %v764_v51 = vpack.c.bf16 %v702_v47, %v700_v46  ;;  %v550_v52 = vpop.f32.mrb[4].mxu1 }
 0x1f4   :  { %v551_v53 = vadd.f32 %v550_v52, %v3670_v2  ;;  %v552_v54 = vpop.f32.mrb[5].mxu1 }
 0x1f5   :  { %v553_v55 = vadd.f32 %v552_v54, %v3674_v32  ;;  %v554_v56 = vpop.f32.mrb[6].mxu1  ;;  %1031 = vmatprep.mubr.bf16.mxu0 %v764_v51 }
 0x1f6   :  { %v555_v59 = vadd.f32 %v554_v56, %v3670_v2  ;;  %v556_v60 = vpop.f32.mrb[7].mxu1  ;;  %1032 = vmatmul.mubr.bf16.vlgmr.msra.gmra.mrb[32].mxu0 %v763_v49  ;;  %v703_v63 = vmax.f32 %v551_v53, 0.0 }
 0x1f7   :  { %v557_v62 = vadd.f32 %v556_v60, %v3674_v32  ;;  %v704_v57 = vmax.f32 %v553_v55, 0.0 }
 0x1f8   :  { %v705_v0 = vmax.f32 %v555_v59, 0.0 }
 0x1f9   :  { %v706_v1 = vmax.f32 %v557_v62, 0.0 }
 0x1fa   :  { %v765_v5 = vpack.c.bf16 %v705_v0, %v703_v63 }
 0x1fb   :  { %v766_v7 = vpack.c.bf16 %v706_v1, %v704_v57  ;;  %v560_v8 = vpop.f32.mrb[8].mxu1 }
 0x1fc   :  { %v561_v9 = vadd.f32 %v560_v8, %v3670_v2  ;;  %v562_v10 = vpop.f32.mrb[9].mxu1 }
 0x1fd   :  { %v563_v11 = vadd.f32 %v562_v10, %v3674_v32  ;;  %v564_v12 = vpop.f32.mrb[10].mxu1  ;;  %1041 = vmatprep.mubr.bf16.mxu0 %v766_v7 }
 0x1fe   :  { %v565_v16 = vadd.f32 %v564_v12, %v3670_v2  ;;  %v566_v17 = vpop.f32.mrb[11].mxu1  ;;  %1042 = vmatmul.mubr.bf16.gmra.mrb[36].mxu0 %v765_v5  ;;  %v707_v20 = vmax.f32 %v561_v9, 0.0 }
 0x1ff   :  { %v567_v19 = vadd.f32 %v566_v17, %v3674_v32  ;;  %v708_v3 = vmax.f32 %v563_v11, 0.0 }
 0x200   :  { %v709_v21 = vmax.f32 %v565_v16, 0.0 }
 0x201   :  { %v710_v13 = vmax.f32 %v567_v19, 0.0 }
 0x202   :  { %v767_v22 = vpack.c.bf16 %v709_v21, %v707_v20 }
 0x203   :  { %v768_v23 = vpack.c.bf16 %v710_v13, %v708_v3  ;;  %v570_v24 = vpop.f32.mrb[12].mxu1 }
 0x204   :  { %v571_v28 = vadd.f32 %v570_v24, %v3670_v2  ;;  %v572_v30 = vpop.f32.mrb[13].mxu1 }
 0x205   :  { %v573_v31 = vadd.f32 %v572_v30, %v3674_v32  ;;  %v574_v33 = vpop.f32.mrb[14].mxu1  ;;  %1051 = vmatprep.mubr.bf16.mxu0 %v768_v23 }
 0x206   :  { %v575_v34 = vadd.f32 %v574_v33, %v3670_v2  ;;  %v576_v35 = vpop.f32.mrb[15].mxu1  ;;  %1052 = vmatmul.mubr.bf16.gmra.mrb[40].mxu0 %v767_v22  ;;  %v711_v37 = vmax.f32 %v571_v28, 0.0 }
 0x207   :  { %v577_v36 = vadd.f32 %v576_v35, %v3674_v32  ;;  %v712_v39 = vmax.f32 %v573_v31, 0.0 }
 0x208   :  { %v713_v38 = vmax.f32 %v575_v34, 0.0 }
 0x209   :  { %v714_v40 = vmax.f32 %v577_v36, 0.0 }
 0x20a   :  { %v769_v41 = vpack.c.bf16 %v713_v38, %v711_v37 }
 0x20b   :  { %v770_v42 = vpack.c.bf16 %v714_v40, %v712_v39  ;;  %v580_v43 = vpop.f32.mrb[16].mxu1 }
 0x20c   :  { %v581_v44 = vadd.f32 %v580_v43, %v3670_v2  ;;  %v582_v45 = vpop.f32.mrb[17].mxu1 }
 0x20d   :  { %v583_v46 = vadd.f32 %v582_v45, %v3674_v32  ;;  %v584_v47 = vpop.f32.mrb[18].mxu1  ;;  %1061 = vmatprep.mubr.bf16.mxu0 %v770_v42 }
 0x20e   :  { %v585_v48 = vadd.f32 %v584_v47, %v3670_v2  ;;  %v586_v49 = vpop.f32.mrb[19].mxu1  ;;  %1062 = vmatmul.mubr.bf16.gmra.mrb[44].mxu0 %v769_v41  ;;  %v715_v51 = vmax.f32 %v581_v44, 0.0 }
 0x20f   :  { %v587_v50 = vadd.f32 %v586_v49, %v3674_v32  ;;  %v716_v53 = vmax.f32 %v583_v46, 0.0 }
 0x210   :  { %v717_v52 = vmax.f32 %v585_v48, 0.0 }
 0x211   :  { %v718_v54 = vmax.f32 %v587_v50, 0.0 }
 0x212   :  { %v771_v55 = vpack.c.bf16 %v717_v52, %v715_v51 }
 0x213   :  { %v772_v56 = vpack.c.bf16 %v718_v54, %v716_v53  ;;  %v590_v58 = vpop.f32.mrb[20].mxu1 }
 0x214   :  { %v591_v59 = vadd.f32 %v590_v58, %v3670_v2  ;;  %v592_v60 = vpop.f32.mrb[21].mxu1 }
 0x215   :  { %v593_v61 = vadd.f32 %v592_v60, %v3674_v32  ;;  %v594_v62 = vpop.f32.mrb[22].mxu1  ;;  %1071 = vmatprep.mubr.bf16.mxu0 %v772_v56 }
 0x216   :  { %v595_v63 = vadd.f32 %v594_v62, %v3670_v2  ;;  %v596_v0 = vpop.f32.mrb[23].mxu1  ;;  %1072 = vmatmul.mubr.bf16.gmra.mrb[48].mxu0 %v771_v55  ;;  %v719_v1 = vmax.f32 %v591_v59, 0.0 }
 0x217   :  { %v597_v57 = vadd.f32 %v596_v0, %v3674_v32  ;;  %v720_v5 = vmax.f32 %v593_v61, 0.0 }
 0x218   :  { %v721_v4 = vmax.f32 %v595_v63, 0.0 }
 0x219   :  { %v722_v6 = vmax.f32 %v597_v57, 0.0 }
 0x21a   :  { %v773_v7 = vpack.c.bf16 %v721_v4, %v719_v1 }
 0x21b   :  { %v774_v8 = vpack.c.bf16 %v722_v6, %v720_v5  ;;  %v600_v9 = vpop.f32.mrb[24].mxu1 }
 0x21c   :  { %v601_v10 = vadd.f32 %v600_v9, %v3670_v2  ;;  %v602_v11 = vpop.f32.mrb[25].mxu1 }
 0x21d   :  { %v603_v12 = vadd.f32 %v602_v11, %v3674_v32  ;;  %v604_v15 = vpop.f32.mrb[26].mxu1  ;;  %1081 = vmatprep.mubr.bf16.mxu0 %v774_v8 }
 0x21e   :  { %v605_v16 = vadd.f32 %v604_v15, %v3670_v2  ;;  %v606_v17 = vpop.f32.mrb[27].mxu1  ;;  %1082 = vmatmul.mubr.bf16.gmra.mrb[52].mxu0 %v773_v7  ;;  %v723_v19 = vmax.f32 %v601_v10, 0.0 }
 0x21f   :  { %v607_v18 = vadd.f32 %v606_v17, %v3674_v32  ;;  %v724_v21 = vmax.f32 %v603_v12, 0.0 }
 0x220   :  { %v725_v20 = vmax.f32 %v605_v16, 0.0 }
 0x221   :  { %v726_v3 = vmax.f32 %v607_v18, 0.0 }
 0x222   :  { %v775_v13 = vpack.c.bf16 %v725_v20, %v723_v19 }
 0x223   :  { %v776_v14 = vpack.c.bf16 %v726_v3, %v724_v21  ;;  %v610_v22 = vpop.f32.mrb[28].mxu1 }
 0x224   :  { %v611_v23 = vadd.f32 %v610_v22, %v3670_v2  ;;  %v612_v24 = vpop.f32.mrb[29].mxu1 }
 0x225   :  { %v613_v28 = vadd.f32 %v612_v24, %v3674_v32  ;;  %v614_v30 = vpop.f32.mrb[30].mxu1  ;;  %1091 = vmatprep.mubr.bf16.mxu0 %v776_v14 }
 0x226   :  { %v615_v31 = vadd.f32 %v614_v30, %v3670_v2  ;;  %v616_v33 = vpop.f32.mrb[31].mxu1  ;;  %1092 = vmatmul.mubr.bf16.gmra.mrb[56].mxu0 %v775_v13  ;;  %v727_v35 = vmax.f32 %v611_v23, 0.0 }
 0x227   :  { %v617_v34 = vadd.f32 %v616_v33, %v3674_v32  ;;  %v728_v37 = vmax.f32 %v613_v28, 0.0 }
 0x228   :  { %v729_v36 = vmax.f32 %v615_v31, 0.0 }
 0x229   :  { %v730_v38 = vmax.f32 %v617_v34, 0.0 }
 0x22a   :  { %v777_v39 = vpack.c.bf16 %v729_v36, %v727_v35 }
 0x22b   :  { %v778_v40 = vpack.c.bf16 %v730_v38, %v728_v37  ;;  %v620_v41 = vpop.f32.mrb[32].mxu1 }
 0x22c   :  { %v621_v42 = vadd.f32 %v620_v41, %v3670_v2  ;;  %v622_v43 = vpop.f32.mrb[33].mxu1 }
 0x22d   :  { %v623_v44 = vadd.f32 %v622_v43, %v3674_v32  ;;  %v624_v45 = vpop.f32.mrb[34].mxu1  ;;  %1101 = vmatprep.mubr.bf16.mxu0 %v778_v40 }
 0x22e   :  { %v625_v46 = vadd.f32 %v624_v45, %v3670_v2  ;;  %v626_v47 = vpop.f32.mrb[35].mxu1  ;;  %1102 = vmatmul.mubr.bf16.gmra.mrb[60].mxu0 %v777_v39  ;;  %v731_v49 = vmax.f32 %v621_v42, 0.0 }
 0x22f   :  { %v627_v48 = vadd.f32 %v626_v47, %v3674_v32  ;;  %v732_v51 = vmax.f32 %v623_v44, 0.0 }
 0x230   :  { %v733_v50 = vmax.f32 %v625_v46, 0.0 }
 0x231   :  { %v734_v52 = vmax.f32 %v627_v48, 0.0 }
 0x232   :  { %v779_v53 = vpack.c.bf16 %v733_v50, %v731_v49 }
 0x233   :  { %v780_v54 = vpack.c.bf16 %v734_v52, %v732_v51  ;;  %v630_v55 = vpop.f32.mrb[36].mxu1 }
 0x234   :  { %v631_v56 = vadd.f32 %v630_v55, %v3670_v2  ;;  %v632_v58 = vpop.f32.mrb[37].mxu1 }
 0x235   :  { %v633_v59 = vadd.f32 %v632_v58, %v3674_v32  ;;  %v634_v60 = vpop.f32.mrb[38].mxu1  ;;  %1111 = vmatprep.mubr.bf16.mxu0 %v780_v54 }
 0x236   :  { %v635_v61 = vadd.f32 %v634_v60, %v3670_v2  ;;  %v636_v62 = vpop.f32.mrb[39].mxu1  ;;  %1112 = vmatmul.mubr.bf16.gmra.mrb[64].mxu0 %v779_v53  ;;  %v735_v0 = vmax.f32 %v631_v56, 0.0 }
 0x237   :  { %v637_v63 = vadd.f32 %v636_v62, %v3674_v32  ;;  %v736_v1 = vmax.f32 %v633_v59, 0.0 }
 0x238   :  { %v737_v57 = vmax.f32 %v635_v61, 0.0 }
 0x239   :  { %v738_v4 = vmax.f32 %v637_v63, 0.0 }
 0x23a   :  { %v781_v5 = vpack.c.bf16 %v737_v57, %v735_v0 }
 0x23b   :  { %v782_v6 = vpack.c.bf16 %v738_v4, %v736_v1  ;;  %v640_v7 = vpop.f32.mrb[40].mxu1 }
 0x23c   :  { %v641_v8 = vadd.f32 %v640_v7, %v3670_v2  ;;  %v642_v9 = vpop.f32.mrb[41].mxu1 }
 0x23d   :  { %v643_v10 = vadd.f32 %v642_v9, %v3674_v32  ;;  %v644_v11 = vpop.f32.mrb[42].mxu1  ;;  %1121 = vmatprep.mubr.bf16.mxu0 %v782_v6 }
 0x23e   :  { %v645_v12 = vadd.f32 %v644_v11, %v3670_v2  ;;  %v646_v15 = vpop.f32.mrb[43].mxu1  ;;  %1122 = vmatmul.mubr.bf16.gmra.mrb[68].mxu0 %v781_v5  ;;  %v739_v17 = vmax.f32 %v641_v8, 0.0 }
 0x23f   :  { %v647_v16 = vadd.f32 %v646_v15, %v3674_v32  ;;  %v740_v19 = vmax.f32 %v643_v10, 0.0 }
 0x240   :  { %v741_v18 = vmax.f32 %v645_v12, 0.0 }
 0x241   :  { %v742_v20 = vmax.f32 %v647_v16, 0.0 }
 0x242   :  { %v783_v21 = vpack.c.bf16 %v741_v18, %v739_v17 }
 0x243   :  { %v784_v3 = vpack.c.bf16 %v742_v20, %v740_v19  ;;  %v650_v13 = vpop.f32.mrb[44].mxu1 }
 0x244   :  { %v651_v14 = vadd.f32 %v650_v13, %v3670_v2  ;;  %v652_v22 = vpop.f32.mrb[45].mxu1 }
 0x245   :  { %v653_v23 = vadd.f32 %v652_v22, %v3674_v32  ;;  %v654_v24 = vpop.f32.mrb[46].mxu1  ;;  %1131 = vmatprep.mubr.bf16.mxu0 %v784_v3 }
 0x246   :  { %v655_v28 = vadd.f32 %v654_v24, %v3670_v2  ;;  %v656_v30 = vpop.f32.mrb[47].mxu1  ;;  %1132 = vmatmul.mubr.bf16.gmra.mrb[72].mxu0 %v783_v21  ;;  %v743_v33 = vmax.f32 %v651_v14, 0.0 }
 0x247   :  { %v657_v31 = vadd.f32 %v656_v30, %v3674_v32  ;;  %v744_v35 = vmax.f32 %v653_v23, 0.0 }
 0x248   :  { %v745_v34 = vmax.f32 %v655_v28, 0.0 }
 0x249   :  { %v746_v36 = vmax.f32 %v657_v31, 0.0 }
 0x24a   :  { %v785_v37 = vpack.c.bf16 %v745_v34, %v743_v33 }
 0x24b   :  { %v786_v38 = vpack.c.bf16 %v746_v36, %v744_v35  ;;  %v660_v39 = vpop.f32.mrb[48].mxu1 }
 0x24c   :  { %v661_v40 = vadd.f32 %v660_v39, %v3670_v2  ;;  %v662_v41 = vpop.f32.mrb[49].mxu1 }
 0x24d   :  { %v663_v42 = vadd.f32 %v662_v41, %v3674_v32  ;;  %v664_v43 = vpop.f32.mrb[50].mxu1  ;;  %1141 = vmatprep.mubr.bf16.mxu0 %v786_v38 }
 0x24e   :  { %v665_v44 = vadd.f32 %v664_v43, %v3670_v2  ;;  %v666_v45 = vpop.f32.mrb[51].mxu1  ;;  %1142 = vmatmul.mubr.bf16.gmra.mrb[76].mxu0 %v785_v37  ;;  %v747_v47 = vmax.f32 %v661_v40, 0.0  ;;  %v827_v37 = vld [vmem:[%s4627_s6] sm:$0x3] }
 0x24f   :  { %v667_v46 = vadd.f32 %v666_v45, %v3674_v32  ;;  %v748_v49 = vmax.f32 %v663_v42, 0.0  ;;  %v3745_v38 = vrot.slane %v827_v37, %v418_v27  ;;  %v3000_v45 = vld [vmem:[#allocation6] sm:$0xff]  }
 0x250   :  { %v749_v48 = vmax.f32 %v665_v44, 0.0  ;;  %2855 = vmatprep.subr.bf16.mxu0 %v3000_v45 }
 0x251   :  { %v750_v50 = vmax.f32 %v667_v46, 0.0  ;;  %v3001_v46 = vld [vmem:[#allocation6 + $0x8] sm:$0xff]   ;;  %2856 = vmatpush3.bf16.msra.mxu0 %v3000_v45 }
 0x252   :  { %v787_v51 = vpack.c.bf16 %v749_v48, %v747_v47  ;;  %2857 = vmatprep.subr.bf16.mxu0 %v3001_v46 }
 0x253   :  { %v788_v52 = vpack.c.bf16 %v750_v50, %v748_v49  ;;  %v670_v53 = vpop.f32.mrb[52].mxu1  ;;  %v3002_v50 = vld [vmem:[#allocation6 + $0x10] sm:$0xff]  }
 0x254   :  { %v671_v54 = vadd.f32 %v670_v53, %v3670_v2  ;;  %v672_v55 = vpop.f32.mrb[53].mxu1 }
 0x255   :  { %v673_v56 = vadd.f32 %v672_v55, %v3674_v32  ;;  %v674_v58 = vpop.f32.mrb[54].mxu1  ;;  %1151 = vmatprep.mubr.bf16.mxu0 %v788_v52  ;;  %2858 = vmatpush3.bf16.msra.mxu0 %v3001_v46 }
 0x256   :  { %v675_v59 = vadd.f32 %v674_v58, %v3670_v2  ;;  %v676_v60 = vpop.f32.mrb[55].mxu1  ;;  %1152 = vmatmul.mubr.bf16.gmra.mrb[80].mxu0 %v787_v51  ;;  %v751_v62 = vmax.f32 %v671_v54, 0.0  ;;  %2859 = vmatprep.subr.bf16.mxu0 %v3002_v50 }
 0x257   :  { %v677_v61 = vadd.f32 %v676_v60, %v3674_v32  ;;  %v752_v0 = vmax.f32 %v673_v56, 0.0  ;;  %v3003_v60 = vld [vmem:[#allocation6 + $0x18] sm:$0xff]  }
 0x258   :  { %v753_v63 = vmax.f32 %v675_v59, 0.0 }
 0x259   :  { %v754_v57 = vmax.f32 %v677_v61, 0.0  ;;  %2860 = vmatpush3.bf16.msra.mxu0 %v3002_v50 }
 0x25a   :  { %v789_v1 = vpack.c.bf16 %v753_v63, %v751_v62  ;;  %2861 = vmatprep.subr.bf16.mxu0 %v3003_v60 }
 0x25b   :  { %v790_v4 = vpack.c.bf16 %v754_v57, %v752_v0  ;;  %v680_v5 = vpop.f32.mrb[56].mxu1 }
 0x25c   :  { %v681_v6 = vadd.f32 %v680_v5, %v3670_v2  ;;  %v682_v7 = vpop.f32.mrb[57].mxu1 }
 0x25d   :  { %v683_v8 = vadd.f32 %v682_v7, %v3674_v32  ;;  %v684_v9 = vpop.f32.mrb[58].mxu1  ;;  %1161 = vmatprep.mubr.bf16.mxu0 %v790_v4  ;;  %2862 = vmatpush3.bf16.msra.mxu0 %v3003_v60 }
 0x25e   :  { %v685_v10 = vadd.f32 %v684_v9, %v3670_v2  ;;  %v686_v11 = vpop.f32.mrb[59].mxu1  ;;  %1162 = vmatmul.mubr.bf16.gmra.mrb[84].mxu0 %v789_v1  ;;  %v755_v15 = vmax.f32 %v681_v6, 0.0 }
 0x25f   :  { %v687_v12 = vadd.f32 %v686_v11, %v3674_v32  ;;  %v756_v17 = vmax.f32 %v683_v8, 0.0 }
 0x260   :  { %v757_v16 = vmax.f32 %v685_v10, 0.0 }
 0x261   :  { %v758_v18 = vmax.f32 %v687_v12, 0.0 }
 0x262   :  { %v791_v19 = vpack.c.bf16 %v757_v16, %v755_v15 }
 0x263   :  { %v792_v20 = vpack.c.bf16 %v758_v18, %v756_v17  ;;  %v690_v21 = vpop.f32.mrb[60].mxu1 }
 0x264   :  { %v691_v3 = vadd.f32 %v690_v21, %v3670_v2  ;;  %v692_v13 = vpop.f32.mrb[61].mxu1 }
 0x265   :  { %v693_v14 = vadd.f32 %v692_v13, %v3674_v32  ;;  %v694_v22 = vpop.f32.mrb[62].mxu1  ;;  %1171 = vmatprep.mubr.bf16.mxu0 %v792_v20 }
 0x266   :  { %v695_v23 = vadd.f32 %v694_v22, %v3670_v2  ;;  %v696_v24 = vpop.f32.mrb[63].mxu1  ;;  %1172 = vmatmul.mubr.bf16.gmra.mrb[88].mxu0 %v791_v19  ;;  %v759_v30 = vmax.f32 %v691_v3, 0.0  ;;  %v3749_v2 = vrot.slane %v827_v37, %v422_v29 }
 0x267   :  { %v697_v28 = vadd.f32 %v696_v24, %v3674_v32  ;;  %v760_v33 = vmax.f32 %v693_v14, 0.0 }
 0x268   :  { %v761_v31 = vmax.f32 %v695_v23, 0.0 }
 0x269   :  { %v762_v34 = vmax.f32 %v697_v28, 0.0 }
 0x26a   :  { %v793_v35 = vpack.c.bf16 %v761_v31, %v759_v30 }
 0x26b   :  { %v794_v36 = vpack.c.bf16 %v762_v34, %v760_v33 }
 0x26d   :  { %1181 = vmatprep.mubr.bf16.mxu0 %v794_v36 }
 0x26e   :  { %1182 = vmatmul.mubr.bf16.gmra.mrb[92].mxu0 %v793_v35 }
 0x2c9   :  { %v1033_v32 = vpop.f32.mrb[32].mxu0 }
 0x2ca   :  { %v1034_v39 = vadd.f32 %v1033_v32, %v3745_v38  ;;  %v1035_v40 = vpop.f32.mrb[33].mxu0 }
 0x2cb   :  { %v1036_v41 = vadd.f32 %v1035_v40, %v3749_v2  ;;  %v1037_v42 = vpop.f32.mrb[34].mxu0 }
 0x2cc   :  { %v1038_v43 = vadd.f32 %v1037_v42, %v3745_v38  ;;  %v1039_v44 = vpop.f32.mrb[35].mxu0  ;;  %v1192_v27 = vmax.f32 %v1034_v39, 0.0 }
 0x2cd   :  { %v1040_v47 = vadd.f32 %v1039_v44, %v3749_v2  ;;  %v1193_v26 = vmax.f32 %v1036_v41, 0.0 }
 0x2ce   :  { %v1194_v48 = vmax.f32 %v1038_v43, 0.0 }
 0x2cf   :  { %v1195_v29 = vmax.f32 %v1040_v47, 0.0 }
 0x2d0   :  { %v1256_v49 = vpack.c.bf16 %v1194_v48, %v1192_v27 }
 0x2d1   :  { %v1257_v51 = vpack.c.bf16 %v1195_v29, %v1193_v26  ;;  %v1043_v52 = vpop.f32.mrb[36].mxu0 }
 0x2d2   :  { %v1044_v53 = vadd.f32 %v1043_v52, %v3745_v38  ;;  %v1045_v54 = vpop.f32.mrb[37].mxu0 }
 0x2d3   :  { %v1046_v55 = vadd.f32 %v1045_v54, %v3749_v2  ;;  %v1047_v56 = vpop.f32.mrb[38].mxu0  ;;  %1455 = vmatprep.mubr.bf16.mxu1 %v1257_v51 }
 0x2d4   :  { %v1048_v58 = vadd.f32 %v1047_v56, %v3745_v38  ;;  %v1049_v59 = vpop.f32.mrb[39].mxu0  ;;  %1456 = vmatmul.mubr.bf16.vlgmr.msra.gmra.mrb[64].mxu1 %v1256_v49  ;;  %v1196_v62 = vmax.f32 %v1044_v53, 0.0 }
 0x2d5   :  { %v1050_v61 = vadd.f32 %v1049_v59, %v3749_v2  ;;  %v1197_v0 = vmax.f32 %v1046_v55, 0.0 }
 0x2d6   :  { %v1198_v63 = vmax.f32 %v1048_v58, 0.0 }
 0x2d7   :  { %v1199_v57 = vmax.f32 %v1050_v61, 0.0 }
 0x2d8   :  { %v1258_v1 = vpack.c.bf16 %v1198_v63, %v1196_v62 }
 0x2d9   :  { %v1259_v4 = vpack.c.bf16 %v1199_v57, %v1197_v0  ;;  %v1053_v5 = vpop.f32.mrb[40].mxu0 }
 0x2da   :  { %v1054_v6 = vadd.f32 %v1053_v5, %v3745_v38  ;;  %v1055_v7 = vpop.f32.mrb[41].mxu0 }
 0x2db   :  { %v1056_v8 = vadd.f32 %v1055_v7, %v3749_v2  ;;  %v1057_v9 = vpop.f32.mrb[42].mxu0  ;;  %1463 = vmatprep.mubr.bf16.mxu1 %v1259_v4 }
 0x2dc   :  { %v1058_v10 = vadd.f32 %v1057_v9, %v3745_v38  ;;  %v1059_v11 = vpop.f32.mrb[43].mxu0  ;;  %1464 = vmatmul.mubr.bf16.gmra.mrb[68].mxu1 %v1258_v1  ;;  %v1200_v15 = vmax.f32 %v1054_v6, 0.0 }
 0x2dd   :  { %v1060_v12 = vadd.f32 %v1059_v11, %v3749_v2  ;;  %v1201_v17 = vmax.f32 %v1056_v8, 0.0 }
 0x2de   :  { %v1202_v16 = vmax.f32 %v1058_v10, 0.0 }
 0x2df   :  { %v1203_v18 = vmax.f32 %v1060_v12, 0.0 }
 0x2e0   :  { %v1260_v19 = vpack.c.bf16 %v1202_v16, %v1200_v15 }
 0x2e1   :  { %v1261_v20 = vpack.c.bf16 %v1203_v18, %v1201_v17  ;;  %v1063_v21 = vpop.f32.mrb[44].mxu0 }
 0x2e2   :  { %v1064_v3 = vadd.f32 %v1063_v21, %v3745_v38  ;;  %v1065_v13 = vpop.f32.mrb[45].mxu0 }
 0x2e3   :  { %v1066_v14 = vadd.f32 %v1065_v13, %v3749_v2  ;;  %v1067_v22 = vpop.f32.mrb[46].mxu0  ;;  %1471 = vmatprep.mubr.bf16.mxu1 %v1261_v20 }
 0x2e4   :  { %v1068_v23 = vadd.f32 %v1067_v22, %v3745_v38  ;;  %v1069_v24 = vpop.f32.mrb[47].mxu0  ;;  %1472 = vmatmul.mubr.bf16.gmra.mrb[72].mxu1 %v1260_v19  ;;  %v1204_v30 = vmax.f32 %v1064_v3, 0.0 }
 0x2e5   :  { %v1070_v28 = vadd.f32 %v1069_v24, %v3749_v2  ;;  %v1205_v33 = vmax.f32 %v1066_v14, 0.0 }
 0x2e6   :  { %v1206_v31 = vmax.f32 %v1068_v23, 0.0 }
 0x2e7   :  { %v1207_v34 = vmax.f32 %v1070_v28, 0.0 }
 0x2e8   :  { %v1262_v35 = vpack.c.bf16 %v1206_v31, %v1204_v30 }
 0x2e9   :  { %v1263_v36 = vpack.c.bf16 %v1207_v34, %v1205_v33  ;;  %v1073_v37 = vpop.f32.mrb[48].mxu0 }
 0x2ea   :  { %v1074_v32 = vadd.f32 %v1073_v37, %v3745_v38  ;;  %v1075_v39 = vpop.f32.mrb[49].mxu0 }
 0x2eb   :  { %v1076_v40 = vadd.f32 %v1075_v39, %v3749_v2  ;;  %v1077_v41 = vpop.f32.mrb[50].mxu0  ;;  %1479 = vmatprep.mubr.bf16.mxu1 %v1263_v36 }
 0x2ec   :  { %v1078_v42 = vadd.f32 %v1077_v41, %v3745_v38  ;;  %v1079_v43 = vpop.f32.mrb[51].mxu0  ;;  %1480 = vmatmul.mubr.bf16.gmra.mrb[76].mxu1 %v1262_v35  ;;  %v1208_v45 = vmax.f32 %v1074_v32, 0.0 }
 0x2ed   :  { %v1080_v44 = vadd.f32 %v1079_v43, %v3749_v2  ;;  %v1209_v47 = vmax.f32 %v1076_v40, 0.0 }
 0x2ee   :  { %v1210_v46 = vmax.f32 %v1078_v42, 0.0 }
 0x2ef   :  { %v1211_v27 = vmax.f32 %v1080_v44, 0.0 }
 0x2f0   :  { %v1264_v48 = vpack.c.bf16 %v1210_v46, %v1208_v45 }
 0x2f1   :  { %v1265_v26 = vpack.c.bf16 %v1211_v27, %v1209_v47  ;;  %v1083_v29 = vpop.f32.mrb[52].mxu0 }
 0x2f2   :  { %v1084_v49 = vadd.f32 %v1083_v29, %v3745_v38  ;;  %v1085_v50 = vpop.f32.mrb[53].mxu0 }
 0x2f3   :  { %v1086_v51 = vadd.f32 %v1085_v50, %v3749_v2  ;;  %v1087_v52 = vpop.f32.mrb[54].mxu0  ;;  %1487 = vmatprep.mubr.bf16.mxu1 %v1265_v26 }
 0x2f4   :  { %v1088_v53 = vadd.f32 %v1087_v52, %v3745_v38  ;;  %v1089_v54 = vpop.f32.mrb[55].mxu0  ;;  %1488 = vmatmul.mubr.bf16.gmra.mrb[80].mxu1 %v1264_v48  ;;  %v1212_v56 = vmax.f32 %v1084_v49, 0.0 }
 0x2f5   :  { %v1090_v55 = vadd.f32 %v1089_v54, %v3749_v2  ;;  %v1213_v59 = vmax.f32 %v1086_v51, 0.0 }
 0x2f6   :  { %v1214_v58 = vmax.f32 %v1088_v53, 0.0 }
 0x2f7   :  { %v1215_v60 = vmax.f32 %v1090_v55, 0.0 }
 0x2f8   :  { %v1266_v61 = vpack.c.bf16 %v1214_v58, %v1212_v56 }
 0x2f9   :  { %v1267_v62 = vpack.c.bf16 %v1215_v60, %v1213_v59  ;;  %v1093_v63 = vpop.f32.mrb[56].mxu0 }
 0x2fa   :  { %v1094_v0 = vadd.f32 %v1093_v63, %v3745_v38  ;;  %v1095_v57 = vpop.f32.mrb[57].mxu0 }
 0x2fb   :  { %v1096_v1 = vadd.f32 %v1095_v57, %v3749_v2  ;;  %v1097_v4 = vpop.f32.mrb[58].mxu0  ;;  %1495 = vmatprep.mubr.bf16.mxu1 %v1267_v62 }
 0x2fc   :  { %v1098_v5 = vadd.f32 %v1097_v4, %v3745_v38  ;;  %v1099_v6 = vpop.f32.mrb[59].mxu0  ;;  %1496 = vmatmul.mubr.bf16.gmra.mrb[84].mxu1 %v1266_v61  ;;  %v1216_v8 = vmax.f32 %v1094_v0, 0.0 }
 0x2fd   :  { %v1100_v7 = vadd.f32 %v1099_v6, %v3749_v2  ;;  %v1217_v10 = vmax.f32 %v1096_v1, 0.0 }
 0x2fe   :  { %v1218_v9 = vmax.f32 %v1098_v5, 0.0 }
 0x2ff   :  { %v1219_v11 = vmax.f32 %v1100_v7, 0.0 }
 0x300   :  { %v1268_v12 = vpack.c.bf16 %v1218_v9, %v1216_v8 }
 0x301   :  { %v1269_v15 = vpack.c.bf16 %v1219_v11, %v1217_v10  ;;  %v1103_v16 = vpop.f32.mrb[60].mxu0 }
 0x302   :  { %v1104_v17 = vadd.f32 %v1103_v16, %v3745_v38  ;;  %v1105_v18 = vpop.f32.mrb[61].mxu0 }
 0x303   :  { %v1106_v19 = vadd.f32 %v1105_v18, %v3749_v2  ;;  %v1107_v20 = vpop.f32.mrb[62].mxu0  ;;  %1503 = vmatprep.mubr.bf16.mxu1 %v1269_v15 }
 0x304   :  { %v1108_v21 = vadd.f32 %v1107_v20, %v3745_v38  ;;  %v1109_v3 = vpop.f32.mrb[63].mxu0  ;;  %1504 = vmatmul.mubr.bf16.gmra.mrb[88].mxu1 %v1268_v12  ;;  %v1220_v14 = vmax.f32 %v1104_v17, 0.0 }
 0x305   :  { %v1110_v13 = vadd.f32 %v1109_v3, %v3749_v2  ;;  %v1221_v23 = vmax.f32 %v1106_v19, 0.0 }
 0x306   :  { %v1222_v22 = vmax.f32 %v1108_v21, 0.0 }
 0x307   :  { %v1223_v24 = vmax.f32 %v1110_v13, 0.0 }
 0x308   :  { %v1270_v28 = vpack.c.bf16 %v1222_v22, %v1220_v14 }
 0x309   :  { %v1271_v30 = vpack.c.bf16 %v1223_v24, %v1221_v23  ;;  %v1113_v31 = vpop.f32.mrb[64].mxu0  ;;  %v3004_v23 = vld [vmem:[#allocation6 + $0x20] sm:$0xff]  }
 0x30a   :  { %v1114_v33 = vadd.f32 %v1113_v31, %v3745_v38  ;;  %v1115_v34 = vpop.f32.mrb[65].mxu0  ;;  %2863 = vmatprep.subr.bf16.mxu0 %v3004_v23 }
 0x30b   :  { %v1116_v35 = vadd.f32 %v1115_v34, %v3749_v2  ;;  %v1117_v36 = vpop.f32.mrb[66].mxu0  ;;  %1511 = vmatprep.mubr.bf16.mxu1 %v1271_v30  ;;  %2864 = vmatpush3.bf16.msra.mxu0 %v3004_v23 }
 0x30c   :  { %v1118_v37 = vadd.f32 %v1117_v36, %v3745_v38  ;;  %v1119_v32 = vpop.f32.mrb[67].mxu0  ;;  %1512 = vmatmul.mubr.bf16.gmra.mrb[92].mxu1 %v1270_v28  ;;  %v1224_v40 = vmax.f32 %v1114_v33, 0.0  ;;  %v3005_v36 = vld [vmem:[#allocation6 + $0x28] sm:$0xff]  }
 0x30d   :  { %v1120_v39 = vadd.f32 %v1119_v32, %v3749_v2  ;;  %v1225_v42 = vmax.f32 %v1116_v35, 0.0  ;;  %2865 = vmatprep.subr.bf16.mxu0 %v3005_v36 }
 0x30e   :  { %v1226_v41 = vmax.f32 %v1118_v37, 0.0 }
 0x30f   :  { %v1227_v43 = vmax.f32 %v1120_v39, 0.0  ;;  %2866 = vmatpush3.bf16.msra.mxu0 %v3005_v36 }
 0x310   :  { %v1272_v44 = vpack.c.bf16 %v1226_v41, %v1224_v40 }
 0x311   :  { %v1273_v45 = vpack.c.bf16 %v1227_v43, %v1225_v42  ;;  %v1123_v46 = vpop.f32.mrb[68].mxu0 }
 0x312   :  { %v1124_v47 = vadd.f32 %v1123_v46, %v3745_v38  ;;  %v1125_v27 = vpop.f32.mrb[69].mxu0 }
 0x313   :  { %v1126_v48 = vadd.f32 %v1125_v27, %v3749_v2  ;;  %v1127_v26 = vpop.f32.mrb[70].mxu0  ;;  %1519 = vmatprep.mubr.bf16.mxu1 %v1273_v45 }
 0x314   :  { %v1128_v29 = vadd.f32 %v1127_v26, %v3745_v38  ;;  %v1129_v49 = vpop.f32.mrb[71].mxu0  ;;  %1520 = vmatmul.mubr.bf16.gmra.mrb[96].mxu1 %v1272_v44  ;;  %v1228_v51 = vmax.f32 %v1124_v47, 0.0  ;;  %v3006_v44 = vld [vmem:[#allocation6 + $0x30] sm:$0xff]  }
 0x315   :  { %v1130_v50 = vadd.f32 %v1129_v49, %v3749_v2  ;;  %v1229_v53 = vmax.f32 %v1126_v48, 0.0  ;;  %2867 = vmatprep.subr.bf16.mxu0 %v3006_v44  ;;  %v3007_v49 = vld [vmem:[#allocation6 + $0x38] sm:$0xff]  }
 0x316   :  { %v1230_v52 = vmax.f32 %v1128_v29, 0.0  ;;  %2868 = vmatpush3.bf16.msra.mxu0 %v3006_v44 }
 0x317   :  { %v1231_v54 = vmax.f32 %v1130_v50, 0.0  ;;  %2869 = vmatprep.subr.bf16.mxu0 %v3007_v49 }
 0x318   :  { %v1274_v55 = vpack.c.bf16 %v1230_v52, %v1228_v51 }
 0x319   :  { %v1275_v56 = vpack.c.bf16 %v1231_v54, %v1229_v53  ;;  %v1133_v58 = vpop.f32.mrb[72].mxu0 }
 0x31a   :  { %v1134_v59 = vadd.f32 %v1133_v58, %v3745_v38  ;;  %v1135_v60 = vpop.f32.mrb[73].mxu0  ;;  %2870 = vmatpush3.bf16.msra.mxu0 %v3007_v49 }
 0x31b   :  { %v1136_v61 = vadd.f32 %v1135_v60, %v3749_v2  ;;  %v1137_v62 = vpop.f32.mrb[74].mxu0  ;;  %1527 = vmatprep.mubr.bf16.mxu1 %v1275_v56 }
 0x31c   :  { %v1138_v63 = vadd.f32 %v1137_v62, %v3745_v38  ;;  %v1139_v0 = vpop.f32.mrb[75].mxu0  ;;  %1528 = vmatmul.mubr.bf16.gmra.mrb[100].mxu1 %v1274_v55  ;;  %v1232_v1 = vmax.f32 %v1134_v59, 0.0 }
 0x31d   :  { %v1140_v57 = vadd.f32 %v1139_v0, %v3749_v2  ;;  %v1233_v5 = vmax.f32 %v1136_v61, 0.0 }
 0x31e   :  { %v1234_v4 = vmax.f32 %v1138_v63, 0.0 }
 0x31f   :  { %v1235_v6 = vmax.f32 %v1140_v57, 0.0 }
 0x320   :  { %v1276_v7 = vpack.c.bf16 %v1234_v4, %v1232_v1 }
 0x321   :  { %v1277_v8 = vpack.c.bf16 %v1235_v6, %v1233_v5  ;;  %v1143_v9 = vpop.f32.mrb[76].mxu0 }
 0x322   :  { %v1144_v10 = vadd.f32 %v1143_v9, %v3745_v38  ;;  %v1145_v11 = vpop.f32.mrb[77].mxu0 }
 0x323   :  { %v1146_v12 = vadd.f32 %v1145_v11, %v3749_v2  ;;  %v1147_v15 = vpop.f32.mrb[78].mxu0  ;;  %1535 = vmatprep.mubr.bf16.mxu1 %v1277_v8 }
 0x324   :  { %v1148_v16 = vadd.f32 %v1147_v15, %v3745_v38  ;;  %v1149_v17 = vpop.f32.mrb[79].mxu0  ;;  %1536 = vmatmul.mubr.bf16.gmra.mrb[104].mxu1 %v1276_v7  ;;  %v1236_v19 = vmax.f32 %v1144_v10, 0.0 }
 0x325   :  { %v1150_v18 = vadd.f32 %v1149_v17, %v3749_v2  ;;  %v1237_v21 = vmax.f32 %v1146_v12, 0.0 }
 0x326   :  { %v1238_v20 = vmax.f32 %v1148_v16, 0.0 }
 0x327   :  { %v1239_v3 = vmax.f32 %v1150_v18, 0.0 }
 0x328   :  { %v1278_v13 = vpack.c.bf16 %v1238_v20, %v1236_v19 }
 0x329   :  { %v1279_v14 = vpack.c.bf16 %v1239_v3, %v1237_v21  ;;  %v1153_v22 = vpop.f32.mrb[80].mxu0 }
 0x32a   :  { %v1154_v24 = vadd.f32 %v1153_v22, %v3745_v38  ;;  %v1155_v28 = vpop.f32.mrb[81].mxu0  ;;  %v3818_v22 = vld [vmem:[%s4629_s8] ss:$0 sm:$0xff] }
 0x32b   :  { %v1156_v30 = vadd.f32 %v1155_v28, %v3749_v2  ;;  %v1157_v31 = vpop.f32.mrb[82].mxu0  ;;  %1543 = vmatprep.mubr.bf16.mxu1 %v1279_v14 }
 0x32c   :  { %v1158_v33 = vadd.f32 %v1157_v31, %v3745_v38  ;;  %v1159_v34 = vpop.f32.mrb[83].mxu0  ;;  %1544 = vmatmul.mubr.bf16.gmra.mrb[108].mxu1 %v1278_v13  ;;  %v1240_v37 = vmax.f32 %v1154_v24, 0.0 }
 0x32d   :  { %v1160_v35 = vadd.f32 %v1159_v34, %v3749_v2  ;;  %v1241_v39 = vmax.f32 %v1156_v30, 0.0 }
 0x32e   :  { %v1242_v32 = vmax.f32 %v1158_v33, 0.0 }
 0x32f   :  { %v1243_v40 = vmax.f32 %v1160_v35, 0.0 }
 0x330   :  { %v1280_v41 = vpack.c.bf16 %v1242_v32, %v1240_v37 }
 0x331   :  { %v1281_v42 = vpack.c.bf16 %v1243_v40, %v1241_v39  ;;  %v1163_v43 = vpop.f32.mrb[84].mxu0 }
 0x332   :  { %v1164_v45 = vadd.f32 %v1163_v43, %v3745_v38  ;;  %v1165_v46 = vpop.f32.mrb[85].mxu0 }
 0x333   :  { %v1166_v47 = vadd.f32 %v1165_v46, %v3749_v2  ;;  %v1167_v27 = vpop.f32.mrb[86].mxu0  ;;  %1551 = vmatprep.mubr.bf16.mxu1 %v1281_v42 }
 0x334   :  { %v1168_v48 = vadd.f32 %v1167_v27, %v3745_v38  ;;  %v1169_v26 = vpop.f32.mrb[87].mxu0  ;;  %1552 = vmatmul.mubr.bf16.gmra.mrb[112].mxu1 %v1280_v41  ;;  %v1244_v50 = vmax.f32 %v1164_v45, 0.0 }
 0x335   :  { %v1170_v29 = vadd.f32 %v1169_v26, %v3749_v2  ;;  %v1245_v52 = vmax.f32 %v1166_v47, 0.0 }
 0x336   :  { %v1246_v51 = vmax.f32 %v1168_v48, 0.0 }
 0x337   :  { %v1247_v53 = vmax.f32 %v1170_v29, 0.0 }
 0x338   :  { %v1282_v54 = vpack.c.bf16 %v1246_v51, %v1244_v50 }
 0x339   :  { %v1283_v55 = vpack.c.bf16 %v1247_v53, %v1245_v52  ;;  %v1173_v56 = vpop.f32.mrb[88].mxu0 }
 0x33a   :  { %v1174_v58 = vadd.f32 %v1173_v56, %v3745_v38  ;;  %v1175_v59 = vpop.f32.mrb[89].mxu0 }
 0x33b   :  { %v1176_v60 = vadd.f32 %v1175_v59, %v3749_v2  ;;  %v1177_v61 = vpop.f32.mrb[90].mxu0  ;;  %1559 = vmatprep.mubr.bf16.mxu1 %v1283_v55 }
 0x33c   :  { %v1178_v62 = vadd.f32 %v1177_v61, %v3745_v38  ;;  %v1179_v63 = vpop.f32.mrb[91].mxu0  ;;  %1560 = vmatmul.mubr.bf16.gmra.mrb[116].mxu1 %v1282_v54  ;;  %v1248_v57 = vmax.f32 %v1174_v58, 0.0 }
 0x33d   :  { %v1180_v0 = vadd.f32 %v1179_v63, %v3749_v2  ;;  %v1249_v4 = vmax.f32 %v1176_v60, 0.0 }
 0x33e   :  { %v1250_v1 = vmax.f32 %v1178_v62, 0.0 }
 0x33f   :  { %v1251_v5 = vmax.f32 %v1180_v0, 0.0 }
 0x340   :  { %v1284_v6 = vpack.c.bf16 %v1250_v1, %v1248_v57 }
 0x341   :  { %v1285_v7 = vpack.c.bf16 %v1251_v5, %v1249_v4  ;;  %v1183_v8 = vpop.f32.mrb[92].mxu0 }
 0x342   :  { %v1184_v9 = vadd.f32 %v1183_v8, %v3745_v38  ;;  %v1185_v10 = vpop.f32.mrb[93].mxu0 }
 0x343   :  { %v1186_v11 = vadd.f32 %v1185_v10, %v3749_v2  ;;  %v1187_v12 = vpop.f32.mrb[94].mxu0  ;;  %1567 = vmatprep.mubr.bf16.mxu1 %v1285_v7 }
 0x344   :  { %v1188_v15 = vadd.f32 %v1187_v12, %v3745_v38  ;;  %v1189_v16 = vpop.f32.mrb[95].mxu0  ;;  %1568 = vmatmul.mubr.bf16.gmra.mrb[120].mxu1 %v1284_v6  ;;  %v1252_v18 = vmax.f32 %v1184_v9, 0.0 }
 0x345   :  { %v1190_v17 = vadd.f32 %v1189_v16, %v3749_v2  ;;  %v1253_v20 = vmax.f32 %v1186_v11, 0.0 }
 0x346   :  { %v1254_v19 = vmax.f32 %v1188_v15, 0.0 }
 0x347   :  { %v1255_v21 = vmax.f32 %v1190_v17, 0.0 }
 0x348   :  { %v1286_v3 = vpack.c.bf16 %v1254_v19, %v1252_v18 }
 0x349   :  { %v1287_v13 = vpack.c.bf16 %v1255_v21, %v1253_v20 }
 0x34b   :  { %1575 = vmatprep.mubr.bf16.mxu1 %v1287_v13 }
 0x34c   :  { %1576 = vmatmul.mubr.bf16.gmra.mrb[124].mxu1 %v1286_v3 }
 0x3a7   :  { %v2701_v14 = vpop.f32.mrb[64].mxu1 }
 0x3a8   :  { %v2702_v23 = vpop.f32.mrb[65].mxu1 }
 0x3a9   :  { %v2703_v38 = vadd.f32 %v2702_v23, %v2701_v14  ;;  %v2704_v24 = vpop.f32.mrb[66].mxu1 }
 0x3aa   :  { %v2705_v28 = vpop.f32.mrb[67].mxu1 }
 0x3ab   :  { %v1458_v2 = vadd.f32 %v2703_v38, %v3818_v22  ;;  %v2706_v30 = vadd.f32 %v2705_v28, %v2704_v24 }
 0x3ad   :  { %v1461_v31 = vadd.f32 %v2706_v30, %v3818_v22  ;;  %v1584_v33 = vmax.f32 %v1458_v2, 0.0 }
 0x3af   :  { %v1585_v34 = vmax.f32 %v1461_v31, 0.0  ;;  %v2707_v35 = vpop.f32.mrb[68].mxu1 }
 0x3b0   :  { %v2708_v36 = vpop.f32.mrb[69].mxu1 }
 0x3b1   :  { %v2709_v37 = vadd.f32 %v2708_v36, %v2707_v35  ;;  %v2710_v32 = vpop.f32.mrb[70].mxu1  ;;  %v1616_v39 = vpack.c.bf16 %v1585_v34, %v1584_v33 }
 0x3b2   :  { %v2711_v40 = vpop.f32.mrb[71].mxu1 }
 0x3b3   :  { %v1466_v41 = vadd.f32 %v2709_v37, %v3818_v22  ;;  %v2712_v42 = vadd.f32 %v2711_v40, %v2710_v32  ;;  %2871 = vmatprep.mubr.bf16.mxu0 %v1616_v39 }
 0x3b5   :  { %v1469_v43 = vadd.f32 %v2712_v42, %v3818_v22  ;;  %v1586_v44 = vmax.f32 %v1466_v41, 0.0 }
 0x3b7   :  { %v1587_v45 = vmax.f32 %v1469_v43, 0.0  ;;  %v2713_v46 = vpop.f32.mrb[72].mxu1 }
 0x3b8   :  { %v2714_v47 = vpop.f32.mrb[73].mxu1 }
 0x3b9   :  { %v1617_v27 = vpack.c.bf16 %v1587_v45, %v1586_v44  ;;  %v2715_v48 = vadd.f32 %v2714_v47, %v2713_v46  ;;  %v2716_v26 = vpop.f32.mrb[74].mxu1 }
 0x3ba   :  { %v2717_v29 = vpop.f32.mrb[75].mxu1 }
 0x3bb   :  { %v1474_v49 = vadd.f32 %v2715_v48, %v3818_v22  ;;  %v2718_v50 = vadd.f32 %v2717_v29, %v2716_v26  ;;  %2872 = vmatmul.mubr.bf16.vlgmr.msra.gmra.mrb[96].mxu0 %v1617_v27 }
 0x3bd   :  { %v1477_v51 = vadd.f32 %v2718_v50, %v3818_v22  ;;  %v1588_v52 = vmax.f32 %v1474_v49, 0.0 }
 0x3bf   :  { %v1589_v53 = vmax.f32 %v1477_v51, 0.0  ;;  %v2719_v54 = vpop.f32.mrb[76].mxu1 }
 0x3c0   :  { %v2720_v55 = vpop.f32.mrb[77].mxu1 }
 0x3c1   :  { %v2721_v56 = vadd.f32 %v2720_v55, %v2719_v54  ;;  %v2722_v58 = vpop.f32.mrb[78].mxu1  ;;  %v1618_v59 = vpack.c.bf16 %v1589_v53, %v1588_v52 }
 0x3c2   :  { %v2723_v60 = vpop.f32.mrb[79].mxu1 }
 0x3c3   :  { %v1482_v61 = vadd.f32 %v2721_v56, %v3818_v22  ;;  %v2724_v62 = vadd.f32 %v2723_v60, %v2722_v58  ;;  %2875 = vmatprep.mubr.bf16.mxu0 %v1618_v59 }
 0x3c5   :  { %v1485_v63 = vadd.f32 %v2724_v62, %v3818_v22  ;;  %v1590_v0 = vmax.f32 %v1482_v61, 0.0 }
 0x3c7   :  { %v1591_v57 = vmax.f32 %v1485_v63, 0.0  ;;  %v2725_v1 = vpop.f32.mrb[80].mxu1 }
 0x3c8   :  { %v2726_v4 = vpop.f32.mrb[81].mxu1 }
 0x3c9   :  { %v2727_v5 = vadd.f32 %v2726_v4, %v2725_v1  ;;  %v2728_v6 = vpop.f32.mrb[82].mxu1  ;;  %v1619_v7 = vpack.c.bf16 %v1591_v57, %v1590_v0 }
 0x3ca   :  { %v2729_v8 = vpop.f32.mrb[83].mxu1 }
 0x3cb   :  { %v1490_v9 = vadd.f32 %v2727_v5, %v3818_v22  ;;  %v2730_v10 = vadd.f32 %v2729_v8, %v2728_v6  ;;  %2876 = vmatmul.mubr.bf16.gmra.mrb[100].mxu0 %v1619_v7 }
 0x3cd   :  { %v1493_v11 = vadd.f32 %v2730_v10, %v3818_v22  ;;  %v1592_v12 = vmax.f32 %v1490_v9, 0.0 }
 0x3cf   :  { %v1593_v15 = vmax.f32 %v1493_v11, 0.0  ;;  %v2731_v16 = vpop.f32.mrb[84].mxu1 }
 0x3d0   :  { %v2732_v17 = vpop.f32.mrb[85].mxu1 }
 0x3d1   :  { %v2733_v18 = vadd.f32 %v2732_v17, %v2731_v16  ;;  %v2734_v19 = vpop.f32.mrb[86].mxu1  ;;  %v1620_v20 = vpack.c.bf16 %v1593_v15, %v1592_v12 }
 0x3d2   :  { %v2735_v21 = vpop.f32.mrb[87].mxu1 }
 0x3d3   :  { %v1498_v3 = vadd.f32 %v2733_v18, %v3818_v22  ;;  %v2736_v13 = vadd.f32 %v2735_v21, %v2734_v19  ;;  %2879 = vmatprep.mubr.bf16.mxu0 %v1620_v20 }
 0x3d5   :  { %v1501_v14 = vadd.f32 %v2736_v13, %v3818_v22  ;;  %v1594_v23 = vmax.f32 %v1498_v3, 0.0 }
 0x3d7   :  { %v1595_v38 = vmax.f32 %v1501_v14, 0.0  ;;  %v2737_v24 = vpop.f32.mrb[88].mxu1 }
 0x3d8   :  { %v2738_v28 = vpop.f32.mrb[89].mxu1 }
 0x3d9   :  { %v2739_v2 = vadd.f32 %v2738_v28, %v2737_v24  ;;  %v2740_v30 = vpop.f32.mrb[90].mxu1  ;;  %v1621_v31 = vpack.c.bf16 %v1595_v38, %v1594_v23 }
 0x3da   :  { %v2741_v33 = vpop.f32.mrb[91].mxu1 }
 0x3db   :  { %v1506_v34 = vadd.f32 %v2739_v2, %v3818_v22  ;;  %v2742_v35 = vadd.f32 %v2741_v33, %v2740_v30  ;;  %2880 = vmatmul.mubr.bf16.gmra.mrb[104].mxu0 %v1621_v31 }
 0x3dd   :  { %v1509_v36 = vadd.f32 %v2742_v35, %v3818_v22  ;;  %v1596_v37 = vmax.f32 %v1506_v34, 0.0 }
 0x3df   :  { %v1597_v32 = vmax.f32 %v1509_v36, 0.0  ;;  %v2743_v39 = vpop.f32.mrb[92].mxu1 }
 0x3e0   :  { %v2744_v40 = vpop.f32.mrb[93].mxu1 }
 0x3e1   :  { %v2745_v41 = vadd.f32 %v2744_v40, %v2743_v39  ;;  %v2746_v42 = vpop.f32.mrb[94].mxu1  ;;  %v1622_v43 = vpack.c.bf16 %v1597_v32, %v1596_v37 }
 0x3e2   :  { %v2747_v44 = vpop.f32.mrb[95].mxu1 }
 0x3e3   :  { %v1514_v45 = vadd.f32 %v2745_v41, %v3818_v22  ;;  %v2748_v46 = vadd.f32 %v2747_v44, %v2746_v42  ;;  %2883 = vmatprep.mubr.bf16.mxu0 %v1622_v43 }
 0x3e5   :  { %v1517_v47 = vadd.f32 %v2748_v46, %v3818_v22  ;;  %v1598_v27 = vmax.f32 %v1514_v45, 0.0 }
 0x3e7   :  { %v1599_v48 = vmax.f32 %v1517_v47, 0.0  ;;  %v2749_v26 = vpop.f32.mrb[96].mxu1 }
 0x3e8   :  { %v2750_v29 = vpop.f32.mrb[97].mxu1 }
 0x3e9   :  { %v2751_v49 = vadd.f32 %v2750_v29, %v2749_v26  ;;  %v2752_v50 = vpop.f32.mrb[98].mxu1  ;;  %v1623_v51 = vpack.c.bf16 %v1599_v48, %v1598_v27 }
 0x3ea   :  { %v2753_v52 = vpop.f32.mrb[99].mxu1 }
 0x3eb   :  { %v1522_v53 = vadd.f32 %v2751_v49, %v3818_v22  ;;  %v2754_v54 = vadd.f32 %v2753_v52, %v2752_v50  ;;  %2884 = vmatmul.mubr.bf16.gmra.mrb[108].mxu0 %v1623_v51 }
 0x3ed   :  { %v1525_v55 = vadd.f32 %v2754_v54, %v3818_v22  ;;  %v1600_v56 = vmax.f32 %v1522_v53, 0.0 }
 0x3ef   :  { %v1601_v58 = vmax.f32 %v1525_v55, 0.0  ;;  %v2755_v59 = vpop.f32.mrb[100].mxu1 }
 0x3f0   :  { %v2756_v60 = vpop.f32.mrb[101].mxu1 }
 0x3f1   :  { %v2757_v61 = vadd.f32 %v2756_v60, %v2755_v59  ;;  %v2758_v62 = vpop.f32.mrb[102].mxu1  ;;  %v1624_v63 = vpack.c.bf16 %v1601_v58, %v1600_v56 }
 0x3f2   :  { %v2759_v0 = vpop.f32.mrb[103].mxu1 }
 0x3f3   :  { %v1530_v57 = vadd.f32 %v2757_v61, %v3818_v22  ;;  %v2760_v1 = vadd.f32 %v2759_v0, %v2758_v62  ;;  %2887 = vmatprep.mubr.bf16.mxu0 %v1624_v63 }
 0x3f5   :  { %v1533_v4 = vadd.f32 %v2760_v1, %v3818_v22  ;;  %v1602_v5 = vmax.f32 %v1530_v57, 0.0 }
 0x3f7   :  { %v1603_v6 = vmax.f32 %v1533_v4, 0.0  ;;  %v2761_v7 = vpop.f32.mrb[104].mxu1 }
 0x3f8   :  { %v2762_v8 = vpop.f32.mrb[105].mxu1 }
 0x3f9   :  { %v2763_v9 = vadd.f32 %v2762_v8, %v2761_v7  ;;  %v2764_v10 = vpop.f32.mrb[106].mxu1  ;;  %v1625_v11 = vpack.c.bf16 %v1603_v6, %v1602_v5 }
 0x3fa   :  { %v2765_v12 = vpop.f32.mrb[107].mxu1 }
 0x3fb   :  { %v1538_v15 = vadd.f32 %v2763_v9, %v3818_v22  ;;  %v2766_v16 = vadd.f32 %v2765_v12, %v2764_v10  ;;  %2888 = vmatmul.mubr.bf16.gmra.mrb[112].mxu0 %v1625_v11  ;;  %v3855_v12 = vld [vmem:[%s4631_s10] ss:$0 sm:$0xff] }
 0x3fd   :  { %v1541_v17 = vadd.f32 %v2766_v16, %v3818_v22  ;;  %v1604_v18 = vmax.f32 %v1538_v15, 0.0 }
 0x3ff   :  { %v1605_v19 = vmax.f32 %v1541_v17, 0.0  ;;  %v2767_v20 = vpop.f32.mrb[108].mxu1 }
 0x400   :  { %v2768_v21 = vpop.f32.mrb[109].mxu1 }
 0x401   :  { %v2769_v3 = vadd.f32 %v2768_v21, %v2767_v20  ;;  %v2770_v13 = vpop.f32.mrb[110].mxu1  ;;  %v1626_v14 = vpack.c.bf16 %v1605_v19, %v1604_v18 }
 0x402   :  { %v2771_v23 = vpop.f32.mrb[111].mxu1 }
 0x403   :  { %v1546_v38 = vadd.f32 %v2769_v3, %v3818_v22  ;;  %v2772_v24 = vadd.f32 %v2771_v23, %v2770_v13  ;;  %2891 = vmatprep.mubr.bf16.mxu0 %v1626_v14 }
 0x405   :  { %v1549_v28 = vadd.f32 %v2772_v24, %v3818_v22  ;;  %v1606_v2 = vmax.f32 %v1546_v38, 0.0 }
 0x407   :  { %v1607_v30 = vmax.f32 %v1549_v28, 0.0  ;;  %v2773_v31 = vpop.f32.mrb[112].mxu1 }
 0x408   :  { %v2774_v33 = vpop.f32.mrb[113].mxu1 }
 0x409   :  { %v2775_v34 = vadd.f32 %v2774_v33, %v2773_v31  ;;  %v2776_v35 = vpop.f32.mrb[114].mxu1  ;;  %v1627_v36 = vpack.c.bf16 %v1607_v30, %v1606_v2 }
 0x40a   :  { %v2777_v37 = vpop.f32.mrb[115].mxu1 }
 0x40b   :  { %v1554_v32 = vadd.f32 %v2775_v34, %v3818_v22  ;;  %v2778_v39 = vadd.f32 %v2777_v37, %v2776_v35  ;;  %2892 = vmatmul.mubr.bf16.gmra.mrb[116].mxu0 %v1627_v36 }
 0x40d   :  { %v1557_v40 = vadd.f32 %v2778_v39, %v3818_v22  ;;  %v1608_v41 = vmax.f32 %v1554_v32, 0.0 }
 0x40f   :  { %v1609_v42 = vmax.f32 %v1557_v40, 0.0  ;;  %v2779_v43 = vpop.f32.mrb[116].mxu1 }
 0x410   :  { %v2780_v44 = vpop.f32.mrb[117].mxu1 }
 0x411   :  { %v2781_v45 = vadd.f32 %v2780_v44, %v2779_v43  ;;  %v2782_v46 = vpop.f32.mrb[118].mxu1  ;;  %v1628_v47 = vpack.c.bf16 %v1609_v42, %v1608_v41 }
 0x412   :  { %v2783_v27 = vpop.f32.mrb[119].mxu1 }
 0x413   :  { %v1562_v48 = vadd.f32 %v2781_v45, %v3818_v22  ;;  %v2784_v26 = vadd.f32 %v2783_v27, %v2782_v46  ;;  %2895 = vmatprep.mubr.bf16.mxu0 %v1628_v47  ;;  %v3885_v27 = vand.u32 127, %v416_v25 }
 0x415   :  { %v1565_v29 = vadd.f32 %v2784_v26, %v3818_v22  ;;  %v1610_v49 = vmax.f32 %v1562_v48, 0.0  ;;  %vm2506_vm2 = vcmp.lt.s32.totalorder %v3885_v27, 2 }
 0x417   :  { %v1611_v50 = vmax.f32 %v1565_v29, 0.0  ;;  %v2785_v51 = vpop.f32.mrb[120].mxu1 }
 0x418   :  { %v2786_v52 = vpop.f32.mrb[121].mxu1 }
 0x419   :  { %v2787_v53 = vadd.f32 %v2786_v52, %v2785_v51  ;;  %v2788_v54 = vpop.f32.mrb[122].mxu1  ;;  %v1629_v55 = vpack.c.bf16 %v1611_v50, %v1610_v49 }
 0x41a   :  { %v2789_v56 = vpop.f32.mrb[123].mxu1 }
 0x41b   :  { %v1570_v58 = vadd.f32 %v2787_v53, %v3818_v22  ;;  %v2790_v59 = vadd.f32 %v2789_v56, %v2788_v54  ;;  %2896 = vmatmul.mubr.bf16.gmra.mrb[120].mxu0 %v1629_v55 }
 0x41d   :  { %v1573_v60 = vadd.f32 %v2790_v59, %v3818_v22  ;;  %v1612_v61 = vmax.f32 %v1570_v58, 0.0 }
 0x41f   :  { %v1613_v62 = vmax.f32 %v1573_v60, 0.0  ;;  %v2791_v63 = vpop.f32.mrb[124].mxu1 }
 0x420   :  { %v2792_v0 = vpop.f32.mrb[125].mxu1 }
 0x421   :  { %v2793_v57 = vadd.f32 %v2792_v0, %v2791_v63  ;;  %v2794_v1 = vpop.f32.mrb[126].mxu1  ;;  %v1630_v4 = vpack.c.bf16 %v1613_v62, %v1612_v61 }
 0x422   :  { %v2795_v5 = vpop.f32.mrb[127].mxu1 }
 0x423   :  { %v1578_v6 = vadd.f32 %v2793_v57, %v3818_v22  ;;  %v2796_v7 = vadd.f32 %v2795_v5, %v2794_v1  ;;  %2899 = vmatprep.mubr.bf16.mxu0 %v1630_v4 }
 0x425   :  { %v1581_v8 = vadd.f32 %v2796_v7, %v3818_v22  ;;  %v1614_v9 = vmax.f32 %v1578_v6, 0.0 }
 0x427   :  { %v1615_v10 = vmax.f32 %v1581_v8, 0.0 }
 0x429   :  { %v1631_v11 = vpack.c.bf16 %v1615_v10, %v1614_v9 }
 0x42b   :  { %2900 = vmatmul.mubr.bf16.gmra.mrb[124].mxu0 %v1631_v11 }
 0x48e   :  { %v2873_v15 = vpop.f32.mrb[96].mxu0 }
 0x48f   :  { %v3858_v16 = vadd.f32 %v2873_v15, %v3855_v12  ;;  %v1737_v17 = vpop.f32.mrb[97].mxu0 }
 0x490   :  { %v3861_v18 = vadd.f32 %v3855_v12, %v1737_v17  ;;  %v2874_v19 = vpop.f32.mrb[98].mxu0 }
 0x491   :  { %v2028_v22 = vand.u32 2147483647, %v3858_v16  ;;  %v1740_v20 = vpop.f32.mrb[99].mxu0  ;;  %v3866_v13 = vadd.f32 %v2874_v19, %v3855_v12  ;;  %v1932_v49 = vmax.f32 %v3858_v16, 0.0  ;;  %vm1964_vm3 = vcmp.ne.f32.partialorder %v3858_v16, %v3858_v16 }
 0x492   :  { %v2026_v21 = vand.u32 2147483647, %v3861_v18  ;;  %v3869_v14 = vadd.f32 %v3855_v12, %v1740_v20  ;;  %v1930_v52 = vmax.f32 %v3861_v18, 0.0  ;;  %vm1962_vm6 = vcmp.ne.f32.partialorder %v3861_v18, %v3861_v18 }
 0x493   :  { %v2060_v3 = vsub.f32 0.0, %v2028_v22  ;;  %v2029_v28 = vand.u32 2147483647, %v3866_v13  ;;  %v1933_v59 = vmax.f32 %v3866_v13, 0.0  ;;  %vm1965_vm7 = vcmp.ne.f32.partialorder %v3866_v13, %v3866_v13 }
 0x494   :  { %v2058_v23 = vsub.f32 0.0, %v2026_v21  ;;  %v2027_v2 = vand.u32 2147483647, %v3869_v14  ;;  %v1931_v5 = vmax.f32 %v3869_v14, 0.0  ;;  %vm1963_vm10 = vcmp.ne.f32.partialorder %v3869_v14, %v3869_v14 }
 0x495   :  { %v2094_v38 = vmul.f32 1.442695, %v2060_v3  ;;  %v2061_v30 = vsub.f32 0.0, %v2029_v28 }
 0x496   :  { %v2090_v24 = vmul.f32 1.442695, %v2058_v23  ;;  %v2059_v31 = vsub.f32 0.0, %v2027_v2 }
 0x497   :  { %3008 = vpow2.f32 %v2094_v38  ;;  %v2096_v33 = vmul.f32 1.442695, %v2061_v30 }
 0x498   :  { %3010 = vpow2.f32 %v2090_v24  ;;  %v2092_v34 = vmul.f32 1.442695, %v2059_v31 }
 0x499   :  { %3012 = vpow2.f32 %v2096_v33 }
 0x49a   :  { %3014 = vpow2.f32 %v2092_v34 }
 0x49b   :  { %3016 = vtanh.f32 %v3858_v16 }
 0x49c   :  { %3018 = vtanh.f32 %v3861_v18 }
 0x49e   :  { %v2877_v35 = vpop.f32.mrb[100].mxu0 }
 0x49f   :  { %v3875_v36 = vadd.f32 %v2877_v35, %v3855_v12  ;;  %v1753_v37 = vpop.f32.mrb[101].mxu0 }
 0x4a0   :  { %v2878_v32 = vpop.f32.mrb[102].mxu0  ;;  %v3879_v44 = vadd.f32 %v3855_v12, %v1753_v37 }
 0x4a1   :  { %v3009_v39 = vpop.eup %3008  ;;  %v1756_v40 = vpop.f32.mrb[103].mxu0  ;;  %v2032_v43 = vand.u32 2147483647, %v3875_v36  ;;  %v3899_v61 = vadd.f32 %v2878_v32, %v3855_v12  ;;  %vm1968_vm11 = vcmp.ne.f32.partialorder %v3875_v36, %v3875_v36 }
 0x4a2   :  { %v3011_v41 = vpop.eup %3010  ;;  %v2172_v42 = vadd.f32 1.0, %v3009_v39  ;;  %v2030_v26 = vand.u32 2147483647, %v3879_v44  ;;  %v2175_v50 = vmul.f32 -0.5, %v3009_v39  ;;  %v2178_v55 = vand.u32 2147483647, %v3009_v39 }
 0x4a3   :  { %v2154_v45 = vadd.f32 1.0, %v3011_v41  ;;  %v2064_v46 = vsub.f32 0.0, %v2032_v43  ;;  %v3882_v47 = vpop.eup %3012  ;;  %v2157_v53 = vmul.f32 -0.5, %v3011_v41  ;;  %v2160_v56 = vand.u32 2147483647, %v3011_v41 }
 0x4a4   :  { %3020 = vlog2.f32 %v2172_v42  ;;  %v3888_v29 = vpop.eup %3014  ;;  %v2181_v51 = vadd.f32 1.0, %v3882_v47  ;;  %v2062_v58 = vsub.f32 0.0, %v2030_v26  ;;  %v2184_v60 = vmul.f32 -0.5, %v3882_v47 }
 0x4a5   :  { %3022 = vlog2.f32 %v2154_v45  ;;  %v2102_v48 = vmul.f32 1.442695, %v2064_v46  ;;  %v2163_v54 = vadd.f32 1.0, %v3888_v29  ;;  %v3017_v25 = vpop.eup %3016  ;;  %v2176_v62 = vadd.f32 1.0, %v2175_v50 }
 0x4a6   :  { %3024 = vtanh.f32 %v3866_v13  ;;  %v2166_v63 = vmul.f32 -0.5, %v3888_v29  ;;  %v2098_v0 = vmul.f32 1.442695, %v2062_v58  ;;  %v3905_v57 = vadd.f32 %v3855_v12, %v1756_v40  ;;  %v3019_v6 = vpop.eup %3018 }
 0x4a7   :  { %3026 = vpow2.f32 %v2102_v48  ;;  %v1900_v1 = vmul.f32 2.0, %v3017_v25  ;;  %v2158_v4 = vadd.f32 1.0, %v2157_v53  ;;  %vm3909_vm4 = vcmp.lt.f32.partialorder %v2178_v55, 0.0004427343 }
 0x4a8   :  { %3028 = vlog2.f32 %v2181_v51  ;;  %vm3913_vm5 = vcmp.lt.f32.partialorder %v2160_v56, 0.0004427343  ;;  %v2033_v9 = vand.u32 2147483647, %v3899_v61  ;;  %v2185_v11 = vadd.f32 1.0, %v2184_v60 }
 0x4a9   :  { %3030 = vlog2.f32 %v2163_v54  ;;  %v2187_v15 = vand.u32 2147483647, %v3882_v47  ;;  %v2031_v17 = vand.u32 2147483647, %v3905_v57  ;;  %v2177_v21 = vmul.f32 %v3009_v39, %v2176_v62 }
 0x4aa   :  { %3032 = vtanh.f32 %v3869_v14  ;;  %v2167_v3 = vadd.f32 1.0, %v2166_v63  ;;  %v2065_v23 = vsub.f32 0.0, %v2033_v9  ;;  %v2159_v28 = vmul.f32 %v3011_v41, %v2158_v4 }
 0x4ab   :  { %3034 = vpow2.f32 %v2098_v0  ;;  %v2063_v2 = vsub.f32 0.0, %v2031_v17  ;;  %v1898_v35 = vmul.f32 2.0, %v3019_v6  ;;  %v2169_v37 = vand.u32 2147483647, %v3888_v29 }
 0x4ac   :  { %v2104_v32 = vmul.f32 1.442695, %v2065_v23  ;;  %v2186_v43 = vmul.f32 %v3882_v47, %v2185_v11  ;;  %vm3939_vm8 = vcmp.lt.f32.partialorder %v2187_v15, 0.0004427343  ;;  %v2168_v26 = vmul.f32 %v3888_v29, %v2167_v3 }
 0x4ad   :  { %v2100_v51 = vmul.f32 1.442695, %v2063_v2  ;;  %vm2170_vm9 = vcmp.lt.f32.partialorder %v2169_v37, 0.0004427343  ;;  %vm1966_vm14 = vcmp.ne.f32.partialorder %v3879_v44, %v3879_v44  ;;  %vm1969_vm15 = vcmp.ne.f32.partialorder %v3899_v61, %v3899_v61 }
 0x4ae   :  { %v3021_v10 = vpop.eup %3020  ;;  %v2881_v19 = vpop.f32.mrb[104].mxu0  ;;  %3036 = vpow2.f32 %v2104_v32  ;;  %vm1967_vm1 = vcmp.ne.f32.partialorder %v3905_v57, %v3905_v57 }
 0x4af   :  { %v3023_v22 = vpop.eup %3022  ;;  %v2174_v20 = vmul.f32 0.6931472, %v3021_v10  ;;  %v1769_v38 = vpop.f32.mrb[105].mxu0  ;;  %v3925_v30 = vadd.f32 %v2881_v19, %v3855_v12 }
 0x4b0   :  { %v2156_v24 = vmul.f32 0.6931472, %v3023_v22  ;;  %v3927_v31 = vpop.f32.mrb[106].mxu0  ;;  %v3025_v33 = vpop.eup %3024 }
 0x4b1   :  { %v2180_v34 = vsel %vm3909_vm4, %v2177_v21, %v2174_v20  ;;  %v3932_v39 = vpop.f32.mrb[107].mxu0  ;;  %v3934_v40 = vpop.eup %3026  ;;  %v2036_v47 = vand.u32 2147483647, %v3925_v30  ;;  %v1901_v62 = vmul.f32 2.0, %v3025_v33  ;;  %v4002_v3 = vadd.f32 %v3927_v31, %v3855_v12 }
 0x4b2   :  { %v2444_v41 = vadd.f32 %v2180_v34, %v1932_v49  ;;  %v2162_v42 = vsel %vm3913_vm5, %v2159_v28, %v2156_v24  ;;  %v3029_v46 = vpop.eup %3028  ;;  %v2208_v50 = vadd.f32 1.0, %v3934_v40  ;;  %v2211_v0 = vmul.f32 -0.5, %v3934_v40 }
 0x4b3   :  { %v2442_v48 = vadd.f32 %v2162_v42, %v1930_v52  ;;  %v3031_v53 = vpop.eup %3030  ;;  %v2183_v54 = vmul.f32 0.6931472, %v3029_v46  ;;  %v2068_v7 = vsub.f32 0.0, %v2036_v47  ;;  %v2214_v11 = vand.u32 2147483647, %v3934_v40 }
 0x4b4   :  { %v2476_v49 = vsel %vm1964_vm3, %v3858_v16, %v2444_v41  ;;  %v2165_v52 = vmul.f32 0.6931472, %v3031_v53  ;;  %3038 = vlog2.f32 %v2208_v50  ;;  %v3033_v55 = vpop.eup %3032  ;;  %v1936_v24 = vmax.f32 %v3875_v36, 0.0 }
 0x4b5   :  { %v2509_v25 = vsel %vm2506_vm2, %v1900_v1, %v2476_v49  ;;  %v2474_v29 = vsel %vm1962_vm6, %v3861_v18, %v2442_v48  ;;  %v2189_v56 = vsel %vm3939_vm8, %v2186_v43, %v2183_v54  ;;  %3040 = vtanh.f32 %v3875_v36  ;;  %v3964_v58 = vpop.eup %3034 }
 0x4b6   :  { %2541 = vst [vmem:[%s4632_s11 + $0x10] sm:$0xff] %v2509_v25  ;;  %v2507_v16 = vsel %vm2506_vm2, %v1898_v35, %v2474_v29  ;;  %v2445_v18 = vadd.f32 %v2189_v56, %v1933_v59  ;;  %v2171_v60 = vsel %vm2170_vm9, %v2168_v26, %v2165_v52  ;;  %3042 = vpow2.f32 %v2100_v51 }
 0x4b7   :  { %2539 = vst [vmem:[%s4632_s11] sm:$0xff] %v2507_v16  ;;  %v2443_v63 = vadd.f32 %v2171_v60, %v1931_v5  ;;  %v2190_v1 = vadd.f32 1.0, %v3964_v58  ;;  %v1899_v6 = vmul.f32 2.0, %v3033_v55  ;;  %v3980_v59 = vadd.f32 %v3855_v12, %v1769_v38 }
 0x4b8   :  { %v2477_v4 = vsel %vm1965_vm7, %v3866_v13, %v2445_v18  ;;  %v2110_v10 = vmul.f32 1.442695, %v2068_v7  ;;  %v2212_v13 = vadd.f32 1.0, %v2211_v0  ;;  %v3997_v17 = vpop.eup %3036  ;;  %vm2215_vm12 = vcmp.lt.f32.partialorder %v2214_v11, 0.0004427343 }
 0x4b9   :  { %v2510_v8 = vsel %vm2506_vm2, %v1901_v62, %v2477_v4  ;;  %v2475_v9 = vsel %vm1963_vm10, %v3869_v14, %v2443_v63  ;;  %3044 = vlog2.f32 %v2190_v1  ;;  %v2193_v14 = vmul.f32 -0.5, %v3964_v58 }
 0x4ba   :  { %2542 = vst [vmem:[%s4632_s11 + $0x18] sm:$0xff] %v2510_v8  ;;  %v2508_v5 = vsel %vm2506_vm2, %v1899_v6, %v2475_v9  ;;  %3046 = vtanh.f32 %v3879_v44  ;;  %v2034_v15 = vand.u32 2147483647, %v3980_v59  ;;  %v2217_v20 = vadd.f32 1.0, %v3997_v17 }
 0x4bb   :  { %2540 = vst [vmem:[%s4632_s11 + $0x8] sm:$0xff] %v2508_v5  ;;  %3048 = vpow2.f32 %v2110_v10  ;;  %v2213_v2 = vmul.f32 %v3934_v40, %v2212_v13  ;;  %v2194_v35 = vadd.f32 1.0, %v2193_v14  ;;  %v2196_v41 = vand.u32 2147483647, %v3964_v58 }
 0x4bc   :  { %v2066_v21 = vsub.f32 0.0, %v2034_v15  ;;  %3050 = vlog2.f32 %v2217_v20  ;;  %v2037_v40 = vand.u32 2147483647, %v4002_v3  ;;  %v4022_v45 = vadd.f32 %v3855_v12, %v3932_v39 }
 0x4bd   :  { %3052 = vtanh.f32 %v3899_v61  ;;  %v1934_v26 = vmax.f32 %v3879_v44, 0.0  ;;  %v2220_v50 = vmul.f32 -0.5, %v3997_v17  ;;  %v2195_v49 = vmul.f32 %v3964_v58, %v2194_v35 }
 0x4be   :  { %v2885_v19 = vpop.f32.mrb[108].mxu0  ;;  %v3039_v22 = vpop.eup %3038  ;;  %v2106_v31 = vmul.f32 1.442695, %v2066_v21  ;;  %v2069_v54 = vsub.f32 0.0, %v2037_v40  ;;  %vm2197_vm13 = vcmp.lt.f32.partialorder %v2196_v41, 0.0004427343  ;;  %vm1972_vm5 = vcmp.ne.f32.partialorder %v3925_v30, %v3925_v30 }
 0x4bf   :  { %v4004_v23 = vpop.f32.mrb[109].mxu0  ;;  %v3041_v38 = vpop.eup %3040  ;;  %v2210_v28 = vmul.f32 0.6931472, %v3039_v22  ;;  %v2035_v55 = vand.u32 2147483647, %v4022_v45  ;;  %v2221_v56 = vadd.f32 1.0, %v2220_v50  ;;  %v4045_v18 = vadd.f32 %v2885_v19, %v3855_v12 }
 0x4c0   :  { %v4010_v33 = vpop.f32.mrb[110].mxu0  ;;  %v4012_v34 = vpop.eup %3042  ;;  %3054 = vpow2.f32 %v2106_v31  ;;  %v1904_v48 = vmul.f32 2.0, %v3041_v38  ;;  %v2112_v52 = vmul.f32 1.442695, %v2069_v54  ;;  %v2223_v62 = vand.u32 2147483647, %v3997_v17 }
 0x4c1   :  { %v4014_v37 = vpop.f32.mrb[111].mxu0  ;;  %v2216_v32 = vsel %vm2215_vm12, %v2213_v2, %v2210_v28  ;;  %v2199_v42 = vadd.f32 1.0, %v4012_v34  ;;  %v2202_v25 = vmul.f32 -0.5, %v4012_v34  ;;  %v2067_v63 = vsub.f32 0.0, %v2035_v55 }
 0x4c2   :  { %v2448_v43 = vadd.f32 %v2216_v32, %v1936_v24  ;;  %v1937_v1 = vmax.f32 %v3899_v61, 0.0  ;;  %v2222_v5 = vmul.f32 %v3997_v17, %v2221_v56  ;;  %v2205_v10 = vand.u32 2147483647, %v4012_v34 }
 0x4c3   :  { %v3045_v46 = vpop.eup %3044  ;;  %3056 = vlog2.f32 %v2199_v42  ;;  %v2203_v4 = vadd.f32 1.0, %v2202_v25  ;;  %v2108_v8 = vmul.f32 1.442695, %v2067_v63  ;;  %v2040_v13 = vand.u32 2147483647, %v4045_v18 }
 0x4c4   :  { %v2480_v51 = vsel %vm1968_vm11, %v3875_v36, %v2448_v43  ;;  %v2192_v53 = vmul.f32 0.6931472, %v3045_v46  ;;  %v3047_v47 = vpop.eup %3046  ;;  %3058 = vtanh.f32 %v3905_v57  ;;  %vm2224_vm0 = vcmp.lt.f32.partialorder %v2223_v62, 0.0004427343 }
 0x4c5   :  { %v2513_v39 = vsel %vm2506_vm2, %v1904_v48, %v2480_v51  ;;  %v4035_v29 = vpop.eup %3048  ;;  %v1902_v60 = vmul.f32 2.0, %v3047_v47  ;;  %3060 = vpow2.f32 %v2112_v52  ;;  %v1935_v14 = vmax.f32 %v3905_v57, 0.0 }
 0x4c6   :  { %2545 = vst [vmem:[%s4632_s11 + $0x30] sm:$0xff] %v2513_v39  ;;  %v2198_v36 = vsel %vm2197_vm13, %v2195_v49, %v2192_v53  ;;  %v2244_v58 = vadd.f32 1.0, %v4035_v29  ;;  %v3051_v6 = vpop.eup %3050  ;;  %v2247_v15 = vmul.f32 -0.5, %v4035_v29  ;;  %v2204_v20 = vmul.f32 %v4012_v34, %v2203_v4 }
 0x4c7   :  { %v2446_v16 = vadd.f32 %v2198_v36, %v1934_v26  ;;  %v3053_v9 = vpop.eup %3052  ;;  %v2072_v28 = vsub.f32 0.0, %v2040_v13  ;;  %v4072_v2 = vadd.f32 %v3855_v12, %v4004_v23  ;;  %vm2206_vm3 = vcmp.lt.f32.partialorder %v2205_v10, 0.0004427343 }
 0x4c8   :  { %3062 = vlog2.f32 %v2244_v58  ;;  %v1905_v32 = vmul.f32 2.0, %v3053_v9  ;;  %v2248_v43 = vadd.f32 1.0, %v2247_v15  ;;  %v2250_v26 = vand.u32 2147483647, %v4035_v29 }
 0x4c9   :  { %v2478_v0 = vsel %vm1966_vm14, %v3879_v44, %v2446_v16  ;;  %3064 = vtanh.f32 %v3925_v30  ;;  %v2219_v44 = vmul.f32 0.6931472, %v3051_v6  ;;  %v2118_v23 = vmul.f32 1.442695, %v2072_v28 }
 0x4ca   :  { %v2511_v7 = vsel %vm2506_vm2, %v1902_v60, %v2478_v0  ;;  %v4061_v11 = vpop.eup %3054  ;;  %3066 = vpow2.f32 %v2108_v8  ;;  %v2038_v53 = vand.u32 2147483647, %v4072_v2  ;;  %v4098_v49 = vadd.f32 %v4010_v33, %v3855_v12 }
 0x4cb   :  { %2543 = vst [vmem:[%s4632_s11 + $0x20] sm:$0xff] %v2511_v7  ;;  %v2225_v22 = vsel %vm2224_vm0, %v2222_v5, %v2219_v44  ;;  %3068 = vtanh.f32 %v3980_v59  ;;  %v2226_v17 = vadd.f32 1.0, %v4061_v11  ;;  %v2229_v50 = vmul.f32 -0.5, %v4061_v11 }
 0x4cc   :  { %v2449_v38 = vadd.f32 %v2225_v22, %v1937_v1  ;;  %v2249_v55 = vmul.f32 %v4035_v29, %v2248_v43  ;;  %v2070_v16 = vsub.f32 0.0, %v2038_v53  ;;  %v1940_v33 = vmax.f32 %v3925_v30, 0.0 }
 0x4cd   :  { %v3057_v19 = vpop.eup %3056  ;;  %3070 = vlog2.f32 %v2226_v17  ;;  %vm2251_vm4 = vcmp.lt.f32.partialorder %v2250_v26, 0.0004427343  ;;  %v2041_v63 = vand.u32 2147483647, %v4098_v49  ;;  %v2232_v1 = vand.u32 2147483647, %v4061_v11 }
 0x4ce   :  { %v4068_v21 = vpop.f32.mrb[112].mxu0  ;;  %v2201_v24 = vmul.f32 0.6931472, %v3057_v19  ;;  %v3059_v31 = vpop.eup %3058  ;;  %v2481_v41 = vsel %vm1969_vm15, %v3899_v61, %v2449_v38  ;;  %3072 = vpow2.f32 %v2118_v23  ;;  %v2114_v62 = vmul.f32 1.442695, %v2070_v16 }
 0x4cf   :  { %v4074_v35 = vpop.f32.mrb[113].mxu0  ;;  %v2514_v46 = vsel %vm2506_vm2, %v1905_v32, %v2481_v41  ;;  %v4090_v51 = vpop.eup %3060  ;;  %v1903_v61 = vmul.f32 2.0, %v3059_v31  ;;  %3074 = vtanh.f32 %v4002_v3  ;;  %v4121_v6 = vadd.f32 %v3855_v12, %v4014_v37 }
 0x4d0   :  { %v4078_v34 = vpop.f32.mrb[114].mxu0  ;;  %v2207_v42 = vsel %vm2206_vm3, %v2204_v20, %v2201_v24  ;;  %2546 = vst [vmem:[%s4632_s11 + $0x38] sm:$0xff] %v2514_v46  ;;  %v2253_v39 = vadd.f32 1.0, %v4090_v51  ;;  %v2256_v60 = vmul.f32 -0.5, %v4090_v51  ;;  %v2073_v8 = vsub.f32 0.0, %v2041_v63 }
 0x4d1   :  { %v4084_v40 = vpop.f32.mrb[115].mxu0  ;;  %v2447_v48 = vadd.f32 %v2207_v42, %v1935_v14  ;;  %v1938_v5 = vmax.f32 %v3980_v59, 0.0  ;;  %vm2233_vm6 = vcmp.lt.f32.partialorder %v2232_v1, 0.0004427343  ;;  %v2039_v19 = vand.u32 2147483647, %v4121_v6 }
 0x4d2   :  { %v3063_v54 = vpop.eup %3062  ;;  %3076 = vlog2.f32 %v2253_v39  ;;  %v2257_v37 = vadd.f32 1.0, %v2256_v60  ;;  %v2120_v15 = vmul.f32 1.442695, %v2073_v8  ;;  %vm1970_vm7 = vcmp.ne.f32.partialorder %v3980_v59, %v3980_v59 }
 0x4d3   :  { %v2479_v47 = vsel %vm1967_vm1, %v3905_v57, %v2447_v48  ;;  %v3065_v25 = vpop.eup %3064  ;;  %v2246_v52 = vmul.f32 0.6931472, %v3063_v54  ;;  %v2230_v57 = vadd.f32 1.0, %v2229_v50  ;;  %3078 = vpow2.f32 %v2114_v62 }
 0x4d4   :  { %v2512_v36 = vsel %vm2506_vm2, %v1903_v61, %v2479_v47  ;;  %v4113_v56 = vpop.eup %3066  ;;  %v1908_v7 = vmul.f32 2.0, %v3065_v25  ;;  %v1941_v20 = vmax.f32 %v4002_v3, 0.0  ;;  %v2259_v24 = vand.u32 2147483647, %v4090_v51 }
 0x4d5   :  { %2544 = vst [vmem:[%s4632_s11 + $0x28] sm:$0xff] %v2512_v36  ;;  %v2252_v58 = vsel %vm2251_vm4, %v2249_v55, %v2246_v52  ;;  %v3069_v0 = vpop.eup %3068  ;;  %v2235_v4 = vadd.f32 1.0, %v4113_v56  ;;  %v2231_v10 = vmul.f32 %v4061_v11, %v2230_v57  ;;  %v4145_v31 = vadd.f32 %v4068_v21, %v3855_v12 }
 0x4d6   :  { %v2452_v29 = vadd.f32 %v2252_v58, %v1940_v33  ;;  %v1906_v41 = vmul.f32 2.0, %v3069_v0  ;;  %vm1973_vm8 = vcmp.ne.f32.partialorder %v4002_v3, %v4002_v3  ;;  %v2258_v42 = vmul.f32 %v4090_v51, %v2257_v37 }
 0x4d7   :  { %v3071_v9 = vpop.eup %3070  ;;  %3080 = vlog2.f32 %v2235_v4  ;;  %v2071_v43 = vsub.f32 0.0, %v2039_v19  ;;  %v2241_v21 = vand.u32 2147483647, %v4113_v56  ;;  %v4165_v54 = vadd.f32 %v3855_v12, %v4074_v35 }
 0x4d8   :  { %v2484_v44 = vsel %vm1972_vm5, %v3925_v30, %v2452_v29  ;;  %v2228_v14 = vmul.f32 0.6931472, %v3071_v9  ;;  %3082 = vtanh.f32 %v4022_v45  ;;  %v2238_v30 = vmul.f32 -0.5, %v4113_v56  ;;  %v4136_v22 = vpop.eup %3072 }
 0x4d9   :  { %v2517_v13 = vsel %vm2506_vm2, %v1908_v7, %v2484_v44  ;;  %3084 = vpow2.f32 %v2120_v15  ;;  %v3075_v17 = vpop.eup %3074  ;;  %v2280_v28 = vadd.f32 1.0, %v4136_v22  ;;  %v2116_v51 = vmul.f32 1.442695, %v2071_v43 }
 0x4da   :  { %2549 = vst [vmem:[%s4632_s11 + $0x50] sm:$0xff] %v2517_v13  ;;  %v2234_v11 = vsel %vm2233_vm6, %v2231_v10, %v2228_v14  ;;  %v2239_v26 = vadd.f32 1.0, %v2238_v30  ;;  %vm2260_vm9 = vcmp.lt.f32.partialorder %v2259_v24, 0.0004427343  ;;  %v2044_v39 = vand.u32 2147483647, %v4145_v31 }
 0x4db   :  { %v2450_v38 = vadd.f32 %v2234_v11, %v1938_v5  ;;  %3086 = vlog2.f32 %v2280_v28  ;;  %v1909_v36 = vmul.f32 2.0, %v3075_v17  ;;  %v1939_v35 = vmax.f32 %v4022_v45, 0.0 }
 0x4dc   :  { %v3077_v46 = vpop.eup %3076  ;;  %3088 = vtanh.f32 %v4045_v18  ;;  %vm4178_vm10 = vcmp.lt.f32.partialorder %v2241_v21, 0.0004427343  ;;  %v2240_v60 = vmul.f32 %v4113_v56, %v2239_v26  ;;  %v2076_v62 = vsub.f32 0.0, %v2044_v39 }
 0x4dd   :  { %v2482_v48 = vsel %vm1970_vm7, %v3980_v59, %v2450_v38  ;;  %v2255_v53 = vmul.f32 0.6931472, %v3077_v46  ;;  %v2283_v59 = vmul.f32 -0.5, %v4136_v22  ;;  %v4175_v25 = vpop.eup %3078  ;;  %3090 = vpow2.f32 %v2116_v51 }
 0x4de   :  { %v4147_v32 = vpop.f32.mrb[116].mxu0  ;;  %v2515_v61 = vsel %vm2506_vm2, %v1906_v41, %v2482_v48  ;;  %3092 = vtanh.f32 %v4072_v2  ;;  %v2262_v57 = vadd.f32 1.0, %v4175_v25  ;;  %v2042_v63 = vand.u32 2147483647, %v4165_v54 }
 0x4df   :  { %v4152_v23 = vpop.f32.mrb[117].mxu0  ;;  %2547 = vst [vmem:[%s4632_s11 + $0x40] sm:$0xff] %v2515_v61  ;;  %v2261_v52 = vsel %vm2260_vm9, %v2258_v42, %v2255_v53  ;;  %v2284_v1 = vadd.f32 1.0, %v2283_v59  ;;  %v4192_v4 = vadd.f32 %v4078_v34, %v3855_v12  ;;  %v2126_v9 = vmul.f32 1.442695, %v2076_v62 }
 0x4e0   :  { %v4159_v50 = vpop.f32.mrb[118].mxu0  ;;  %v2453_v16 = vadd.f32 %v2261_v52, %v1941_v20  ;;  %3094 = vlog2.f32 %v2262_v57  ;;  %v2074_v44 = vsub.f32 0.0, %v2042_v63  ;;  %v2286_v5 = vand.u32 2147483647, %v4136_v22 }
 0x4e1   :  { %v4167_v47 = vpop.f32.mrb[119].mxu0  ;;  %v3081_v55 = vpop.eup %3080  ;;  %v2265_v34 = vmul.f32 -0.5, %v4175_v25  ;;  %vm1971_vm11 = vcmp.ne.f32.partialorder %v4022_v45, %v4022_v45  ;;  %3096 = vpow2.f32 %v2126_v9  ;;  %v1944_v30 = vmax.f32 %v4045_v18, 0.0 }
 0x4e2   :  { %v2237_v58 = vmul.f32 0.6931472, %v3081_v55  ;;  %v3083_v0 = vpop.eup %3082  ;;  %v2485_v29 = vsel %vm1973_vm8, %v4002_v3, %v2453_v16  ;;  %v2122_v14 = vmul.f32 1.442695, %v2074_v44  ;;  %vm1976_vm12 = vcmp.ne.f32.partialorder %v4045_v18, %v4045_v18 }
 0x4e3   :  { %v4194_v7 = vpop.eup %3084  ;;  %v2518_v56 = vsel %vm2506_vm2, %v1909_v36, %v2485_v29  ;;  %v1907_v13 = vmul.f32 2.0, %v3083_v0  ;;  %v2285_v20 = vmul.f32 %v4136_v22, %v2284_v1  ;;  %vm2287_vm13 = vcmp.lt.f32.partialorder %v2286_v5, 0.0004427343 }
 0x4e4   :  { %v2243_v8 = vsel %vm4178_vm10, %v2240_v60, %v2237_v58  ;;  %2550 = vst [vmem:[%s4632_s11 + $0x58] sm:$0xff] %v2518_v56  ;;  %v2289_v10 = vadd.f32 1.0, %v4194_v7  ;;  %v2045_v38 = vand.u32 2147483647, %v4192_v4  ;;  %v1942_v41 = vmax.f32 %v4072_v2, 0.0 }
 0x4e5   :  { %v2451_v3 = vadd.f32 %v2243_v8, %v1939_v35  ;;  %v3087_v37 = vpop.eup %3086  ;;  %vm1974_vm14 = vcmp.ne.f32.partialorder %v4072_v2, %v4072_v2  ;;  %v2292_v22 = vmul.f32 -0.5, %v4194_v7  ;;  %v2268_v46 = vand.u32 2147483647, %v4175_v25 }
 0x4e6   :  { %3098 = vlog2.f32 %v2289_v10  ;;  %v2282_v11 = vmul.f32 0.6931472, %v3087_v37  ;;  %v3089_v17 = vpop.eup %3088  ;;  %v4230_v26 = vadd.f32 %v3855_v12, %v4084_v40  ;;  %v2077_v53 = vsub.f32 0.0, %v2045_v38 }
 0x4e7   :  { %v2483_v15 = vsel %vm1971_vm11, %v4022_v45, %v2451_v3  ;;  %3100 = vpow2.f32 %v2122_v14  ;;  %v2266_v45 = vadd.f32 1.0, %v2265_v34  ;;  %v4220_v24 = vpop.eup %3090  ;;  %v1912_v61 = vmul.f32 2.0, %v3089_v17 }
 0x4e8   :  { %v2516_v19 = vsel %vm2506_vm2, %v1907_v13, %v2483_v15  ;;  %3102 = vtanh.f32 %v4098_v49  ;;  %v2288_v28 = vsel %vm2287_vm13, %v2285_v20, %v2282_v11  ;;  %v3093_v42 = vpop.eup %3092  ;;  %v2271_v48 = vadd.f32 1.0, %v4220_v24 }
 0x4e9   :  { %2548 = vst [vmem:[%s4632_s11 + $0x48] sm:$0xff] %v2516_v19  ;;  %v2456_v43 = vadd.f32 %v2288_v28, %v1944_v30  ;;  %3104 = vtanh.f32 %v4121_v6  ;;  %v4237_v51 = vadd.f32 %v4147_v32, %v3855_v12  ;;  %v2267_v40 = vmul.f32 %v4175_v25, %v2266_v45 }
 0x4ea   :  { %v3095_v39 = vpop.eup %3094  ;;  %v1945_v52 = vmax.f32 %v4098_v49, 0.0  ;;  %3106 = vlog2.f32 %v2271_v48  ;;  %v2293_v16 = vadd.f32 1.0, %v2292_v22  ;;  %v2128_v33 = vmul.f32 1.442695, %v2077_v53 }
 0x4eb   :  { %v2488_v36 = vsel %vm1976_vm12, %v4045_v18, %v2456_v43  ;;  %v2264_v32 = vmul.f32 0.6931472, %v3095_v39  ;;  %vm2269_vm15 = vcmp.lt.f32.partialorder %v2268_v46, 0.0004427343  ;;  %v2295_v18 = vand.u32 2147483647, %v4194_v7  ;;  %v4259_v58 = vpop.eup %3096 }
 0x4ec   :  { %v2521_v55 = vsel %vm2506_vm2, %v1912_v61, %v2488_v36  ;;  %3108 = vtanh.f32 %v4145_v31  ;;  %v2043_v25 = vand.u32 2147483647, %v4230_v26  ;;  %v2274_v62 = vmul.f32 -0.5, %v4220_v24 }
 0x4ed   :  { %2553 = vst [vmem:[%s4632_s11 + $0x70] sm:$0xff] %v2521_v55  ;;  %v2270_v60 = vsel %vm2269_vm15, %v2267_v40, %v2264_v32  ;;  %3110 = vpow2.f32 %v2128_v33  ;;  %v2048_v63 = vand.u32 2147483647, %v4237_v51  ;;  %v1910_v29 = vmul.f32 2.0, %v3093_v42 }
 0x4ee   :  { %v4232_v21 = vpop.f32.mrb[120].mxu0  ;;  %v2454_v1 = vadd.f32 %v2270_v60, %v1942_v41  ;;  %v2316_v56 = vadd.f32 1.0, %v4259_v58  ;;  %3112 = vtanh.f32 %v4165_v54  ;;  %v2294_v44 = vmul.f32 %v4194_v7, %v2293_v16 }
 0x4ef   :  { %v4239_v59 = vpop.f32.mrb[121].mxu0  ;;  %v2075_v3 = vsub.f32 0.0, %v2043_v25  ;;  %v2080_v5 = vsub.f32 0.0, %v2048_v63  ;;  %vm1977_vm0 = vcmp.ne.f32.partialorder %v4098_v49, %v4098_v49  ;;  %vm2296_vm1 = vcmp.lt.f32.partialorder %v2295_v18, 0.0004427343 }
 0x4f0   :  { %v4247_v35 = vpop.f32.mrb[122].mxu0  ;;  %v3099_v0 = vpop.eup %3098  ;;  %v2486_v10 = vsel %vm1974_vm14, %v4072_v2, %v2454_v1  ;;  %3114 = vlog2.f32 %v2316_v56  ;;  %v2275_v37 = vadd.f32 1.0, %v2274_v62  ;;  %v2277_v30 = vand.u32 2147483647, %v4220_v24 }
 0x4f1   :  { %v4251_v57 = vpop.f32.mrb[123].mxu0  ;;  %v4265_v8 = vpop.eup %3100  ;;  %v2291_v9 = vmul.f32 0.6931472, %v3099_v0  ;;  %v2519_v13 = vsel %vm2506_vm2, %v1910_v29, %v2486_v10  ;;  %v2124_v2 = vmul.f32 1.442695, %v2075_v3  ;;  %v4283_v19 = vadd.f32 %v3855_v12, %v4152_v23 }
 0x4f2   :  { %v3103_v34 = vpop.eup %3102  ;;  %v2298_v7 = vadd.f32 1.0, %v4265_v8  ;;  %2551 = vst [vmem:[%s4632_s11 + $0x60] sm:$0xff] %v2519_v13  ;;  %v2319_v17 = vmul.f32 -0.5, %v4259_v58  ;;  %v2134_v45 = vmul.f32 1.442695, %v2080_v5  ;;  %v1943_v41 = vmax.f32 %v4121_v6, 0.0 }
 0x4f3   :  { %v2297_v14 = vsel %vm2296_vm1, %v2294_v44, %v2291_v9  ;;  %v3105_v11 = vpop.eup %3104  ;;  %v1913_v20 = vmul.f32 2.0, %v3103_v34  ;;  %vm1975_vm3 = vcmp.ne.f32.partialorder %v4121_v6, %v4121_v6  ;;  %v2276_v42 = vmul.f32 %v4220_v24, %v2275_v37 }
 0x4f4   :  { %v2457_v15 = vadd.f32 %v2297_v14, %v1945_v52  ;;  %3116 = vlog2.f32 %v2298_v7  ;;  %v3107_v38 = vpop.eup %3106  ;;  %vm2278_vm4 = vcmp.lt.f32.partialorder %v2277_v30, 0.0004427343  ;;  %v2301_v46 = vmul.f32 -0.5, %v4265_v8 }
 0x4f5   :  { %3118 = vpow2.f32 %v2124_v2  ;;  %v2273_v22 = vmul.f32 0.6931472, %v3107_v38  ;;  %v2046_v48 = vand.u32 2147483647, %v4283_v19  ;;  %v1911_v53 = vmul.f32 2.0, %v3105_v11 }
 0x4f6   :  { %v2489_v28 = vsel %vm1977_vm0, %v4098_v49, %v2457_v15  ;;  %3120 = vpow2.f32 %v2134_v45  ;;  %v3109_v43 = vpop.eup %3108  ;;  %v1948_v49 = vmax.f32 %v4145_v31, 0.0  ;;  %vm1980_vm5 = vcmp.ne.f32.partialorder %v4145_v31, %v4145_v31 }
 0x4f7   :  { %v2522_v23 = vsel %vm2506_vm2, %v1913_v20, %v2489_v28  ;;  %v4302_v61 = vpop.eup %3110  ;;  %v2279_v39 = vsel %vm2278_vm4, %v2276_v42, %v2273_v22  ;;  %v2320_v24 = vadd.f32 1.0, %v2319_v17  ;;  %v2322_v52 = vand.u32 2147483647, %v4259_v58 }
 0x4f8   :  { %2554 = vst [vmem:[%s4632_s11 + $0x78] sm:$0xff] %v2522_v23  ;;  %v3113_v36 = vpop.eup %3112  ;;  %v2455_v40 = vadd.f32 %v2279_v39, %v1943_v41  ;;  %v2325_v55 = vadd.f32 1.0, %v4302_v61  ;;  %v4310_v32 = vadd.f32 %v4159_v50, %v3855_v12  ;;  %v1946_v33 = vmax.f32 %v4165_v54, 0.0 }
 0x4f9   :  { %3122 = vtanh.f32 %v4192_v4  ;;  %v2078_v18 = vsub.f32 0.0, %v2046_v48  ;;  %v4318_v25 = vadd.f32 %v3855_v12, %v4167_v47  ;;  %v2302_v63 = vadd.f32 1.0, %v2301_v46 }
 0x4fa   :  { %v3115_v62 = vpop.eup %3114  ;;  %v2487_v50 = vsel %vm1975_vm3, %v4121_v6, %v2455_v40  ;;  %v2304_v0 = vand.u32 2147483647, %v4265_v8  ;;  %3124 = vlog2.f32 %v2325_v55  ;;  %v2321_v12 = vmul.f32 %v4259_v58, %v2320_v24 }
 0x4fb   :  { %v2520_v1 = vsel %vm2506_vm2, %v1911_v53, %v2487_v50  ;;  %v2318_v56 = vmul.f32 0.6931472, %v3115_v62  ;;  %v2130_v47 = vmul.f32 1.442695, %v2078_v18  ;;  %v1916_v6 = vmul.f32 2.0, %v3109_v43 }
 0x4fc   :  { %2552 = vst [vmem:[%s4632_s11 + $0x68] sm:$0xff] %v2520_v1  ;;  %vm2323_vm6 = vcmp.lt.f32.partialorder %v2322_v52, 0.0004427343  ;;  %vm1978_vm7 = vcmp.ne.f32.partialorder %v4165_v54, %v4165_v54  ;;  %v2049_v44 = vand.u32 2147483647, %v4310_v32  ;;  %v2328_v34 = vmul.f32 -0.5, %v4302_v61 }
 0x4fd   :  { %v2324_v5 = vsel %vm2323_vm6, %v2321_v12, %v2318_v56  ;;  %3126 = vpow2.f32 %v2130_v47  ;;  %v2047_v58 = vand.u32 2147483647, %v4318_v25  ;;  %v2303_v37 = vmul.f32 %v4265_v8, %v2302_v63 }
 0x4fe   :  { %v4312_v16 = vpop.f32.mrb[124].mxu0  ;;  %v3117_v3 = vpop.eup %3116  ;;  %v2460_v13 = vadd.f32 %v2324_v5, %v1948_v49  ;;  %3128 = vtanh.f32 %v4230_v26  ;;  %vm2305_vm8 = vcmp.lt.f32.partialorder %v2304_v0, 0.0004427343  ;;  %v2081_v30 = vsub.f32 0.0, %v2049_v44 }
 0x4ff   :  { %v4320_v60 = vpop.f32.mrb[125].mxu0  ;;  %v4342_v10 = vpop.eup %3118  ;;  %v2300_v14 = vmul.f32 0.6931472, %v3117_v3  ;;  %v2079_v2 = vsub.f32 0.0, %v2047_v58  ;;  %3130 = vtanh.f32 %v4237_v51  ;;  %v2329_v38 = vadd.f32 1.0, %v2328_v34 }
 0x500   :  { %v4327_v29 = vpop.f32.mrb[126].mxu0  ;;  %v4346_v7 = vpop.eup %3120  ;;  %v2307_v15 = vadd.f32 1.0, %v4342_v10  ;;  %v2492_v11 = vsel %vm1980_vm5, %v4145_v31, %v2460_v13  ;;  %v1914_v28 = vmul.f32 2.0, %v3113_v36  ;;  %v2331_v41 = vand.u32 2147483647, %v4302_v61 }
 0x501   :  { %v4332_v9 = vpop.f32.mrb[127].mxu0  ;;  %v2306_v20 = vsel %vm2305_vm8, %v2303_v37, %v2300_v14  ;;  %v2352_v17 = vadd.f32 1.0, %v4346_v7  ;;  %v2525_v8 = vsel %vm2506_vm2, %v1916_v6, %v2492_v11  ;;  %v4364_v31 = vld [vmem:[%s4631_s10] ss:$0 sm:$0xff]  ;;  %v2136_v43 = vmul.f32 1.442695, %v2081_v30 }
 0x502   :  { %v2458_v45 = vadd.f32 %v2306_v20, %v1946_v33  ;;  %3132 = vlog2.f32 %v2307_v15  ;;  %2557 = vst [vmem:[%s4632_s11 + $0x90] sm:$0xff] %v2525_v8  ;;  %v4368_v23 = vadd.f32 %v4364_v31, %v4232_v21  ;;  %v2132_v49 = vmul.f32 1.442695, %v2079_v2 }
 0x503   :  { %3134 = vlog2.f32 %v2352_v17  ;;  %v3123_v22 = vpop.eup %3122  ;;  %v4376_v46 = vadd.f32 %v4364_v31, %v4239_v59  ;;  %v1949_v39 = vmax.f32 %v4192_v4, 0.0  ;;  %v2310_v21 = vmul.f32 -0.5, %v4342_v10 }
 0x504   :  { %v2490_v42 = vsel %vm1978_vm7, %v4165_v54, %v2458_v45  ;;  %v3125_v48 = vpop.eup %3124  ;;  %v2355_v24 = vmul.f32 -0.5, %v4346_v7  ;;  %vm1981_vm9 = vcmp.ne.f32.partialorder %v4192_v4, %v4192_v4  ;;  %v2330_v59 = vmul.f32 %v4302_v61, %v2329_v38 }
 0x505   :  { %v2523_v53 = vsel %vm2506_vm2, %v1914_v28, %v2490_v42  ;;  %v2327_v54 = vmul.f32 0.6931472, %v3125_v48  ;;  %3136 = vpow2.f32 %v2136_v43  ;;  %vm2332_vm10 = vcmp.lt.f32.partialorder %v2331_v41, 0.0004427343 }
 0x506   :  { %2555 = vst [vmem:[%s4632_s11 + $0x80] sm:$0xff] %v2523_v53  ;;  %v1947_v36 = vmax.f32 %v4230_v26, 0.0  ;;  %3138 = vpow2.f32 %v2132_v49  ;;  %v2052_v40 = vand.u32 2147483647, %v4368_v23  ;;  %v1917_v55 = vmul.f32 2.0, %v3123_v22 }
 0x507   :  { %v4391_v52 = vpop.eup %3126  ;;  %v2333_v33 = vsel %vm2332_vm10, %v2330_v59, %v2327_v54  ;;  %v2313_v18 = vand.u32 2147483647, %v4342_v10  ;;  %v2050_v62 = vand.u32 2147483647, %v4376_v46  ;;  %vm1979_vm11 = vcmp.ne.f32.partialorder %v4230_v26, %v4230_v26 }
 0x508   :  { %v3129_v50 = vpop.eup %3128  ;;  %v2461_v63 = vadd.f32 %v2333_v33, %v1949_v39  ;;  %v2311_v61 = vadd.f32 1.0, %v2310_v21  ;;  %v2356_v0 = vadd.f32 1.0, %v2355_v24  ;;  %v2334_v1 = vadd.f32 1.0, %v4391_v52 }
 0x509   :  { %3140 = vtanh.f32 %v4283_v19  ;;  %v2084_v56 = vsub.f32 0.0, %v2052_v40  ;;  %v2082_v12 = vsub.f32 0.0, %v2050_v62  ;;  %v4401_v47 = vadd.f32 %v4364_v31, %v4247_v35  ;;  %v3131_v6 = vpop.eup %3130 }
 0x50a   :  { %v2493_v44 = vsel %vm1981_vm9, %v4192_v4, %v2461_v63  ;;  %v1952_v3 = vmax.f32 %v4237_v51, 0.0  ;;  %v2358_v5 = vand.u32 2147483647, %v4346_v7  ;;  %3142 = vlog2.f32 %v2334_v1 }
 0x50b   :  { %v2526_v58 = vsel %vm2506_vm2, %v1917_v55, %v2493_v44  ;;  %3144 = vtanh.f32 %v4310_v32  ;;  %v2142_v13 = vmul.f32 1.442695, %v2084_v56  ;;  %v2138_v35 = vmul.f32 1.442695, %v2082_v12 }
 0x50c   :  { %v3133_v34 = vpop.eup %3132  ;;  %2558 = vst [vmem:[%s4632_s11 + $0x98] sm:$0xff] %v2526_v58  ;;  %v2312_v4 = vmul.f32 %v4342_v10, %v2311_v61  ;;  %vm2314_vm12 = vcmp.lt.f32.partialorder %v2313_v18, 0.0004427343  ;;  %v2357_v15 = vmul.f32 %v4346_v7, %v2356_v0  ;;  %v2337_v2 = vmul.f32 -0.5, %v4391_v52 }
 0x50d   :  { %v3135_v14 = vpop.eup %3134  ;;  %v2309_v37 = vmul.f32 0.6931472, %v3133_v34  ;;  %3146 = vpow2.f32 %v2142_v13  ;;  %v2053_v11 = vand.u32 2147483647, %v4401_v47  ;;  %vm1984_vm13 = vcmp.ne.f32.partialorder %v4237_v51, %v4237_v51 }
 0x50e   :  { %v2354_v30 = vmul.f32 0.6931472, %v3135_v14  ;;  %vm2359_vm14 = vcmp.lt.f32.partialorder %v2358_v5, 0.0004427343  ;;  %3148 = vpow2.f32 %v2138_v35  ;;  %v1915_v8 = vmul.f32 2.0, %v3129_v50 }
 0x50f   :  { %v2315_v20 = vsel %vm2314_vm12, %v2312_v4, %v2309_v37  ;;  %v4421_v17 = vpop.eup %3136  ;;  %v1920_v10 = vmul.f32 2.0, %v3131_v6  ;;  %3150 = vtanh.f32 %v4318_v25  ;;  %v2085_v22 = vsub.f32 0.0, %v2053_v11 }
 0x510   :  { %v2459_v45 = vadd.f32 %v2315_v20, %v1947_v36  ;;  %v2360_v38 = vsel %vm2359_vm14, %v2357_v15, %v2354_v30  ;;  %v4423_v28 = vpop.eup %3138  ;;  %v2361_v41 = vadd.f32 1.0, %v4421_v17  ;;  %v2338_v43 = vadd.f32 1.0, %v2337_v2 }
 0x511   :  { %v2464_v7 = vadd.f32 %v2360_v38, %v1952_v3  ;;  %v2340_v49 = vand.u32 2147483647, %v4391_v52  ;;  %v2343_v48 = vadd.f32 1.0, %v4423_v28  ;;  %v4441_v21 = vadd.f32 %v4364_v31, %v4251_v57 }
 0x512   :  { %v2491_v42 = vsel %vm1979_vm11, %v4230_v26, %v2459_v45  ;;  %3152 = vlog2.f32 %v2361_v41  ;;  %vm1982_vm15 = vcmp.ne.f32.partialorder %v4283_v19, %v4283_v19  ;;  %v2144_v57 = vmul.f32 1.442695, %v2085_v22 }
 0x513   :  { %v2524_v53 = vsel %vm2506_vm2, %v1915_v8, %v2491_v42  ;;  %v2496_v39 = vsel %vm1984_vm13, %v4237_v51, %v2464_v7  ;;  %v3141_v24 = vpop.eup %3140  ;;  %3154 = vlog2.f32 %v2343_v48  ;;  %v1950_v51 = vmax.f32 %v4283_v19, 0.0 }
 0x514   :  { %2556 = vst [vmem:[%s4632_s11 + $0x88] sm:$0xff] %v2524_v53  ;;  %v2529_v26 = vsel %vm2506_vm2, %v1920_v10, %v2496_v39  ;;  %v3143_v54 = vpop.eup %3142  ;;  %v4456_v59 = vadd.f32 %v4364_v31, %v4312_v16  ;;  %v2339_v55 = vmul.f32 %v4391_v52, %v2338_v43  ;;  %v2364_v33 = vmul.f32 -0.5, %v4421_v17 }
 0x515   :  { %2561 = vst [vmem:[%s4632_s11 + $0xb0] sm:$0xff] %v2529_v26  ;;  %v3145_v36 = vpop.eup %3144  ;;  %v2336_v40 = vmul.f32 0.6931472, %v3143_v54  ;;  %v2346_v18 = vmul.f32 -0.5, %v4423_v28  ;;  %vm2341_vm0 = vcmp.lt.f32.partialorder %v2340_v49, 0.0004427343  ;;  %3156 = vpow2.f32 %v2144_v57 }
 0x516   :  { %v1953_v62 = vmax.f32 %v4310_v32, 0.0  ;;  %v2051_v50 = vand.u32 2147483647, %v4441_v21  ;;  %v1918_v61 = vmul.f32 2.0, %v3141_v24  ;;  %v1951_v16 = vmax.f32 %v4318_v25, 0.0 }
 0x517   :  { %v4463_v63 = vpop.eup %3146  ;;  %v2342_v0 = vsel %vm2341_vm0, %v2339_v55, %v2336_v40  ;;  %3158 = vtanh.f32 %v4368_v23  ;;  %v2367_v56 = vand.u32 2147483647, %v4421_v17  ;;  %v2056_v6 = vand.u32 2147483647, %v4456_v59 }
 0x518   :  { %v4467_v1 = vpop.eup %3148  ;;  %v2462_v52 = vadd.f32 %v2342_v0, %v1950_v51  ;;  %v2388_v12 = vadd.f32 1.0, %v4463_v63  ;;  %vm1985_vm1 = vcmp.ne.f32.partialorder %v4310_v32, %v4310_v32  ;;  %v2365_v44 = vadd.f32 1.0, %v2364_v33 }
 0x519   :  { %v2347_v3 = vadd.f32 1.0, %v2346_v18  ;;  %v2370_v5 = vadd.f32 1.0, %v4467_v1  ;;  %v2083_v34 = vsub.f32 0.0, %v2051_v50  ;;  %v3151_v58 = vpop.eup %3150  ;;  %v1921_v35 = vmul.f32 2.0, %v3145_v36 }
 0x51a   :  { %v2494_v13 = vsel %vm1982_vm15, %v4283_v19, %v2462_v52  ;;  %vm1983_vm3 = vcmp.ne.f32.partialorder %v4318_v25, %v4318_v25  ;;  %v1956_v14 = vmax.f32 %v4368_v23, 0.0  ;;  %3160 = vlog2.f32 %v2388_v12 }
 0x51b   :  { %v2527_v37 = vsel %vm2506_vm2, %v1918_v61, %v2494_v13  ;;  %v2349_v4 = vand.u32 2147483647, %v4423_v28  ;;  %3162 = vlog2.f32 %v2370_v5  ;;  %v4487_v15 = vadd.f32 %v4364_v31, %v4320_v60 }
 0x51c   :  { %v3153_v30 = vpop.eup %3152  ;;  %2559 = vst [vmem:[%s4632_s11 + $0xa0] sm:$0xff] %v2527_v37  ;;  %vm4492_vm4 = vcmp.lt.f32.partialorder %v2367_v56, 0.0004427343  ;;  %3164 = vtanh.f32 %v4376_v46  ;;  %v2140_v2 = vmul.f32 1.442695, %v2083_v34  ;;  %v2088_v11 = vsub.f32 0.0, %v2056_v6 }
 0x51d   :  { %v3155_v20 = vpop.eup %3154  ;;  %v2363_v8 = vmul.f32 0.6931472, %v3153_v30  ;;  %v2366_v45 = vmul.f32 %v4421_v17, %v2365_v44  ;;  %v2348_v60 = vmul.f32 %v4423_v28, %v2347_v3  ;;  %v2391_v10 = vmul.f32 -0.5, %v4463_v63 }
 0x51e   :  { %v2345_v38 = vmul.f32 0.6931472, %v3155_v20  ;;  %v2373_v7 = vmul.f32 -0.5, %v4467_v1  ;;  %3166 = vpow2.f32 %v2140_v2  ;;  %v2150_v41 = vmul.f32 1.442695, %v2088_v11 }
 0x51f   :  { %v2369_v22 = vsel %vm4492_vm4, %v2366_v45, %v2363_v8  ;;  %v1919_v42 = vmul.f32 2.0, %v3151_v58  ;;  %vm2350_vm5 = vcmp.lt.f32.partialorder %v2349_v4, 0.0004427343  ;;  %v2054_v43 = vand.u32 2147483647, %v4487_v15  ;;  %v4504_v49 = vpop.eup %3156 }
 0x520   :  { %v2465_v48 = vadd.f32 %v2369_v22, %v1953_v62  ;;  %v2351_v17 = vsel %vm2350_vm5, %v2348_v60, %v2345_v38  ;;  %v2394_v28 = vand.u32 2147483647, %v4463_v63  ;;  %3168 = vpow2.f32 %v2150_v41 }
 0x521   :  { %v3159_v53 = vpop.eup %3158  ;;  %v2463_v39 = vadd.f32 %v2351_v17, %v1951_v16  ;;  %v2392_v24 = vadd.f32 1.0, %v2391_v10  ;;  %v2397_v26 = vadd.f32 1.0, %v4504_v49  ;;  %v4510_v54 = vadd.f32 %v4364_v31, %v4327_v29 }
 0x522   :  { %v2497_v51 = vsel %vm1985_vm1, %v4310_v32, %v2465_v48  ;;  %v2374_v57 = vadd.f32 1.0, %v2373_v7  ;;  %v2376_v36 = vand.u32 2147483647, %v4467_v1  ;;  %v2086_v40 = vsub.f32 0.0, %v2054_v43 }
 0x523   :  { %v2530_v55 = vsel %vm2506_vm2, %v1921_v35, %v2497_v51  ;;  %v2495_v33 = vsel %vm1983_vm3, %v4318_v25, %v2463_v39  ;;  %3170 = vlog2.f32 %v2397_v26  ;;  %v4525_v29 = vadd.f32 %v4364_v31, %v4332_v9 }
 0x524   :  { %v3161_v18 = vpop.eup %3160  ;;  %2562 = vst [vmem:[%s4632_s11 + $0xb8] sm:$0xff] %v2530_v55  ;;  %v2528_v32 = vsel %vm2506_vm2, %v1919_v42, %v2495_v33  ;;  %v1954_v62 = vmax.f32 %v4376_v46, 0.0  ;;  %3172 = vtanh.f32 %v4401_v47  ;;  %v2146_v50 = vmul.f32 1.442695, %v2086_v40 }
 0x525   :  { %v3163_v61 = vpop.eup %3162  ;;  %2560 = vst [vmem:[%s4632_s11 + $0xa8] sm:$0xff] %v2528_v32  ;;  %v2390_v25 = vmul.f32 0.6931472, %v3161_v18  ;;  %v2393_v9 = vmul.f32 %v4463_v63, %v2392_v24  ;;  %v2400_v31 = vmul.f32 -0.5, %v4504_v49  ;;  %v2057_v0 = vand.u32 2147483647, %v4510_v54 }
 0x526   :  { %v3165_v16 = vpop.eup %3164  ;;  %vm2395_vm6 = vcmp.lt.f32.partialorder %v2394_v28, 0.0004427343  ;;  %v2372_v52 = vmul.f32 0.6931472, %v3163_v61  ;;  %v2375_v56 = vmul.f32 %v4467_v1, %v2374_v57  ;;  %3174 = vpow2.f32 %v2146_v50 }
 0x527   :  { %v2396_v12 = vsel %vm2395_vm6, %v2393_v9, %v2390_v25  ;;  %vm2377_vm7 = vcmp.lt.f32.partialorder %v2376_v36, 0.0004427343  ;;  %v2089_v6 = vsub.f32 0.0, %v2057_v0  ;;  %v2055_v44 = vand.u32 2147483647, %v4525_v29 }
 0x528   :  { %v3167_v3 = vpop.eup %3166  ;;  %vm1988_vm8 = vcmp.ne.f32.partialorder %v4368_v23, %v4368_v23  ;;  %v2468_v63 = vadd.f32 %v2396_v12, %v1956_v14  ;;  %vm1986_vm9 = vcmp.ne.f32.partialorder %v4376_v46, %v4376_v46  ;;  %v2378_v5 = vsel %vm2377_vm7, %v2375_v56, %v2372_v52 }
 0x529   :  { %v1924_v34 = vmul.f32 2.0, %v3159_v53  ;;  %v2466_v58 = vadd.f32 %v2378_v5, %v1954_v62  ;;  %v2401_v1 = vadd.f32 1.0, %v2400_v31  ;;  %v2379_v13 = vadd.f32 1.0, %v3167_v3 }
 0x52a   :  { %v3169_v35 = vpop.eup %3168  ;;  %v2500_v37 = vsel %vm1988_vm8, %v4368_v23, %v2468_v63  ;;  %v1922_v4 = vmul.f32 2.0, %v3165_v16  ;;  %v2152_v30 = vmul.f32 1.442695, %v2089_v6  ;;  %v2087_v19 = vsub.f32 0.0, %v2055_v44 }
 0x52b   :  { %v2533_v2 = vsel %vm2506_vm2, %v1924_v34, %v2500_v37  ;;  %v2498_v11 = vsel %vm1986_vm9, %v4376_v46, %v2466_v58  ;;  %v2403_v14 = vand.u32 2147483647, %v4504_v49  ;;  %3176 = vlog2.f32 %v2379_v13 }
 0x52c   :  { %2565 = vst [vmem:[%s4632_s11 + $0xd0] sm:$0xff] %v2533_v2  ;;  %v2531_v20 = vsel %vm2506_vm2, %v1922_v4, %v2498_v11  ;;  %3178 = vtanh.f32 %v4441_v21  ;;  %v2424_v23 = vadd.f32 1.0, %v3169_v35  ;;  %v2402_v46 = vmul.f32 %v4504_v49, %v2401_v1 }
 0x52d   :  { %v3171_v8 = vpop.eup %3170  ;;  %2563 = vst [vmem:[%s4632_s11 + $0xc0] sm:$0xff] %v2531_v20  ;;  %3180 = vpow2.f32 %v2152_v30  ;;  %v2382_v10 = vmul.f32 -0.5, %v3167_v3  ;;  %v2148_v38 = vmul.f32 1.442695, %v2087_v19  ;;  %v1957_v7 = vmax.f32 %v4401_v47, 0.0 }
 0x52e   :  { %v3173_v45 = vpop.eup %3172  ;;  %v2399_v60 = vmul.f32 0.6931472, %v3171_v8  ;;  %3182 = vlog2.f32 %v2424_v23  ;;  %vm2404_vm10 = vcmp.lt.f32.partialorder %v2403_v14, 0.0004427343  ;;  %v2427_v43 = vmul.f32 -0.5, %v3169_v35 }
 0x52f   :  { %3184 = vtanh.f32 %v4456_v59  ;;  %v1925_v17 = vmul.f32 2.0, %v3173_v45  ;;  %vm1989_vm11 = vcmp.ne.f32.partialorder %v4401_v47, %v4401_v47  ;;  %v2383_v49 = vadd.f32 1.0, %v2382_v10 }
 0x530   :  { %v3175_v41 = vpop.eup %3174  ;;  %v2405_v22 = vsel %vm2404_vm10, %v2402_v46, %v2399_v60  ;;  %3186 = vpow2.f32 %v2148_v38  ;;  %v2385_v53 = vand.u32 2147483647, %v3167_v3  ;;  %v2428_v26 = vadd.f32 1.0, %v2427_v43 }
 0x531   :  { %v2469_v42 = vadd.f32 %v2405_v22, %v1957_v7  ;;  %v2406_v48 = vadd.f32 1.0, %v3175_v41  ;;  %v2384_v36 = vmul.f32 %v3167_v3, %v2383_v49  ;;  %v2430_v40 = vand.u32 2147483647, %v3169_v35 }
 0x532   :  { %v2409_v55 = vmul.f32 -0.5, %v3175_v41  ;;  %vm2386_vm12 = vcmp.lt.f32.partialorder %v2385_v53, 0.0004427343  ;;  %vm1987_vm13 = vcmp.ne.f32.partialorder %v4441_v21, %v4441_v21  ;;  %v1960_v25 = vmax.f32 %v4456_v59, 0.0 }
 0x533   :  { %v2501_v28 = vsel %vm1989_vm11, %v4401_v47, %v2469_v42  ;;  %3188 = vlog2.f32 %v2406_v48  ;;  %v1955_v47 = vmax.f32 %v4441_v21, 0.0  ;;  %v2429_v31 = vmul.f32 %v3169_v35, %v2428_v26 }
 0x534   :  { %v2534_v39 = vsel %vm2506_vm2, %v1925_v17, %v2501_v28  ;;  %3190 = vtanh.f32 %v4487_v15  ;;  %vm2431_vm14 = vcmp.lt.f32.partialorder %v2430_v40, 0.0004427343  ;;  %v2410_v52 = vadd.f32 1.0, %v2409_v55 }
 0x535   :  { %v3177_v24 = vpop.eup %3176  ;;  %2566 = vst [vmem:[%s4632_s11 + $0xd8] sm:$0xff] %v2534_v39  ;;  %v2412_v6 = vand.u32 2147483647, %v3175_v41  ;;  %vm1992_vm15 = vcmp.ne.f32.partialorder %v4456_v59, %v4456_v59  ;;  %v1958_v4 = vmax.f32 %v4487_v15, 0.0  ;;  %vm1990_vm1 = vcmp.ne.f32.partialorder %v4487_v15, %v4487_v15 }
 0x536   :  { %v3179_v51 = vpop.eup %3178  ;;  %v2381_v57 = vmul.f32 0.6931472, %v3177_v24  ;;  %v2411_v13 = vmul.f32 %v3175_v41, %v2410_v52  ;;  %v1961_v7 = vmax.f32 %v4510_v54, 0.0  ;;  %vm1993_vm4 = vcmp.ne.f32.partialorder %v4510_v54, %v4510_v54 }
 0x537   :  { %v3181_v33 = vpop.eup %3180  ;;  %v1923_v16 = vmul.f32 2.0, %v3179_v51  ;;  %vm2413_vm0 = vcmp.lt.f32.partialorder %v2412_v6, 0.0004427343  ;;  %v1959_v49 = vmax.f32 %v4525_v29, 0.0  ;;  %vm1991_vm6 = vcmp.ne.f32.partialorder %v4525_v29, %v4525_v29 }
 0x538   :  { %v3183_v18 = vpop.eup %3182  ;;  %v2387_v32 = vsel %vm2386_vm12, %v2384_v36, %v2381_v57  ;;  %v2433_v62 = vadd.f32 1.0, %v3181_v33  ;;  %v2436_v58 = vmul.f32 -0.5, %v3181_v33  ;;  %v2439_v14 = vand.u32 2147483647, %v3181_v33 }
 0x539   :  { %v3185_v50 = vpop.eup %3184  ;;  %v2467_v61 = vadd.f32 %v2387_v32, %v1955_v47  ;;  %v2426_v9 = vmul.f32 0.6931472, %v3183_v18 }
 0x53a   :  { %v3187_v0 = vpop.eup %3186  ;;  %3192 = vlog2.f32 %v2433_v62  ;;  %v1928_v34 = vmul.f32 2.0, %v3185_v50  ;;  %v2437_v11 = vadd.f32 1.0, %v2436_v58  ;;  %vm2440_vm3 = vcmp.lt.f32.partialorder %v2439_v14, 0.0004427343 }
 0x53b   :  { %v2499_v56 = vsel %vm1987_vm13, %v4441_v21, %v2467_v61  ;;  %v2432_v12 = vsel %vm2431_vm14, %v2429_v31, %v2426_v9  ;;  %v2415_v44 = vadd.f32 1.0, %v3187_v0  ;;  %3194 = vtanh.f32 %v4510_v54 }
 0x53c   :  { %v2532_v3 = vsel %vm2506_vm2, %v1923_v16, %v2499_v56  ;;  %v2472_v63 = vadd.f32 %v2432_v12, %v1960_v25  ;;  %v2418_v19 = vmul.f32 -0.5, %v3187_v0  ;;  %v2438_v60 = vmul.f32 %v3181_v33, %v2437_v11 }
 0x53d   :  { %v3189_v5 = vpop.eup %3188  ;;  %2564 = vst [vmem:[%s4632_s11 + $0xc8] sm:$0xff] %v2532_v3  ;;  %3196 = vlog2.f32 %v2415_v44  ;;  %v2421_v10 = vand.u32 2147483647, %v3187_v0 }
 0x53e   :  { %v2504_v21 = vsel %vm1992_vm15, %v4456_v59, %v2472_v63  ;;  %v2408_v1 = vmul.f32 0.6931472, %v3189_v5  ;;  %v3191_v35 = vpop.eup %3190  ;;  %3198 = vtanh.f32 %v4525_v29  ;;  %v2419_v46 = vadd.f32 1.0, %v2418_v19 }
 0x53f   :  { %v2537_v37 = vsel %vm2506_vm2, %v1928_v34, %v2504_v21  ;;  %v1926_v59 = vmul.f32 2.0, %v3191_v35  ;;  %vm2422_vm5 = vcmp.lt.f32.partialorder %v2421_v10, 0.0004427343 }
 0x540   :  { %2569 = vst [vmem:[%s4632_s11 + $0xf0] sm:$0xff] %v2537_v37  ;;  %v2414_v30 = vsel %vm2413_vm0, %v2411_v13, %v2408_v1  ;;  %v2420_v43 = vmul.f32 %v3187_v0, %v2419_v46 }
 0x541   :  { %v2470_v2 = vadd.f32 %v2414_v30, %v1958_v4 }
 0x543   :  { %v2502_v20 = vsel %vm1990_vm1, %v4487_v15, %v2470_v2 }
 0x544   :  { %v3193_v23 = vpop.eup %3192  ;;  %v2535_v8 = vsel %vm2506_vm2, %v1926_v59, %v2502_v20 }
 0x545   :  { %2567 = vst [vmem:[%s4632_s11 + $0xe0] sm:$0xff] %v2535_v8  ;;  %v2435_v45 = vmul.f32 0.6931472, %v3193_v23  ;;  %v3195_v38 = vpop.eup %3194 }
 0x546   :  { %v1929_v17 = vmul.f32 2.0, %v3195_v38 }
 0x547   :  { %v3197_v41 = vpop.eup %3196  ;;  %v2441_v22 = vsel %vm2440_vm3, %v2438_v60, %v2435_v45 }
 0x548   :  { %v2473_v42 = vadd.f32 %v2441_v22, %v1961_v7  ;;  %v2417_v15 = vmul.f32 0.6931472, %v3197_v41  ;;  %v3199_v48 = vpop.eup %3198 }
 0x549   :  { %v1927_v26 = vmul.f32 2.0, %v3199_v48 }
 0x54a   :  { %v2505_v28 = vsel %vm1993_vm4, %v4510_v54, %v2473_v42  ;;  %v2423_v53 = vsel %vm2422_vm5, %v2420_v43, %v2417_v15 }
 0x54b   :  { %v2538_v39 = vsel %vm2506_vm2, %v1929_v17, %v2505_v28  ;;  %v2471_v24 = vadd.f32 %v2423_v53, %v1959_v49 }
 0x54c   :  { %2570 = vst [vmem:[%s4632_s11 + $0xf8] sm:$0xff] %v2538_v39 }
 0x54d   :  { %v2503_v51 = vsel %vm1991_vm6, %v4525_v29, %v2471_v24 }
 0x54e   :  { %v2536_v57 = vsel %vm2506_vm2, %v1927_v26, %v2503_v51 }
 0x54f   :  { %2568 = vst [vmem:[%s4632_s11 + $0xe8] sm:$0xff] %v2536_v57 }
 0x550   :  { %2575 = vsyncpa [#allocation3], 1 }
 0x551   :  { %2576 = vsyncpa [#allocation5], 1 }

</bundles_post_ra>
